<compile_context>
chip_gen: v7x
topology: tpu7x:2x2x1
jax: 0.10.0
libtpu: 0.0.40
codegen_flags: <defaults>
</compile_context>

<pallas_src>
import jax
import jax.numpy as jnp
from jax import lax
from jax.experimental import pallas as pl
from jax.experimental.pallas import tpu as pltpu

N_HEADS = 8
EPS = 1e-5
_N_VEC_ROWS = 7          # rows 0..6 of the packed small-param slab (see _pack_params)


def _make_kernel(B, K, H, Dout):
    """Build the fused encoder kernel for static (batch, seq, heads, out) sizes."""

    def kernel(x_ref, wqkv_ref, w1_ref, w2_ref, small_ref, out_ref, act_ref):
        layer = pl.program_id(0)
        n_layers = pl.num_programs(0)

        # Layer 0: pull the input into the resident activation buffer; later
        # layers read the previous layer's output there (never leaves VMEM).
        @pl.when(layer == 0)
        def _():
            act_ref[...] = x_ref[...].astype(jnp.float32)

        x = act_ref[...]                                  # (B*K, Din) f32
        D = w1_ref.shape[1]                               # d_model
        dh = D // H
        small = small_ref[0]                              # (7 + 6K, D) f32

        # Packed small-parameter slab layout (per layer):
        bq, bk, bv = small[0:1], small[1:2], small[2:3]
        g_att, b_att = small[3:4], small[4:5]
        b1 = small[5:6]
        b2 = small[6:7, :Dout]
        off = _N_VEC_ROWS
        gq, betaq = small[off + 0 * K:off + 1 * K], small[off + 1 * K:off + 2 * K]
        gk, betak = small[off + 2 * K:off + 3 * K], small[off + 3 * K:off + 4 * K]
        gv, betav = small[off + 4 * K:off + 5 * K], small[off + 5 * K:off + 6 * K]

        # ---- fused Q/K/V projection: one bf16 MXU matmul, f32 accumulate ----
        qkv = jnp.dot(x.astype(jnp.bfloat16), wqkv_ref[0],
                      preferred_element_type=jnp.float32)          # (B*K, 3D)

        # nn.LayerNorm([K, d_model]): normalize each (K, D) block per batch
        # element.  Two-pass variance (E[(y-mu)^2]) for numerical robustness.
        def ln_block(y2d, bias, g, b):
            y = (y2d + bias).reshape(B, K, D)
            mu = jnp.mean(jnp.mean(y, axis=2, keepdims=True), axis=1, keepdims=True)
            c = y - mu
            var = jnp.mean(jnp.mean(c * c, axis=2, keepdims=True), axis=1, keepdims=True)
            return c * lax.rsqrt(var + EPS) * g[None] + b[None]    # (B, K, D)

        q = ln_block(qkv[:, 0 * D:1 * D], bq, gq, betaq)
        k = ln_block(qkv[:, 1 * D:2 * D], bk, gk, betak)
        v = ln_block(qkv[:, 2 * D:3 * D], bv, gv, betav)

        # ---- multi-head attention ------------------------------------------
        # Heads are statically unrolled (H small) as batch-contractions over B;
        # this removes the old (HK,HK) masked form's 8x redundant MXU/softmax
        # work and avoids 4-D batch-dim transposes.  At K=7/dh=8 each head's
        # matmul is tiny regardless of packing.
        # NOTE: logits are intentionally UNscaled — the PyTorch module rescales
        # q by dk**-0.5 only AFTER qk is computed, so the scale never reaches
        # the softmax.
        head_outs = []
        for h in range(H):
            sl = slice(h * dh, (h + 1) * dh)
            qh, kh, vh = q[:, :, sl], k[:, :, sl], v[:, :, sl]     # (B, K, dh)
            logits = jnp.einsum("bqd,bkd->bqk", qh, kh,
                                preferred_element_type=jnp.float32)  # (B, K, K)
            m = jnp.max(logits, axis=-1, keepdims=True)
            e = jnp.exp(logits - m)
            w = e * pl.reciprocal(jnp.sum(e, axis=-1, keepdims=True), approx=True)
            head_outs.append(jnp.einsum("bqk,bkd->bqd", w, vh,
                                        preferred_element_type=jnp.float32))
        att = jnp.concatenate(head_outs, axis=-1).reshape(B * K, D)  # (B*K, D)

        # TODO(synk): nn.Dropout layers are identity here (inference semantics).

        # nn.LayerNorm(d_model): per-row normalization over the last dim.
        mu = jnp.mean(att, axis=-1, keepdims=True)
        c = att - mu
        var = jnp.mean(c * c, axis=-1, keepdims=True)
        att = c * lax.rsqrt(var + EPS) * g_att + b_att

        # ---- feed-forward (bf16 MXU, f32 accumulate) ------------------------
        h1 = jnp.dot(att.astype(jnp.bfloat16), w1_ref[0],
                     preferred_element_type=jnp.float32) + b1
        h1 = jnp.maximum(h1, 0.0)
        out = jnp.dot(h1.astype(jnp.bfloat16), w2_ref[0],
                      preferred_element_type=jnp.float32) + b2

        act_ref[...] = out                       # stays resident for next layer

        @pl.when(layer == n_layers - 1)
        def _():
            out_ref[...] = out.astype(out_ref.dtype)

    return kernel


def _pack_params(layer_params):
    """Stack per-layer params along a leading layer axis, grouped into 4 arrays.

    Large weights -> bf16 (halves the weight HBM traffic that bounds the
    kernel); the small biases / LayerNorm params -> one f32 (7 + 6K, D) slab.
    """
    D = layer_params[0]["w1"].shape[0]

    wqkv = jnp.stack([jnp.concatenate([p["wq"], p["wk"], p["wv"]], axis=1)
                      for p in layer_params]).astype(jnp.bfloat16)   # (L, Din, 3D)
    w1 = jnp.stack([p["w1"] for p in layer_params]).astype(jnp.bfloat16)  # (L, D, D)
    w2 = jnp.stack([p["w2"] for p in layer_params]).astype(jnp.bfloat16)  # (L, D, Dout)

    def pack_small(p):
        def row(v):
            v = v.reshape(1, -1).astype(jnp.float32)
            if v.shape[1] < D:
                v = jnp.pad(v, ((0, 0), (0, D - v.shape[1])))
            return v
        rows = [row(p["bq"]), row(p["bk"]), row(p["bv"]),
                row(p["gatt"]), row(p["batt"]), row(p["b1"]), row(p["b2"])]
        mats = [p["gq"], p["betaq"], p["gk"], p["betak"], p["gv"], p["betav"]]
        return jnp.concatenate(rows + [m.astype(jnp.float32) for m in mats], axis=0)

    small = jnp.stack([pack_small(p) for p in layer_params])         # (L, 7+6K, D)
    return wqkv, w1, w2, small


def transformer_encoder_pallas(x, layer_params):
    B, K, Din = x.shape
    L = len(layer_params)
    D = layer_params[0]["wq"].shape[1]
    Dout = layer_params[0]["w2"].shape[1]
    assert Din == Dout, "TransformerEncoder requires input_size == output_size"
    assert D % N_HEADS == 0

    wqkv, w1, w2, small = _pack_params(layer_params)
    x2d = x.reshape(B * K, Din)
    kernel = _make_kernel(B, K, N_HEADS, Dout)

    # Explicit VMEM budget: 2x (double-buffered) per-layer params + resident
    # input/output blocks + f32 activation scratch + headroom.  Only override
    # the 32 MiB scoped default when actually needed (large d_model / v7x).
    per_layer_bytes = (wqkv.nbytes + w1.nbytes + w2.nbytes + small.nbytes) // L
    vmem_need = int(2 * per_layer_bytes
                    + 2 * x2d.nbytes
                    + B * K * Dout * x.dtype.itemsize
                    + B * K * Din * 4
                    + (4 << 20))
    cp_kwargs = dict(dimension_semantics=("arbitrary",))
    if vmem_need > (32 << 20):
        cp_kwargs["vmem_limit_bytes"] = vmem_need

    out2d = pl.pallas_call(
        kernel,
        out_shape=jax.ShapeDtypeStruct((B * K, Dout), x.dtype),
        grid=(L,),
        in_specs=[
            pl.BlockSpec((B * K, Din), lambda l: (0, 0)),
            pl.BlockSpec((1,) + wqkv.shape[1:], lambda l: (l, 0, 0)),
            pl.BlockSpec((1,) + w1.shape[1:], lambda l: (l, 0, 0)),
            pl.BlockSpec((1,) + w2.shape[1:], lambda l: (l, 0, 0)),
            pl.BlockSpec((1,) + small.shape[1:], lambda l: (l, 0, 0)),
        ],
        out_specs=pl.BlockSpec((B * K, Dout), lambda l: (0, 0)),
        scratch_shapes=[pltpu.VMEM((B * K, Din), jnp.float32)],
        compiler_params=pltpu.CompilerParams(**cp_kwargs),
    )(x2d, wqkv, w1, w2, small)
    return out2d.reshape(B, K, Dout)


# ---------------- pure-JAX reference (for verification) ----------------
def attention_layer_ref(x, p, mxu_dtype=None):
    """f32 reference of the PyTorch AttentionLayer.  If mxu_dtype is given,
    matmul operands are rounded through it (mirrors the kernel's bf16 MXU)."""
    B, K, _ = x.shape
    D = p["wq"].shape[1]
    dh = D // N_HEADS

    def mm(a, w):
        if mxu_dtype is not None:
            a = a.astype(mxu_dtype).astype(jnp.float32)
            w = w.astype(mxu_dtype).astype(jnp.float32)
        return a @ w

    def ln_full(y, g, b):
        mu = jnp.mean(y, axis=(1, 2), keepdims=True)
        var = jnp.mean((y - mu) ** 2, axis=(1, 2), keepdims=True)
        return (y - mu) * lax.rsqrt(var + EPS) * g[None] + b[None]

    q = ln_full(mm(x, p["wq"]) + p["bq"], p["gq"], p["betaq"])
    k = ln_full(mm(x, p["wk"]) + p["bk"], p["gk"], p["betak"])
    v = ln_full(mm(x, p["wv"]) + p["bv"], p["gv"], p["betav"])

    def split(t):
        return t.reshape(B, K, N_HEADS, dh).transpose(0, 2, 1, 3)

    qh, kh, vh = split(q), split(k), split(v)
    logits = jnp.einsum("bhqd,bhkd->bhqk", qh, kh)   # unscaled, matching module
    w = jax.nn.softmax(logits, axis=-1)
    att = jnp.einsum("bhqk,bhkd->bhqd", w, vh)
    att = att.transpose(0, 2, 1, 3).reshape(B, K, D)

    mu = att.mean(-1, keepdims=True)
    var = ((att - mu) ** 2).mean(-1, keepdims=True)
    att = (att - mu) * lax.rsqrt(var + EPS) * p["gatt"] + p["batt"]
    h1 = jnp.maximum(mm(att, p["w1"]) + p["b1"], 0.0)
    return mm(h1, p["w2"]) + p["b2"]


def transformer_encoder_ref(x, layer_params, mxu_dtype=None):
    for p in layer_params:
        x = attention_layer_ref(x, p, mxu_dtype=mxu_dtype)
    return x


# ---------------- deterministic parameter init ----------------
def init_layer_params(key, input_size, output_size, d_model, K):
    ks = jax.random.split(key, 9)

    def lin(k, fan_in, fan_out):
        bound = 1.0 / (fan_in ** 0.5)
        kw, kb = jax.random.split(k)
        w = jax.random.uniform(kw, (fan_in, fan_out), jnp.float32, -bound, bound)
        b = jax.random.uniform(kb, (1, fan_out), jnp.float32, -bound, bound)
        return w, b

    wq, bq = lin(ks[0], input_size, d_model)
    wk, bk = lin(ks[1], input_size, d_model)
    wv, bv = lin(ks[2], input_size, d_model)
    w1, b1 = lin(ks[3], d_model, d_model)
    w2, b2 = lin(ks[4], d_model, output_size)

    def ln_gb(k, shape):
        kg, kb_ = jax.random.split(k)
        g = 1.0 + 0.05 * jax.random.normal(kg, shape, jnp.float32)
        b = 0.05 * jax.random.normal(kb_, shape, jnp.float32)
        return g, b

    gq, betaq = ln_gb(ks[5], (K, d_model))
    gk, betak = ln_gb(ks[6], (K, d_model))
    gv, betav = ln_gb(ks[7], (K, d_model))
    gatt, batt = ln_gb(ks[8], (1, d_model))

    return dict(wq=wq, bq=bq, gq=gq, betaq=betaq,
                wk=wk, bk=bk, gk=gk, betak=betak,
                wv=wv, bv=bv, gv=gv, betav=betav,
                gatt=gatt, batt=batt,
                w1=w1, b1=b1, w2=w2, b2=b2)


if __name__ == "__main__":
    B, K = 2, 7
    input_size, output_size = 32, 32     # equal so layers stack, as TransformerEncoder requires
    d_model, n_layers = 64, 2            # d_model divisible by n_heads=8

    key = jax.random.PRNGKey(0)
    kx, kp = jax.random.split(key)
    x = jax.random.normal(kx, (B, K, input_size), jnp.float32)
    layer_keys = jax.random.split(kp, n_layers)
    layer_params = [init_layer_params(layer_keys[i], input_size, output_size, d_model, K)
                    for i in range(n_layers)]

    out = jax.block_until_ready(transformer_encoder_pallas(x, layer_params))
    assert out.shape == (B, K, output_size)

    # Check 1 (kernel math): compare against a reference that mirrors the
    # kernel's MXU precision (matmul operands rounded through bf16) so the
    # intentional bf16 weight storage doesn't mask real kernel bugs.
    ref_mixed = jax.block_until_ready(
        transformer_encoder_ref(x, layer_params, mxu_dtype=jnp.bfloat16))
    err1 = float(jnp.max(jnp.abs(out - ref_mixed)))
    assert jnp.allclose(out, ref_mixed, atol=2e-2, rtol=2e-2), err1

    # Check 2 (module fidelity): compare against the full-f32 module reference;
    # the looser tolerance covers the bf16 weight storage / MXU inputs that the
    # performance review asked for.
    ref_f32 = jax.block_until_ready(transformer_encoder_ref(x, layer_params))
    err2 = float(jnp.max(jnp.abs(out - ref_f32)))
    assert jnp.allclose(out, ref_f32, atol=1e-1, rtol=1e-1), err2

    print("KERNEL_OK")
</pallas_src>

<mosaic_0001>
module attributes {stable_mosaic.version = 11 : i64} {
  func.func @kernel(%arg0: i32, %arg1: memref<14x32xf32, #tpu.memory_space<vmem>>, %arg2: memref<1x32x192xbf16, #tpu.memory_space<vmem>>, %arg3: memref<1x64x64xbf16, #tpu.memory_space<vmem>>, %arg4: memref<1x64x32xbf16, #tpu.memory_space<vmem>>, %arg5: memref<1x49x64xf32, #tpu.memory_space<vmem>>, %arg6: memref<14x32xf32, #tpu.memory_space<vmem>>, %arg7: memref<14x32xf32, #tpu.memory_space<vmem>>) attributes {dimension_semantics = [#tpu.dimension_semantics<arbitrary>], iteration_bounds = array<i64: 2>, scalar_prefetch = 0 : i64, scratch_operands = 1 : i64, tpu.core_type = #tpu.core_type<tc>, window_params = [{pipeline_mode = #tpu.pipeline_mode<synchronous>, transform_indices = @transform_0, window_bounds = array<i64: 14, 32>}, {transform_indices = @transform_1, window_bounds = array<i64: 1, 32, 192>}, {transform_indices = @transform_2, window_bounds = array<i64: 1, 64, 64>}, {transform_indices = @transform_3, window_bounds = array<i64: 1, 64, 32>}, {transform_indices = @transform_4, window_bounds = array<i64: 1, 49, 64>}, {pipeline_mode = #tpu.pipeline_mode<synchronous>, transform_indices = @transform_5, window_bounds = array<i64: 14, 32>}]} {
    %c0_i32 = arith.constant 0 : i32
    %0 = arith.cmpi eq, %arg0, %c0_i32 : i32
    %1 = arith.extui %0 : i1 to i32
    %c0_i32_0 = arith.constant 0 : i32
    %2 = arith.cmpi ne, %1, %c0_i32_0 : i32
    scf.if %2 {
      %c0_84 = arith.constant 0 : index
      %c0_85 = arith.constant 0 : index
      %285 = vector.load %arg1[%c0_84, %c0_85] : memref<14x32xf32, #tpu.memory_space<vmem>>, vector<14x32xf32>
      %c0_86 = arith.constant 0 : index
      %c0_87 = arith.constant 0 : index
      %286 = vector.load %arg7[%c0_86, %c0_87] : memref<14x32xf32, #tpu.memory_space<vmem>>, vector<14x32xf32>
      tpu.vector_store %arg7[%c0_86, %c0_87], %285 {strides = array<i32>} : memref<14x32xf32, #tpu.memory_space<vmem>>, vector<14x32xf32>,
    } else {
    }
    %c0 = arith.constant 0 : index
    %c0_1 = arith.constant 0 : index
    %3 = vector.load %arg7[%c0, %c0_1] : memref<14x32xf32, #tpu.memory_space<vmem>>, vector<14x32xf32>
    %c0_2 = arith.constant 0 : index
    %c0_3 = arith.constant 0 : index
    %c0_4 = arith.constant 0 : index
    %4 = vector.load %arg5[%c0_2, %c0_3, %c0_4] : memref<1x49x64xf32, #tpu.memory_space<vmem>>, vector<1x49x64xf32>
    %5 = vector.shape_cast %4 : vector<1x49x64xf32> to vector<49x64xf32>
    %6 = vector.extract_strided_slice %5 {offsets = [0, 0], sizes = [1, 64], strides = [1, 1]} : vector<49x64xf32> to vector<1x64xf32>
    %7 = vector.extract_strided_slice %5 {offsets = [1, 0], sizes = [1, 64], strides = [1, 1]} : vector<49x64xf32> to vector<1x64xf32>
    %8 = vector.extract_strided_slice %5 {offsets = [2, 0], sizes = [1, 64], strides = [1, 1]} : vector<49x64xf32> to vector<1x64xf32>
    %9 = vector.extract_strided_slice %5 {offsets = [3, 0], sizes = [1, 64], strides = [1, 1]} : vector<49x64xf32> to vector<1x64xf32>
    %10 = vector.extract_strided_slice %5 {offsets = [4, 0], sizes = [1, 64], strides = [1, 1]} : vector<49x64xf32> to vector<1x64xf32>
    %11 = vector.extract_strided_slice %5 {offsets = [5, 0], sizes = [1, 64], strides = [1, 1]} : vector<49x64xf32> to vector<1x64xf32>
    %12 = vector.extract_strided_slice %5 {offsets = [6, 0], sizes = [1, 32], strides = [1, 1]} : vector<49x64xf32> to vector<1x32xf32>
    %13 = vector.extract_strided_slice %5 {offsets = [7, 0], sizes = [7, 64], strides = [1, 1]} : vector<49x64xf32> to vector<7x64xf32>
    %14 = vector.extract_strided_slice %5 {offsets = [14, 0], sizes = [7, 64], strides = [1, 1]} : vector<49x64xf32> to vector<7x64xf32>
    %15 = vector.extract_strided_slice %5 {offsets = [21, 0], sizes = [7, 64], strides = [1, 1]} : vector<49x64xf32> to vector<7x64xf32>
    %16 = vector.extract_strided_slice %5 {offsets = [28, 0], sizes = [7, 64], strides = [1, 1]} : vector<49x64xf32> to vector<7x64xf32>
    %17 = vector.extract_strided_slice %5 {offsets = [35, 0], sizes = [7, 64], strides = [1, 1]} : vector<49x64xf32> to vector<7x64xf32>
    %18 = vector.extract_strided_slice %5 {offsets = [42, 0], sizes = [7, 64], strides = [1, 1]} : vector<49x64xf32> to vector<7x64xf32>
    %19 = arith.truncf %3 : vector<14x32xf32> to vector<14x32xbf16>
    %c0_5 = arith.constant 0 : index
    %c0_6 = arith.constant 0 : index
    %c0_7 = arith.constant 0 : index
    %20 = vector.load %arg2[%c0_5, %c0_6, %c0_7] : memref<1x32x192xbf16, #tpu.memory_space<vmem>>, vector<1x32x192xbf16>
    %21 = vector.shape_cast %20 : vector<1x32x192xbf16> to vector<32x192xbf16>
    %cst = arith.constant dense<0.000000e+00> : vector<14x192xf32>
    %22 = tpu.matmul %19, %21, %cst {dimension_numbers = #tpu.dot_dimension_numbers<[1], [0], [0], [1], [0, 0, 1, 1], [], []>} : vector<14x32xbf16>, vector<32x192xbf16>, vector<14x192xf32> -> vector<14x192xf32>
    %23 = vector.extract_strided_slice %22 {offsets = [0, 0], sizes = [14, 64], strides = [1, 1]} : vector<14x192xf32> to vector<14x64xf32>
    %24 = vector.broadcast %6 : vector<1x64xf32> to vector<14x64xf32>
    %25 = arith.addf %23, %24 : vector<14x64xf32>
    %26 = vector.shape_cast %25 : vector<14x64xf32> to vector<2x7x64xf32>
    %cst_8 = arith.constant dense<0.000000e+00> : vector<2x7xf32>
    %27 = vector.multi_reduction <add>, %26, %cst_8 [2] : vector<2x7x64xf32> to vector<2x7xf32>
    %28 = vector.shape_cast %27 : vector<2x7xf32> to vector<2x7x1xf32>
    %cst_9 = arith.constant 6.400000e+01 : f32
    %29 = vector.broadcast %cst_9 : f32 to vector<2x7x1xf32>
    %30 = arith.divf %28, %29 : vector<2x7x1xf32>
    %cst_10 = arith.constant dense<0.000000e+00> : vector<2x1xf32>
    %31 = vector.multi_reduction <add>, %30, %cst_10 [1] : vector<2x7x1xf32> to vector<2x1xf32>
    %32 = vector.shape_cast %31 : vector<2x1xf32> to vector<2x1x1xf32>
    %cst_11 = arith.constant 7.000000e+00 : f32
    %33 = vector.broadcast %cst_11 : f32 to vector<2x1x1xf32>
    %34 = arith.divf %32, %33 : vector<2x1x1xf32>
    %35 = vector.broadcast %34 : vector<2x1x1xf32> to vector<2x7x64xf32>
    %36 = arith.subf %26, %35 : vector<2x7x64xf32>
    %37 = arith.mulf %36, %36 : vector<2x7x64xf32>
    %cst_12 = arith.constant dense<0.000000e+00> : vector<2x7xf32>
    %38 = vector.multi_reduction <add>, %37, %cst_12 [2] : vector<2x7x64xf32> to vector<2x7xf32>
    %39 = vector.shape_cast %38 : vector<2x7xf32> to vector<2x7x1xf32>
    %cst_13 = arith.constant 6.400000e+01 : f32
    %40 = vector.broadcast %cst_13 : f32 to vector<2x7x1xf32>
    %41 = arith.divf %39, %40 : vector<2x7x1xf32>
    %cst_14 = arith.constant dense<0.000000e+00> : vector<2x1xf32>
    %42 = vector.multi_reduction <add>, %41, %cst_14 [1] : vector<2x7x1xf32> to vector<2x1xf32>
    %43 = vector.shape_cast %42 : vector<2x1xf32> to vector<2x1x1xf32>
    %cst_15 = arith.constant 7.000000e+00 : f32
    %44 = vector.broadcast %cst_15 : f32 to vector<2x1x1xf32>
    %45 = arith.divf %43, %44 : vector<2x1x1xf32>
    %cst_16 = arith.constant 9.99999974E-6 : f32
    %46 = vector.broadcast %cst_16 : f32 to vector<2x1x1xf32>
    %47 = arith.addf %45, %46 : vector<2x1x1xf32>
    %48 = math.rsqrt %47 : vector<2x1x1xf32>
    %49 = vector.broadcast %48 : vector<2x1x1xf32> to vector<2x7x64xf32>
    %50 = arith.mulf %36, %49 : vector<2x7x64xf32>
    %51 = vector.shape_cast %13 : vector<7x64xf32> to vector<1x7x64xf32>
    %52 = vector.broadcast %51 : vector<1x7x64xf32> to vector<2x7x64xf32>
    %53 = arith.mulf %50, %52 : vector<2x7x64xf32>
    %54 = vector.shape_cast %14 : vector<7x64xf32> to vector<1x7x64xf32>
    %55 = vector.broadcast %54 : vector<1x7x64xf32> to vector<2x7x64xf32>
    %56 = arith.addf %53, %55 : vector<2x7x64xf32>
    %57 = vector.extract_strided_slice %22 {offsets = [0, 64], sizes = [14, 64], strides = [1, 1]} : vector<14x192xf32> to vector<14x64xf32>
    %58 = vector.broadcast %7 : vector<1x64xf32> to vector<14x64xf32>
    %59 = arith.addf %57, %58 : vector<14x64xf32>
    %60 = vector.shape_cast %59 : vector<14x64xf32> to vector<2x7x64xf32>
    %cst_17 = arith.constant dense<0.000000e+00> : vector<2x7xf32>
    %61 = vector.multi_reduction <add>, %60, %cst_17 [2] : vector<2x7x64xf32> to vector<2x7xf32>
    %62 = vector.shape_cast %61 : vector<2x7xf32> to vector<2x7x1xf32>
    %cst_18 = arith.constant 6.400000e+01 : f32
    %63 = vector.broadcast %cst_18 : f32 to vector<2x7x1xf32>
    %64 = arith.divf %62, %63 : vector<2x7x1xf32>
    %cst_19 = arith.constant dense<0.000000e+00> : vector<2x1xf32>
    %65 = vector.multi_reduction <add>, %64, %cst_19 [1] : vector<2x7x1xf32> to vector<2x1xf32>
    %66 = vector.shape_cast %65 : vector<2x1xf32> to vector<2x1x1xf32>
    %cst_20 = arith.constant 7.000000e+00 : f32
    %67 = vector.broadcast %cst_20 : f32 to vector<2x1x1xf32>
    %68 = arith.divf %66, %67 : vector<2x1x1xf32>
    %69 = vector.broadcast %68 : vector<2x1x1xf32> to vector<2x7x64xf32>
    %70 = arith.subf %60, %69 : vector<2x7x64xf32>
    %71 = arith.mulf %70, %70 : vector<2x7x64xf32>
    %cst_21 = arith.constant dense<0.000000e+00> : vector<2x7xf32>
    %72 = vector.multi_reduction <add>, %71, %cst_21 [2] : vector<2x7x64xf32> to vector<2x7xf32>
    %73 = vector.shape_cast %72 : vector<2x7xf32> to vector<2x7x1xf32>
    %cst_22 = arith.constant 6.400000e+01 : f32
    %74 = vector.broadcast %cst_22 : f32 to vector<2x7x1xf32>
    %75 = arith.divf %73, %74 : vector<2x7x1xf32>
    %cst_23 = arith.constant dense<0.000000e+00> : vector<2x1xf32>
    %76 = vector.multi_reduction <add>, %75, %cst_23 [1] : vector<2x7x1xf32> to vector<2x1xf32>
    %77 = vector.shape_cast %76 : vector<2x1xf32> to vector<2x1x1xf32>
    %cst_24 = arith.constant 7.000000e+00 : f32
    %78 = vector.broadcast %cst_24 : f32 to vector<2x1x1xf32>
    %79 = arith.divf %77, %78 : vector<2x1x1xf32>
    %cst_25 = arith.constant 9.99999974E-6 : f32
    %80 = vector.broadcast %cst_25 : f32 to vector<2x1x1xf32>
    %81 = arith.addf %79, %80 : vector<2x1x1xf32>
    %82 = math.rsqrt %81 : vector<2x1x1xf32>
    %83 = vector.broadcast %82 : vector<2x1x1xf32> to vector<2x7x64xf32>
    %84 = arith.mulf %70, %83 : vector<2x7x64xf32>
    %85 = vector.shape_cast %15 : vector<7x64xf32> to vector<1x7x64xf32>
    %86 = vector.broadcast %85 : vector<1x7x64xf32> to vector<2x7x64xf32>
    %87 = arith.mulf %84, %86 : vector<2x7x64xf32>
    %88 = vector.shape_cast %16 : vector<7x64xf32> to vector<1x7x64xf32>
    %89 = vector.broadcast %88 : vector<1x7x64xf32> to vector<2x7x64xf32>
    %90 = arith.addf %87, %89 : vector<2x7x64xf32>
    %91 = vector.extract_strided_slice %22 {offsets = [0, 128], sizes = [14, 64], strides = [1, 1]} : vector<14x192xf32> to vector<14x64xf32>
    %92 = vector.broadcast %8 : vector<1x64xf32> to vector<14x64xf32>
    %93 = arith.addf %91, %92 : vector<14x64xf32>
    %94 = vector.shape_cast %93 : vector<14x64xf32> to vector<2x7x64xf32>
    %cst_26 = arith.constant dense<0.000000e+00> : vector<2x7xf32>
    %95 = vector.multi_reduction <add>, %94, %cst_26 [2] : vector<2x7x64xf32> to vector<2x7xf32>
    %96 = vector.shape_cast %95 : vector<2x7xf32> to vector<2x7x1xf32>
    %cst_27 = arith.constant 6.400000e+01 : f32
    %97 = vector.broadcast %cst_27 : f32 to vector<2x7x1xf32>
    %98 = arith.divf %96, %97 : vector<2x7x1xf32>
    %cst_28 = arith.constant dense<0.000000e+00> : vector<2x1xf32>
    %99 = vector.multi_reduction <add>, %98, %cst_28 [1] : vector<2x7x1xf32> to vector<2x1xf32>
    %100 = vector.shape_cast %99 : vector<2x1xf32> to vector<2x1x1xf32>
    %cst_29 = arith.constant 7.000000e+00 : f32
    %101 = vector.broadcast %cst_29 : f32 to vector<2x1x1xf32>
    %102 = arith.divf %100, %101 : vector<2x1x1xf32>
    %103 = vector.broadcast %102 : vector<2x1x1xf32> to vector<2x7x64xf32>
    %104 = arith.subf %94, %103 : vector<2x7x64xf32>
    %105 = arith.mulf %104, %104 : vector<2x7x64xf32>
    %cst_30 = arith.constant dense<0.000000e+00> : vector<2x7xf32>
    %106 = vector.multi_reduction <add>, %105, %cst_30 [2] : vector<2x7x64xf32> to vector<2x7xf32>
    %107 = vector.shape_cast %106 : vector<2x7xf32> to vector<2x7x1xf32>
    %cst_31 = arith.constant 6.400000e+01 : f32
    %108 = vector.broadcast %cst_31 : f32 to vector<2x7x1xf32>
    %109 = arith.divf %107, %108 : vector<2x7x1xf32>
    %cst_32 = arith.constant dense<0.000000e+00> : vector<2x1xf32>
    %110 = vector.multi_reduction <add>, %109, %cst_32 [1] : vector<2x7x1xf32> to vector<2x1xf32>
    %111 = vector.shape_cast %110 : vector<2x1xf32> to vector<2x1x1xf32>
    %cst_33 = arith.constant 7.000000e+00 : f32
    %112 = vector.broadcast %cst_33 : f32 to vector<2x1x1xf32>
    %113 = arith.divf %111, %112 : vector<2x1x1xf32>
    %cst_34 = arith.constant 9.99999974E-6 : f32
    %114 = vector.broadcast %cst_34 : f32 to vector<2x1x1xf32>
    %115 = arith.addf %113, %114 : vector<2x1x1xf32>
    %116 = math.rsqrt %115 : vector<2x1x1xf32>
    %117 = vector.broadcast %116 : vector<2x1x1xf32> to vector<2x7x64xf32>
    %118 = arith.mulf %104, %117 : vector<2x7x64xf32>
    %119 = vector.shape_cast %17 : vector<7x64xf32> to vector<1x7x64xf32>
    %120 = vector.broadcast %119 : vector<1x7x64xf32> to vector<2x7x64xf32>
    %121 = arith.mulf %118, %120 : vector<2x7x64xf32>
    %122 = vector.shape_cast %18 : vector<7x64xf32> to vector<1x7x64xf32>
    %123 = vector.broadcast %122 : vector<1x7x64xf32> to vector<2x7x64xf32>
    %124 = arith.addf %121, %123 : vector<2x7x64xf32>
    %125 = vector.extract_strided_slice %56 {offsets = [0, 0, 0], sizes = [2, 7, 8], strides = [1, 1, 1]} : vector<2x7x64xf32> to vector<2x7x8xf32>
    %126 = vector.extract_strided_slice %90 {offsets = [0, 0, 0], sizes = [2, 7, 8], strides = [1, 1, 1]} : vector<2x7x64xf32> to vector<2x7x8xf32>
    %127 = vector.extract_strided_slice %124 {offsets = [0, 0, 0], sizes = [2, 7, 8], strides = [1, 1, 1]} : vector<2x7x64xf32> to vector<2x7x8xf32>
    "tpu.trace_start"() <{level = 10 : i32, message = "bqd,bkd->bqk"}> : () -> ()
    %cst_35 = arith.constant dense<0.000000e+00> : vector<2x7x7xf32>
    %128 = tpu.matmul %125, %126, %cst_35 {dimension_numbers = #tpu.dot_dimension_numbers<[2], [2], [1], [1], [0, 0, 0, 1, 1, 1], [0], [0]>} : vector<2x7x8xf32>, vector<2x7x8xf32>, vector<2x7x7xf32> -> vector<2x7x7xf32>
    "tpu.trace_stop"() : () -> ()
    %cst_36 = arith.constant dense<0xFF800000> : vector<2x7xf32>
    %129 = vector.multi_reduction <maximumf>, %128, %cst_36 [2] : vector<2x7x7xf32> to vector<2x7xf32>
    %130 = vector.shape_cast %129 : vector<2x7xf32> to vector<2x7x1xf32>
    %131 = vector.broadcast %130 : vector<2x7x1xf32> to vector<2x7x7xf32>
    %132 = arith.subf %128, %131 : vector<2x7x7xf32>
    %133 = math.exp %132 : vector<2x7x7xf32>
    %cst_37 = arith.constant dense<0.000000e+00> : vector<2x7xf32>
    %134 = vector.multi_reduction <add>, %133, %cst_37 [2] : vector<2x7x7xf32> to vector<2x7xf32>
    %135 = vector.shape_cast %134 : vector<2x7xf32> to vector<2x7x1xf32>
    %136 = tpu.reciprocal %135 {approx = true} : vector<2x7x1xf32> -> vector<2x7x1xf32>
    %137 = vector.broadcast %136 : vector<2x7x1xf32> to vector<2x7x7xf32>
    %138 = arith.mulf %133, %137 : vector<2x7x7xf32>
    "tpu.trace_start"() <{level = 10 : i32, message = "bqk,bkd->bqd"}> : () -> ()
    %cst_38 = arith.constant dense<0.000000e+00> : vector<2x7x8xf32>
    %139 = tpu.matmul %138, %127, %cst_38 {dimension_numbers = #tpu.dot_dimension_numbers<[2], [1], [1], [2], [0, 0, 0, 1, 1, 2], [0], [0]>} : vector<2x7x7xf32>, vector<2x7x8xf32>, vector<2x7x8xf32> -> vector<2x7x8xf32>
    "tpu.trace_stop"() : () -> ()
    %140 = vector.extract_strided_slice %56 {offsets = [0, 0, 8], sizes = [2, 7, 8], strides = [1, 1, 1]} : vector<2x7x64xf32> to vector<2x7x8xf32>
    %141 = vector.extract_strided_slice %90 {offsets = [0, 0, 8], sizes = [2, 7, 8], strides = [1, 1, 1]} : vector<2x7x64xf32> to vector<2x7x8xf32>
    %142 = vector.extract_strided_slice %124 {offsets = [0, 0, 8], sizes = [2, 7, 8], strides = [1, 1, 1]} : vector<2x7x64xf32> to vector<2x7x8xf32>
    "tpu.trace_start"() <{level = 10 : i32, message = "bqd,bkd->bqk"}> : () -> ()
    %cst_39 = arith.constant dense<0.000000e+00> : vector<2x7x7xf32>
    %143 = tpu.matmul %140, %141, %cst_39 {dimension_numbers = #tpu.dot_dimension_numbers<[2], [2], [1], [1], [0, 0, 0, 1, 1, 1], [0], [0]>} : vector<2x7x8xf32>, vector<2x7x8xf32>, vector<2x7x7xf32> -> vector<2x7x7xf32>
    "tpu.trace_stop"() : () -> ()
    %cst_40 = arith.constant dense<0xFF800000> : vector<2x7xf32>
    %144 = vector.multi_reduction <maximumf>, %143, %cst_40 [2] : vector<2x7x7xf32> to vector<2x7xf32>
    %145 = vector.shape_cast %144 : vector<2x7xf32> to vector<2x7x1xf32>
    %146 = vector.broadcast %145 : vector<2x7x1xf32> to vector<2x7x7xf32>
    %147 = arith.subf %143, %146 : vector<2x7x7xf32>
    %148 = math.exp %147 : vector<2x7x7xf32>
    %cst_41 = arith.constant dense<0.000000e+00> : vector<2x7xf32>
    %149 = vector.multi_reduction <add>, %148, %cst_41 [2] : vector<2x7x7xf32> to vector<2x7xf32>
    %150 = vector.shape_cast %149 : vector<2x7xf32> to vector<2x7x1xf32>
    %151 = tpu.reciprocal %150 {approx = true} : vector<2x7x1xf32> -> vector<2x7x1xf32>
    %152 = vector.broadcast %151 : vector<2x7x1xf32> to vector<2x7x7xf32>
    %153 = arith.mulf %148, %152 : vector<2x7x7xf32>
    "tpu.trace_start"() <{level = 10 : i32, message = "bqk,bkd->bqd"}> : () -> ()
    %cst_42 = arith.constant dense<0.000000e+00> : vector<2x7x8xf32>
    %154 = tpu.matmul %153, %142, %cst_42 {dimension_numbers = #tpu.dot_dimension_numbers<[2], [1], [1], [2], [0, 0, 0, 1, 1, 2], [0], [0]>} : vector<2x7x7xf32>, vector<2x7x8xf32>, vector<2x7x8xf32> -> vector<2x7x8xf32>
    "tpu.trace_stop"() : () -> ()
    %155 = vector.extract_strided_slice %56 {offsets = [0, 0, 16], sizes = [2, 7, 8], strides = [1, 1, 1]} : vector<2x7x64xf32> to vector<2x7x8xf32>
    %156 = vector.extract_strided_slice %90 {offsets = [0, 0, 16], sizes = [2, 7, 8], strides = [1, 1, 1]} : vector<2x7x64xf32> to vector<2x7x8xf32>
    %157 = vector.extract_strided_slice %124 {offsets = [0, 0, 16], sizes = [2, 7, 8], strides = [1, 1, 1]} : vector<2x7x64xf32> to vector<2x7x8xf32>
    "tpu.trace_start"() <{level = 10 : i32, message = "bqd,bkd->bqk"}> : () -> ()
    %cst_43 = arith.constant dense<0.000000e+00> : vector<2x7x7xf32>
    %158 = tpu.matmul %155, %156, %cst_43 {dimension_numbers = #tpu.dot_dimension_numbers<[2], [2], [1], [1], [0, 0, 0, 1, 1, 1], [0], [0]>} : vector<2x7x8xf32>, vector<2x7x8xf32>, vector<2x7x7xf32> -> vector<2x7x7xf32>
    "tpu.trace_stop"() : () -> ()
    %cst_44 = arith.constant dense<0xFF800000> : vector<2x7xf32>
    %159 = vector.multi_reduction <maximumf>, %158, %cst_44 [2] : vector<2x7x7xf32> to vector<2x7xf32>
    %160 = vector.shape_cast %159 : vector<2x7xf32> to vector<2x7x1xf32>
    %161 = vector.broadcast %160 : vector<2x7x1xf32> to vector<2x7x7xf32>
    %162 = arith.subf %158, %161 : vector<2x7x7xf32>
    %163 = math.exp %162 : vector<2x7x7xf32>
    %cst_45 = arith.constant dense<0.000000e+00> : vector<2x7xf32>
    %164 = vector.multi_reduction <add>, %163, %cst_45 [2] : vector<2x7x7xf32> to vector<2x7xf32>
    %165 = vector.shape_cast %164 : vector<2x7xf32> to vector<2x7x1xf32>
    %166 = tpu.reciprocal %165 {approx = true} : vector<2x7x1xf32> -> vector<2x7x1xf32>
    %167 = vector.broadcast %166 : vector<2x7x1xf32> to vector<2x7x7xf32>
    %168 = arith.mulf %163, %167 : vector<2x7x7xf32>
    "tpu.trace_start"() <{level = 10 : i32, message = "bqk,bkd->bqd"}> : () -> ()
    %cst_46 = arith.constant dense<0.000000e+00> : vector<2x7x8xf32>
    %169 = tpu.matmul %168, %157, %cst_46 {dimension_numbers = #tpu.dot_dimension_numbers<[2], [1], [1], [2], [0, 0, 0, 1, 1, 2], [0], [0]>} : vector<2x7x7xf32>, vector<2x7x8xf32>, vector<2x7x8xf32> -> vector<2x7x8xf32>
    "tpu.trace_stop"() : () -> ()
    %170 = vector.extract_strided_slice %56 {offsets = [0, 0, 24], sizes = [2, 7, 8], strides = [1, 1, 1]} : vector<2x7x64xf32> to vector<2x7x8xf32>
    %171 = vector.extract_strided_slice %90 {offsets = [0, 0, 24], sizes = [2, 7, 8], strides = [1, 1, 1]} : vector<2x7x64xf32> to vector<2x7x8xf32>
    %172 = vector.extract_strided_slice %124 {offsets = [0, 0, 24], sizes = [2, 7, 8], strides = [1, 1, 1]} : vector<2x7x64xf32> to vector<2x7x8xf32>
    "tpu.trace_start"() <{level = 10 : i32, message = "bqd,bkd->bqk"}> : () -> ()
    %cst_47 = arith.constant dense<0.000000e+00> : vector<2x7x7xf32>
    %173 = tpu.matmul %170, %171, %cst_47 {dimension_numbers = #tpu.dot_dimension_numbers<[2], [2], [1], [1], [0, 0, 0, 1, 1, 1], [0], [0]>} : vector<2x7x8xf32>, vector<2x7x8xf32>, vector<2x7x7xf32> -> vector<2x7x7xf32>
    "tpu.trace_stop"() : () -> ()
    %cst_48 = arith.constant dense<0xFF800000> : vector<2x7xf32>
    %174 = vector.multi_reduction <maximumf>, %173, %cst_48 [2] : vector<2x7x7xf32> to vector<2x7xf32>
    %175 = vector.shape_cast %174 : vector<2x7xf32> to vector<2x7x1xf32>
    %176 = vector.broadcast %175 : vector<2x7x1xf32> to vector<2x7x7xf32>
    %177 = arith.subf %173, %176 : vector<2x7x7xf32>
    %178 = math.exp %177 : vector<2x7x7xf32>
    %cst_49 = arith.constant dense<0.000000e+00> : vector<2x7xf32>
    %179 = vector.multi_reduction <add>, %178, %cst_49 [2] : vector<2x7x7xf32> to vector<2x7xf32>
    %180 = vector.shape_cast %179 : vector<2x7xf32> to vector<2x7x1xf32>
    %181 = tpu.reciprocal %180 {approx = true} : vector<2x7x1xf32> -> vector<2x7x1xf32>
    %182 = vector.broadcast %181 : vector<2x7x1xf32> to vector<2x7x7xf32>
    %183 = arith.mulf %178, %182 : vector<2x7x7xf32>
    "tpu.trace_start"() <{level = 10 : i32, message = "bqk,bkd->bqd"}> : () -> ()
    %cst_50 = arith.constant dense<0.000000e+00> : vector<2x7x8xf32>
    %184 = tpu.matmul %183, %172, %cst_50 {dimension_numbers = #tpu.dot_dimension_numbers<[2], [1], [1], [2], [0, 0, 0, 1, 1, 2], [0], [0]>} : vector<2x7x7xf32>, vector<2x7x8xf32>, vector<2x7x8xf32> -> vector<2x7x8xf32>
    "tpu.trace_stop"() : () -> ()
    %185 = vector.extract_strided_slice %56 {offsets = [0, 0, 32], sizes = [2, 7, 8], strides = [1, 1, 1]} : vector<2x7x64xf32> to vector<2x7x8xf32>
    %186 = vector.extract_strided_slice %90 {offsets = [0, 0, 32], sizes = [2, 7, 8], strides = [1, 1, 1]} : vector<2x7x64xf32> to vector<2x7x8xf32>
    %187 = vector.extract_strided_slice %124 {offsets = [0, 0, 32], sizes = [2, 7, 8], strides = [1, 1, 1]} : vector<2x7x64xf32> to vector<2x7x8xf32>
    "tpu.trace_start"() <{level = 10 : i32, message = "bqd,bkd->bqk"}> : () -> ()
    %cst_51 = arith.constant dense<0.000000e+00> : vector<2x7x7xf32>
    %188 = tpu.matmul %185, %186, %cst_51 {dimension_numbers = #tpu.dot_dimension_numbers<[2], [2], [1], [1], [0, 0, 0, 1, 1, 1], [0], [0]>} : vector<2x7x8xf32>, vector<2x7x8xf32>, vector<2x7x7xf32> -> vector<2x7x7xf32>
    "tpu.trace_stop"() : () -> ()
    %cst_52 = arith.constant dense<0xFF800000> : vector<2x7xf32>
    %189 = vector.multi_reduction <maximumf>, %188, %cst_52 [2] : vector<2x7x7xf32> to vector<2x7xf32>
    %190 = vector.shape_cast %189 : vector<2x7xf32> to vector<2x7x1xf32>
    %191 = vector.broadcast %190 : vector<2x7x1xf32> to vector<2x7x7xf32>
    %192 = arith.subf %188, %191 : vector<2x7x7xf32>
    %193 = math.exp %192 : vector<2x7x7xf32>
    %cst_53 = arith.constant dense<0.000000e+00> : vector<2x7xf32>
    %194 = vector.multi_reduction <add>, %193, %cst_53 [2] : vector<2x7x7xf32> to vector<2x7xf32>
    %195 = vector.shape_cast %194 : vector<2x7xf32> to vector<2x7x1xf32>
    %196 = tpu.reciprocal %195 {approx = true} : vector<2x7x1xf32> -> vector<2x7x1xf32>
    %197 = vector.broadcast %196 : vector<2x7x1xf32> to vector<2x7x7xf32>
    %198 = arith.mulf %193, %197 : vector<2x7x7xf32>
    "tpu.trace_start"() <{level = 10 : i32, message = "bqk,bkd->bqd"}> : () -> ()
    %cst_54 = arith.constant dense<0.000000e+00> : vector<2x7x8xf32>
    %199 = tpu.matmul %198, %187, %cst_54 {dimension_numbers = #tpu.dot_dimension_numbers<[2], [1], [1], [2], [0, 0, 0, 1, 1, 2], [0], [0]>} : vector<2x7x7xf32>, vector<2x7x8xf32>, vector<2x7x8xf32> -> vector<2x7x8xf32>
    "tpu.trace_stop"() : () -> ()
    %200 = vector.extract_strided_slice %56 {offsets = [0, 0, 40], sizes = [2, 7, 8], strides = [1, 1, 1]} : vector<2x7x64xf32> to vector<2x7x8xf32>
    %201 = vector.extract_strided_slice %90 {offsets = [0, 0, 40], sizes = [2, 7, 8], strides = [1, 1, 1]} : vector<2x7x64xf32> to vector<2x7x8xf32>
    %202 = vector.extract_strided_slice %124 {offsets = [0, 0, 40], sizes = [2, 7, 8], strides = [1, 1, 1]} : vector<2x7x64xf32> to vector<2x7x8xf32>
    "tpu.trace_start"() <{level = 10 : i32, message = "bqd,bkd->bqk"}> : () -> ()
    %cst_55 = arith.constant dense<0.000000e+00> : vector<2x7x7xf32>
    %203 = tpu.matmul %200, %201, %cst_55 {dimension_numbers = #tpu.dot_dimension_numbers<[2], [2], [1], [1], [0, 0, 0, 1, 1, 1], [0], [0]>} : vector<2x7x8xf32>, vector<2x7x8xf32>, vector<2x7x7xf32> -> vector<2x7x7xf32>
    "tpu.trace_stop"() : () -> ()
    %cst_56 = arith.constant dense<0xFF800000> : vector<2x7xf32>
    %204 = vector.multi_reduction <maximumf>, %203, %cst_56 [2] : vector<2x7x7xf32> to vector<2x7xf32>
    %205 = vector.shape_cast %204 : vector<2x7xf32> to vector<2x7x1xf32>
    %206 = vector.broadcast %205 : vector<2x7x1xf32> to vector<2x7x7xf32>
    %207 = arith.subf %203, %206 : vector<2x7x7xf32>
    %208 = math.exp %207 : vector<2x7x7xf32>
    %cst_57 = arith.constant dense<0.000000e+00> : vector<2x7xf32>
    %209 = vector.multi_reduction <add>, %208, %cst_57 [2] : vector<2x7x7xf32> to vector<2x7xf32>
    %210 = vector.shape_cast %209 : vector<2x7xf32> to vector<2x7x1xf32>
    %211 = tpu.reciprocal %210 {approx = true} : vector<2x7x1xf32> -> vector<2x7x1xf32>
    %212 = vector.broadcast %211 : vector<2x7x1xf32> to vector<2x7x7xf32>
    %213 = arith.mulf %208, %212 : vector<2x7x7xf32>
    "tpu.trace_start"() <{level = 10 : i32, message = "bqk,bkd->bqd"}> : () -> ()
    %cst_58 = arith.constant dense<0.000000e+00> : vector<2x7x8xf32>
    %214 = tpu.matmul %213, %202, %cst_58 {dimension_numbers = #tpu.dot_dimension_numbers<[2], [1], [1], [2], [0, 0, 0, 1, 1, 2], [0], [0]>} : vector<2x7x7xf32>, vector<2x7x8xf32>, vector<2x7x8xf32> -> vector<2x7x8xf32>
    "tpu.trace_stop"() : () -> ()
    %215 = vector.extract_strided_slice %56 {offsets = [0, 0, 48], sizes = [2, 7, 8], strides = [1, 1, 1]} : vector<2x7x64xf32> to vector<2x7x8xf32>
    %216 = vector.extract_strided_slice %90 {offsets = [0, 0, 48], sizes = [2, 7, 8], strides = [1, 1, 1]} : vector<2x7x64xf32> to vector<2x7x8xf32>
    %217 = vector.extract_strided_slice %124 {offsets = [0, 0, 48], sizes = [2, 7, 8], strides = [1, 1, 1]} : vector<2x7x64xf32> to vector<2x7x8xf32>
    "tpu.trace_start"() <{level = 10 : i32, message = "bqd,bkd->bqk"}> : () -> ()
    %cst_59 = arith.constant dense<0.000000e+00> : vector<2x7x7xf32>
    %218 = tpu.matmul %215, %216, %cst_59 {dimension_numbers = #tpu.dot_dimension_numbers<[2], [2], [1], [1], [0, 0, 0, 1, 1, 1], [0], [0]>} : vector<2x7x8xf32>, vector<2x7x8xf32>, vector<2x7x7xf32> -> vector<2x7x7xf32>
    "tpu.trace_stop"() : () -> ()
    %cst_60 = arith.constant dense<0xFF800000> : vector<2x7xf32>
    %219 = vector.multi_reduction <maximumf>, %218, %cst_60 [2] : vector<2x7x7xf32> to vector<2x7xf32>
    %220 = vector.shape_cast %219 : vector<2x7xf32> to vector<2x7x1xf32>
    %221 = vector.broadcast %220 : vector<2x7x1xf32> to vector<2x7x7xf32>
    %222 = arith.subf %218, %221 : vector<2x7x7xf32>
    %223 = math.exp %222 : vector<2x7x7xf32>
    %cst_61 = arith.constant dense<0.000000e+00> : vector<2x7xf32>
    %224 = vector.multi_reduction <add>, %223, %cst_61 [2] : vector<2x7x7xf32> to vector<2x7xf32>
    %225 = vector.shape_cast %224 : vector<2x7xf32> to vector<2x7x1xf32>
    %226 = tpu.reciprocal %225 {approx = true} : vector<2x7x1xf32> -> vector<2x7x1xf32>
    %227 = vector.broadcast %226 : vector<2x7x1xf32> to vector<2x7x7xf32>
    %228 = arith.mulf %223, %227 : vector<2x7x7xf32>
    "tpu.trace_start"() <{level = 10 : i32, message = "bqk,bkd->bqd"}> : () -> ()
    %cst_62 = arith.constant dense<0.000000e+00> : vector<2x7x8xf32>
    %229 = tpu.matmul %228, %217, %cst_62 {dimension_numbers = #tpu.dot_dimension_numbers<[2], [1], [1], [2], [0, 0, 0, 1, 1, 2], [0], [0]>} : vector<2x7x7xf32>, vector<2x7x8xf32>, vector<2x7x8xf32> -> vector<2x7x8xf32>
    "tpu.trace_stop"() : () -> ()
    %230 = vector.extract_strided_slice %56 {offsets = [0, 0, 56], sizes = [2, 7, 8], strides = [1, 1, 1]} : vector<2x7x64xf32> to vector<2x7x8xf32>
    %231 = vector.extract_strided_slice %90 {offsets = [0, 0, 56], sizes = [2, 7, 8], strides = [1, 1, 1]} : vector<2x7x64xf32> to vector<2x7x8xf32>
    %232 = vector.extract_strided_slice %124 {offsets = [0, 0, 56], sizes = [2, 7, 8], strides = [1, 1, 1]} : vector<2x7x64xf32> to vector<2x7x8xf32>
    "tpu.trace_start"() <{level = 10 : i32, message = "bqd,bkd->bqk"}> : () -> ()
    %cst_63 = arith.constant dense<0.000000e+00> : vector<2x7x7xf32>
    %233 = tpu.matmul %230, %231, %cst_63 {dimension_numbers = #tpu.dot_dimension_numbers<[2], [2], [1], [1], [0, 0, 0, 1, 1, 1], [0], [0]>} : vector<2x7x8xf32>, vector<2x7x8xf32>, vector<2x7x7xf32> -> vector<2x7x7xf32>
    "tpu.trace_stop"() : () -> ()
    %cst_64 = arith.constant dense<0xFF800000> : vector<2x7xf32>
    %234 = vector.multi_reduction <maximumf>, %233, %cst_64 [2] : vector<2x7x7xf32> to vector<2x7xf32>
    %235 = vector.shape_cast %234 : vector<2x7xf32> to vector<2x7x1xf32>
    %236 = vector.broadcast %235 : vector<2x7x1xf32> to vector<2x7x7xf32>
    %237 = arith.subf %233, %236 : vector<2x7x7xf32>
    %238 = math.exp %237 : vector<2x7x7xf32>
    %cst_65 = arith.constant dense<0.000000e+00> : vector<2x7xf32>
    %239 = vector.multi_reduction <add>, %238, %cst_65 [2] : vector<2x7x7xf32> to vector<2x7xf32>
    %240 = vector.shape_cast %239 : vector<2x7xf32> to vector<2x7x1xf32>
    %241 = tpu.reciprocal %240 {approx = true} : vector<2x7x1xf32> -> vector<2x7x1xf32>
    %242 = vector.broadcast %241 : vector<2x7x1xf32> to vector<2x7x7xf32>
    %243 = arith.mulf %238, %242 : vector<2x7x7xf32>
    "tpu.trace_start"() <{level = 10 : i32, message = "bqk,bkd->bqd"}> : () -> ()
    %cst_66 = arith.constant dense<0.000000e+00> : vector<2x7x8xf32>
    %244 = tpu.matmul %243, %232, %cst_66 {dimension_numbers = #tpu.dot_dimension_numbers<[2], [1], [1], [2], [0, 0, 0, 1, 1, 2], [0], [0]>} : vector<2x7x7xf32>, vector<2x7x8xf32>, vector<2x7x8xf32> -> vector<2x7x8xf32>
    "tpu.trace_stop"() : () -> ()
    %245 = tpu.concatenate %139, %154, %169, %184, %199, %214, %229, %244 in 2 : vector<2x7x8xf32>, vector<2x7x8xf32>, vector<2x7x8xf32>, vector<2x7x8xf32>, vector<2x7x8xf32>, vector<2x7x8xf32>, vector<2x7x8xf32>, vector<2x7x8xf32> -> vector<2x7x64xf32>
    %246 = vector.shape_cast %245 : vector<2x7x64xf32> to vector<14x64xf32>
    %cst_67 = arith.constant dense<0.000000e+00> : vector<14xf32>
    %247 = vector.multi_reduction <add>, %246, %cst_67 [1] : vector<14x64xf32> to vector<14xf32>
    %248 = vector.shape_cast %247 : vector<14xf32> to vector<14x1xf32>
    %cst_68 = arith.constant 6.400000e+01 : f32
    %249 = vector.broadcast %cst_68 : f32 to vector<14x1xf32>
    %250 = arith.divf %248, %249 : vector<14x1xf32>
    %251 = vector.broadcast %250 : vector<14x1xf32> to vector<14x64xf32>
    %252 = arith.subf %246, %251 : vector<14x64xf32>
    %253 = arith.mulf %252, %252 : vector<14x64xf32>
    %cst_69 = arith.constant dense<0.000000e+00> : vector<14xf32>
    %254 = vector.multi_reduction <add>, %253, %cst_69 [1] : vector<14x64xf32> to vector<14xf32>
    %255 = vector.shape_cast %254 : vector<14xf32> to vector<14x1xf32>
    %cst_70 = arith.constant 6.400000e+01 : f32
    %256 = vector.broadcast %cst_70 : f32 to vector<14x1xf32>
    %257 = arith.divf %255, %256 : vector<14x1xf32>
    %cst_71 = arith.constant 9.99999974E-6 : f32
    %258 = vector.broadcast %cst_71 : f32 to vector<14x1xf32>
    %259 = arith.addf %257, %258 : vector<14x1xf32>
    %260 = math.rsqrt %259 : vector<14x1xf32>
    %261 = vector.broadcast %260 : vector<14x1xf32> to vector<14x64xf32>
    %262 = arith.mulf %252, %261 : vector<14x64xf32>
    %263 = vector.broadcast %9 : vector<1x64xf32> to vector<14x64xf32>
    %264 = arith.mulf %262, %263 : vector<14x64xf32>
    %265 = vector.broadcast %10 : vector<1x64xf32> to vector<14x64xf32>
    %266 = arith.addf %264, %265 : vector<14x64xf32>
    %267 = arith.truncf %266 : vector<14x64xf32> to vector<14x64xbf16>
    %c0_72 = arith.constant 0 : index
    %c0_73 = arith.constant 0 : index
    %c0_74 = arith.constant 0 : index
    %268 = vector.load %arg3[%c0_72, %c0_73, %c0_74] : memref<1x64x64xbf16, #tpu.memory_space<vmem>>, vector<1x64x64xbf16>
    %269 = vector.shape_cast %268 : vector<1x64x64xbf16> to vector<64x64xbf16>
    %cst_75 = arith.constant dense<0.000000e+00> : vector<14x64xf32>
    %270 = tpu.matmul %267, %269, %cst_75 {dimension_numbers = #tpu.dot_dimension_numbers<[1], [0], [0], [1], [0, 0, 1, 1], [], []>} : vector<14x64xbf16>, vector<64x64xbf16>, vector<14x64xf32> -> vector<14x64xf32>
    %271 = vector.broadcast %11 : vector<1x64xf32> to vector<14x64xf32>
    %272 = arith.addf %270, %271 : vector<14x64xf32>
    %cst_76 = arith.constant 0.000000e+00 : f32
    %273 = vector.broadcast %cst_76 : f32 to vector<14x64xf32>
    %274 = arith.maximumf %272, %273 : vector<14x64xf32>
    %275 = arith.truncf %274 : vector<14x64xf32> to vector<14x64xbf16>
    %c0_77 = arith.constant 0 : index
    %c0_78 = arith.constant 0 : index
    %c0_79 = arith.constant 0 : index
    %276 = vector.load %arg4[%c0_77, %c0_78, %c0_79] : memref<1x64x32xbf16, #tpu.memory_space<vmem>>, vector<1x64x32xbf16>
    %277 = vector.shape_cast %276 : vector<1x64x32xbf16> to vector<64x32xbf16>
    %cst_80 = arith.constant dense<0.000000e+00> : vector<14x32xf32>
    %278 = tpu.matmul %275, %277, %cst_80 {dimension_numbers = #tpu.dot_dimension_numbers<[1], [0], [0], [1], [0, 0, 1, 1], [], []>} : vector<14x64xbf16>, vector<64x32xbf16>, vector<14x32xf32> -> vector<14x32xf32>
    %279 = vector.broadcast %12 : vector<1x32xf32> to vector<14x32xf32>
    %280 = arith.addf %278, %279 : vector<14x32xf32>
    %c0_81 = arith.constant 0 : index
    %c0_82 = arith.constant 0 : index
    %281 = vector.load %arg7[%c0_81, %c0_82] : memref<14x32xf32, #tpu.memory_space<vmem>>, vector<14x32xf32>
    tpu.vector_store %arg7[%c0_81, %c0_82], %280 {strides = array<i32>} : memref<14x32xf32, #tpu.memory_space<vmem>>, vector<14x32xf32>,
    %c1_i32 = arith.constant 1 : i32
    %282 = arith.cmpi eq, %arg0, %c1_i32 : i32
    %283 = arith.extui %282 : i1 to i32
    %c0_i32_83 = arith.constant 0 : i32
    %284 = arith.cmpi ne, %283, %c0_i32_83 : i32
    scf.if %284 {
      %c0_84 = arith.constant 0 : index
      %c0_85 = arith.constant 0 : index
      %285 = vector.load %arg6[%c0_84, %c0_85] : memref<14x32xf32, #tpu.memory_space<vmem>>, vector<14x32xf32>
      tpu.vector_store %arg6[%c0_84, %c0_85], %280 {strides = array<i32>} : memref<14x32xf32, #tpu.memory_space<vmem>>, vector<14x32xf32>,
    } else {
    }
    return
  }
  func.func @transform_0(%arg0: i32) -> (i32, i32) {
    %c0_i32 = arith.constant 0 : i32
    %c0_i32_0 = arith.constant 0 : i32
    %c0_i32_1 = arith.constant 0 : i32
    return %c0_i32, %c0_i32_0 : i32, i32
  }
  func.func @transform_1(%arg0: i32) -> (i32, i32, i32) {
    %c0_i32 = arith.constant 0 : i32
    %c0_i32_0 = arith.constant 0 : i32
    %c0_i32_1 = arith.constant 0 : i32
    return %arg0, %c0_i32, %c0_i32_0 : i32, i32, i32
  }
  func.func @transform_2(%arg0: i32) -> (i32, i32, i32) {
    %c0_i32 = arith.constant 0 : i32
    %c0_i32_0 = arith.constant 0 : i32
    %c0_i32_1 = arith.constant 0 : i32
    return %arg0, %c0_i32, %c0_i32_0 : i32, i32, i32
  }
  func.func @transform_3(%arg0: i32) -> (i32, i32, i32) {
    %c0_i32 = arith.constant 0 : i32
    %c0_i32_0 = arith.constant 0 : i32
    %c0_i32_1 = arith.constant 0 : i32
    return %arg0, %c0_i32, %c0_i32_0 : i32, i32, i32
  }
  func.func @transform_4(%arg0: i32) -> (i32, i32, i32) {
    %c0_i32 = arith.constant 0 : i32
    %c0_i32_0 = arith.constant 0 : i32
    %c0_i32_1 = arith.constant 0 : i32
    return %arg0, %c0_i32, %c0_i32_0 : i32, i32, i32
  }
  func.func @transform_5(%arg0: i32) -> (i32, i32) {
    %c0_i32 = arith.constant 0 : i32
    %c0_i32_0 = arith.constant 0 : i32
    %c0_i32_1 = arith.constant 0 : i32
    return %c0_i32, %c0_i32_0 : i32, i32
  }
}

</mosaic_0001>

<bundles_post_ra>
// kernel: tpu_custom_call.1
= control target key start
LH: loop header
LB: loop body
LE: loop exit
PB: predicated region body
PF: predicated region fallthrough
CT: control target
= control target key end

     0   :  { %10 = vsyncpa [#allocation4], 0  ;;  %s6757_s18 = smov 0   ;;  %s8215_s0 = inlined_call_operand.vmem [shape: f32[14,32], index: 0, kind: input, shape index: {}]   ;;  %s8216_s1 = inlined_call_operand.vmem [shape: bf16[2,32,192], index: 1, kind: input, shape index: {}]   ;;  %s8217_s2 = inlined_call_operand.vmem [shape: bf16[2,64,64], index: 2, kind: input, shape index: {}]   ;;  %s8218_s3 = inlined_call_operand.vmem [shape: bf16[2,64,32], index: 3, kind: input, shape index: {}]   ;;  %s8219_s4 = inlined_call_operand.vmem [shape: f32[2,49,64], index: 4, kind: input, shape index: {}]   ;;  %s8220_s5 = inlined_call_operand.hbm [shape: f32[14,32], index: 5, kind: output, shape index: {}]  }
   0x1 LB: > { %s6763_s19 = sadd.s32 4294967295, %s6704_s18   ;;  %p6171_p0 = scmp.ge.s32.totalorder %s6704_s18, 1  ;;  %s6704_s18 = sphi %s6757_s18, %s16_s18  }
   0x2   : > { %p213_p1 = scmp.lt.s32.totalorder %s6704_s18, 3 }
   0x4   : > { %p214_p2 = pnand %p6171_p0, %p213_p1 }
   0x6   : > { %217 = sbr.rel (%p214_p2) target bundleno = 6376 (0x18e8), region = 40 }
   0xd   : > { %p251_p3 = scmp.lt.s32.totalorder %s6763_s19, 1  ;;  %p6179_p4 = scmp.ne.s32.totalorder %s6763_s19, 0 }
   0xe   : > { %v276_v0 = vld [vmem:[%s8215_s0] sm:$0xff] (!%p6179_p4)  ;;  %vm278_vm0 = vcmask (!%p6179_p4), 261120   ;;  %v277_v1 = vld [vmem:[%s8215_s0 + $0x8] sm:$0x3f] (!%p6179_p4)  ;;  %vm280_vm1 = vcmask (!%p6179_p4), 259072  }
   0xf   : > { %s252_s20 = scalar_select %p251_p3, %s6763_s19, 1 }
  0x10   : > { %275 = sbr.rel (%p6179_p4) target bundleno = 23 (0x17), region = 44  ;;  %279 = vst.msk [vmem:[#allocation2] sm:$0xff] (!%p6179_p4), %vm278_vm0, %v276_v0 }
  0x11   : > { %s6269_s21 = sshll.u32 %s252_s20, 5  ;;  %s6530_s22 = smul.u32 56, %s252_s20  ;;  %281 = vst.msk [vmem:[#allocation2 + $0x8] sm:$0x3f] (!%p6179_p4), %vm280_vm1, %v277_v1 }
  0x12   : > { %s255_s25 = scalar_lea.vmem %s8216_s1, %s6269_s21  ;;  %s6775_s28 = scalar_lea.vmem %s8217_s2, %s6269_s21 }
  0x13   : > { %s6780_s6 = scalar_lea.vmem %s8218_s3, %s6269_s21  ;;  %s6785_s9 = scalar_lea.vmem %s8219_s4, %s6530_s22 }
  0x17 PF: > { %v6566_v2 = vld [vmem:[%s255_s25 + $0x4] ss:$8 sps:$4 sm:$0xff]   ;;  %v363_v3 = vlaneseq  ;;  %v6568_v4 = vld [vmem:[%s255_s25] ss:$8 sps:$4 sm:$0xff]   ;;  %v6706_v5 = vmov 0   ;;  %vm316_vm2 = vcmask 261120  }
  0x18   : > { %352 = vmatprep.mubr.bf16.mxu0 %v6706_v5  ;;  %320 = vmatprep.subr.bf16.mxu0 %v6566_v2  ;;  %v6569_v6 = vld [vmem:[%s255_s25 + $0x14] ss:$8 sps:$4 sm:$0xff]   ;;  %v6571_v7 = vld [vmem:[%s255_s25 + $0x10] ss:$8 sps:$4 sm:$0xff]   ;;  %v282_v8 = vld [vmem:[#allocation2] sm:$0xff]  ;;  %s6707_s14 = smov 64  }
  0x19   : > { %v6794_v9 = vshrl.u32 %v363_v3, 7  ;;  %321 = vmatpush1.bf16.msra.mxu0 %v6568_v4  ;;  %v283_v10 = vld [vmem:[#allocation2 + $0x8] sm:$0x3f]  ;;  %v6797_v11 = vld [vmem:[%s6785_s9] sm:$0xff]  ;;  %v6708_v15 = vmov 1966171168  }
  0x1a   : > { %322 = vmatprep.subr.bf16.mxu0 %v6569_v6  ;;  %v291_v13 = vpack.c.bf16 %v283_v10, %v282_v8  ;;  %v373_v16 = vunpack.c.l.s4 %v6708_v15  ;;  %vm579_vm3 = vcmask 522240   ;;  %vm589_vm4 = vcmask 1046528   ;;  %s6711_s15 = smov 56   ;;  %s6712_s16 = smov 120  }
  0x1b   : > { %8233 = vst [vmem:[#allocation6_spill] sm:$0xff] %v6794_v9  ;;  %v6800_v12 = vsub.s32 1, %v6794_v9  ;;  %vm6710_vm5 = vmmov 0   ;;  %vm2194_vm6 = vcmask 64512   ;;  %vm2455_vm7 = vcmask 55296   ;;  %s6713_s17 = smov 48  }
  0x1c   : > { %v374_v17 = vunpack.c.0.s8 %v373_v16  ;;  %vm2533_vm8 = vcmask 56320   ;;  %s6714_s20 = smov 112   ;;  %s6715_s21 = smov 40   ;;  %vm5121_vm9 = vcmask 130048   ;;  %vm5124_vm10 = vcmask 195584  }
  0x1d   : > { %8234 = vst [vmem:[#allocation7_spill] sm:$0xff] %v6800_v12  ;;  %v942_v14 = vrot.slane %v6797_v11, %v6800_v12  ;;  %323 = vmatpush1.bf16.msra.mxu0 %v6571_v7  ;;  %s6716_s22 = smov 104   ;;  %s6717_s23 = smov 32   ;;  %vm5129_vm11 = vcmask 326656   ;;  %vm5135_vm12 = vcmask 457728   ;;  %vm5132_vm13 = vcmask 392192  }
  0x1e   : > { %v6812_v22 = vsub.s32 %v374_v17, %v6794_v9  ;;  %s6718_s24 = smov 96   ;;  %s6719_s25 = smov 24   ;;  %vm5341_vm14 = vcmask 523264   ;;  %vm5345_vm15 = vcmask 521216   ;;  %vm6076_vm0 = vcmask 259072  }
  0x1f   : > { %944 = vrot.lane.b32.xlu0 %v942_v14, %s6707_s14  ;;  %s6720_s26 = smov 88   ;;  %s6721_s27 = smov 16  }
  0x20   : > { %6184 = vmatmul.mubr.msk.bf16.vlgmr.msra.gmra.mrb[0].mxu0 %vm316_vm2, %v291_v13  ;;  %s6722_s29 = smov 80   ;;  %s6723_s30 = smov 8  }
  0x21   : > { %s6724_s7 = smov 72   ;;  %p6264_p5 = scmp.ne.s32.totalorder %s6763_s19, 1 }
  0x91   : > { %v945_v18 = vpop.permute.xlu0 %944 }
  0xf3   : > { %v6806_v19 = vpop.f32.mrb[0].mxu0 }
  0xf4   : > { %v947_v20 = vadd.f32 %v945_v18, %v6806_v19  ;;  %v6809_v21 = vpop.f32.mrb[1].mxu0 }
  0xf5   : > { %v6814_v23 = vpop.f32.mrb[2].mxu0 }
  0xf6   : > { %v951_v24 = vcombine.high %v947_v20, %v947_v20  ;;  %v6816_v25 = vpop.f32.mrb[3].mxu0  ;;  %v958_v26 = vrot.slane %v947_v20, %v6812_v22  ;;  %v948_v28 = vadd.f32 %v945_v18, %v6814_v23  ;;  %v6895_v20 = vsub.s32 0, %v6794_v9 }
  0xf8   : > { %v965_v27 = vrot.slane %v951_v24, %v6812_v22  ;;  %v966_v29 = vcombine.high %v958_v26, %v958_v26  ;;  %v1000_v31 = vcombine.high %v948_v28, %v948_v28  ;;  %v1007_v32 = vrot.slane %v948_v28, %v6812_v22  ;;  %8235 = vst [vmem:[#allocation8_spill] sm:$0xff] %v6895_v20 }
  0xf9   : > { %v6833_v38 = vrot.slane %v958_v26, %v6812_v22 }
  0xfa   : > { %v967_v30 = vcombine.high %v965_v27, %v965_v27  ;;  %v6823_v33 = vrot.slane %v965_v27, %v6812_v22  ;;  %v6826_v34 = vrot.slane %v966_v29, %v6812_v22  ;;  %v1014_v36 = vrot.slane %v1000_v31, %v6812_v22 }
  0xfb   : > { %v1015_v37 = vcombine.high %v1007_v32, %v1007_v32  ;;  %v6836_v39 = vrot.slane %v1007_v32, %v6812_v22  ;;  %v366_v29 = vrot.slane %v6797_v11, %v6895_v20 }
  0xfc   : > { %v6829_v35 = vrot.slane %v967_v30, %v6812_v22  ;;  %v6840_v40 = vcombine.high %v6823_v33, %v6823_v33  ;;  %v1061_v41 = vcombine.low %v6833_v38, %v6826_v34  ;;  %v1016_v42 = vcombine.high %v1014_v36, %v1014_v36 }
  0xfd   : > { %v6845_v43 = vrot.slane %v1015_v37, %v6812_v22  ;;  %v6186_v44 = vcombine.high %v6833_v38, %v6826_v34  ;;  %v6853_v46 = vcombine.high %v6836_v39, %v6836_v39  ;;  %v6865_v52 = vrot.slane %v1014_v36, %v6812_v22 }
  0xfe   : > { %v1063_v45 = vcombine.low %v6823_v33, %v6829_v35  ;;  %v6857_v47 = vcombine.high %v6829_v35, %v6829_v35  ;;  %v1070_v48 = vrot.slane %v1061_v41, %v6812_v22  ;;  %v1091_v51 = vrot.slane %v6840_v40, %v6812_v22 }
  0xff   : > { %v1077_v49 = vrot.slane %v6186_v44, %v6812_v22  ;;  %v6868_v55 = vrot.slane %v1016_v42, %v6812_v22  ;;  %v6872_v56 = vcombine.high %v6845_v43, %v6845_v43  ;;  %v1110_v58 = vcombine.low %v6845_v43, %v6853_v46 }
 0x100   : > { %v1084_v50 = vrot.slane %v1063_v45, %v6812_v22  ;;  %v1109_v57 = vcombine.low %v6857_v47, %v6836_v39  ;;  %v6901_v41 = vadd.f32 %v366_v29, %v6806_v19  ;;  %v996_v45 = vcombine.high %v6833_v38, %v6833_v38 }
 0x101   : > { %v1092_v53 = vcombine.low %v1070_v48, %v1077_v49  ;;  %v1111_v61 = vcombine.low %v6872_v56, %v6865_v52  ;;  %v1125_v63 = vrot.slane %v1110_v58, %v6812_v22  ;;  %v1139_v2 = vrot.slane %v6868_v55, %v6812_v22 }
 0x102   : > { %v1093_v54 = vcombine.low %v1084_v50, %v1091_v51  ;;  %v1118_v62 = vrot.slane %v1109_v57, %v6812_v22  ;;  %v371_v50 = vcombine.high %v6901_v41, %v6901_v41  ;;  %v998_v51 = vcombine.high %v6826_v34, %v6826_v34 }
 0x103   : > { %v1100_v59 = vrot.slane %v1092_v53, %v6812_v22  ;;  %v1132_v1 = vrot.slane %v1111_v61, %v6812_v22  ;;  %v6910_v53 = vadd.f32 %v366_v29, %v6814_v23 }
 0x104   : > { %v1107_v60 = vrot.slane %v1093_v54, %v6812_v22  ;;  %v1140_v3 = vcombine.low %v1118_v62, %v1125_v63 }
 0x105   : > { %v1141_v4 = vcombine.low %v1132_v1, %v1139_v2  ;;  %v6946_v1 = vrot.slane %v371_v50, %v6812_v22 }
 0x106   : > { %v1108_v0 = vcombine.low %v1100_v59, %v1107_v60  ;;  %v1148_v5 = vrot.slane %v1140_v3, %v6812_v22 }
 0x107   : > { %v1155_v6 = vrot.slane %v1141_v4, %v6812_v22  ;;  %v427_v4 = vrot.slane %v6910_v53, %v6812_v22 }
 0x108   : > { %1157 = vrot.lane.b32.xlu0 %v1108_v0, %s6707_s14 }
 0x109   : > { %v1156_v7 = vcombine.low %v1148_v5, %v1155_v6 }
 0x10b   : > { %1159 = vrot.lane.b32.xlu1 %v1156_v7, %s6707_s14 }
 0x17a   : > { %v1158_v8 = vpop.permute.xlu0 %1157 }
 0x17b   : > { %v1163_v10 = vsel %vm579_vm3, %v1158_v8, 0.0 }
 0x17c   : > { %1164 = vadd.xlane.f32.xlu1 %v1163_v10 }
 0x17d   : > { %v1160_v13 = vpop.permute.xlu1 %1159 }
 0x17e   : > { %v1166_v14 = vsel %vm579_vm3, %v1160_v13, 0.0 }
 0x17f   : > { %1167 = vadd.xlane.f32.xlu0 %v1166_v14 }
 0x209   : > { %v1165_v15 = vpop.xlane.xlu1 %1164 }
 0x20a   : > { %v1169_v16 = vmul.f32 0.015625, %v1165_v15 }
 0x20c   : > { %v1171_v17 = vsel %vm589_vm4, %v1169_v16, 0.0  ;;  %v1168_v26 = vpop.xlane.xlu0 %1167 }
 0x20d   : > { %v1172_v18 = vrot.slane %v1171_v17, 4  ;;  %v1170_v27 = vmul.f32 0.015625, %v1168_v26 }
 0x20f   : > { %v1173_v24 = vadd.f32 %v1172_v18, %v1171_v17  ;;  %v1178_v30 = vsel %vm589_vm4, %v1170_v27, 0.0 }
 0x210   : > { %v1179_v32 = vrot.slane %v1178_v30, 4 }
 0x211   : > { %v1174_v28 = vrot.slane %v1173_v24, 2 }
 0x212   : > { %v1180_v37 = vadd.f32 %v1179_v32, %v1178_v30 }
 0x213   : > { %v1175_v31 = vadd.f32 %v1174_v28, %v1173_v24 }
 0x214   : > { %v1181_v44 = vrot.slane %v1180_v37, 2 }
 0x215   : > { %v1176_v36 = vrot.slane %v1175_v31, 1 }
 0x216   : > { %v1182_v49 = vadd.f32 %v1181_v44, %v1180_v37  ;;  %v435_v44 = vcombine.high %v427_v4, %v427_v4 }
 0x217   : > { %v1177_v42 = vadd.f32 %v1176_v36, %v1175_v31 }
 0x218   : > { %v1183_v54 = vrot.slane %v1182_v49, 1 }
 0x219   : > { %v1185_v48 = vmul.f32 0.14285715, %v1177_v42  ;;  %v387_v42 = vcombine.high %v6946_v1, %v6946_v1 }
 0x21a   : > { %v1184_v62 = vadd.f32 %v1183_v54, %v1182_v49 }
 0x21b   : > { %v6913_v19 = vsub.f32 %v6833_v38, %v1185_v48  ;;  %v6916_v57 = vsub.f32 %v6826_v34, %v1185_v48  ;;  %v6918_v58 = vsub.f32 %v996_v45, %v1185_v48  ;;  %v6920_v59 = vsub.f32 %v998_v51, %v1185_v48 }
 0x21c   : > { %v6923_v60 = vsub.f32 %v6823_v33, %v1185_v48  ;;  %v6926_v61 = vsub.f32 %v6829_v35, %v1185_v48  ;;  %v6929_v23 = vsub.f32 %v6840_v40, %v1185_v48  ;;  %v1186_v2 = vmul.f32 0.14285715, %v1184_v62 }
 0x21d   : > { %v1201_v38 = vmul.f32 %v6913_v19, %v6913_v19  ;;  %v1202_v34 = vmul.f32 %v6916_v57, %v6916_v57  ;;  %v1203_v63 = vmul.f32 %v6918_v58, %v6918_v58  ;;  %v1204_v33 = vmul.f32 %v6920_v59, %v6920_v59 }
 0x21e   : > { %v1205_v35 = vmul.f32 %v6923_v60, %v6923_v60  ;;  %v1206_v40 = vmul.f32 %v6926_v61, %v6926_v61  ;;  %v1207_v0 = vmul.f32 %v6929_v23, %v6929_v23  ;;  %v6953_v10 = vsub.f32 %v6857_v47, %v1186_v2 }
 0x21f   : > { %v1229_v3 = vcombine.low %v1201_v38, %v1202_v34  ;;  %v1230_v5 = vcombine.low %v1203_v63, %v1204_v33  ;;  %v6956_v13 = vsub.f32 %v6836_v39, %v1186_v2  ;;  %v6959_v14 = vsub.f32 %v6845_v43, %v1186_v2 }
 0x220   : > { %v1231_v6 = vcombine.low %v1205_v35, %v1206_v40  ;;  %v1259_v7 = vrot.slane %v1207_v0, %v6812_v22  ;;  %v6964_v17 = vsub.f32 %v6853_v46, %v1186_v2  ;;  %v6967_v18 = vsub.f32 %v6872_v56, %v1186_v2 }
 0x221   : > { %v1238_v8 = vrot.slane %v1229_v3, %v6812_v22  ;;  %v1245_v15 = vrot.slane %v1230_v5, %v6812_v22  ;;  %v6970_v24 = vsub.f32 %v6865_v52, %v1186_v2  ;;  %v6973_v47 = vsub.f32 %v6868_v55, %v1186_v2 }
 0x222   : > { %v1252_v16 = vrot.slane %v1231_v6, %v6812_v22  ;;  %v1208_v39 = vmul.f32 %v6953_v10, %v6953_v10  ;;  %v1209_v43 = vmul.f32 %v6956_v13, %v6956_v13  ;;  %v1210_v46 = vmul.f32 %v6959_v14, %v6959_v14 }
 0x223   : > { %v1260_v26 = vcombine.low %v1238_v8, %v1245_v15  ;;  %v1211_v56 = vmul.f32 %v6964_v17, %v6964_v17  ;;  %v1212_v52 = vmul.f32 %v6967_v18, %v6967_v18  ;;  %v1213_v55 = vmul.f32 %v6970_v24, %v6970_v24 }
 0x224   : > { %v1261_v27 = vcombine.low %v1252_v16, %v1259_v7  ;;  %v1214_v28 = vmul.f32 %v6973_v47, %v6973_v47  ;;  %v1277_v29 = vcombine.low %v1208_v39, %v1209_v43  ;;  %v420_v51 = vcombine.high %v6910_v53, %v6910_v53 }
 0x225   : > { %v1268_v30 = vrot.slane %v1260_v26, %v6812_v22  ;;  %v1278_v32 = vcombine.low %v1210_v46, %v1211_v56  ;;  %v1279_v36 = vcombine.low %v1212_v52, %v1213_v55  ;;  %v7001_v38 = vrot.slane %v387_v42, %v6812_v22 }
 0x226   : > { %v1275_v31 = vrot.slane %v1261_v27, %v6812_v22  ;;  %v1286_v37 = vrot.slane %v1277_v29, %v6812_v22  ;;  %v1307_v50 = vrot.slane %v1214_v28, %v6812_v22  ;;  %v7004_v34 = vrot.slane %v435_v44, %v6812_v22 }
 0x227   : > { %v1293_v48 = vrot.slane %v1278_v32, %v6812_v22  ;;  %v1300_v49 = vrot.slane %v1279_v36, %v6812_v22  ;;  %v434_v35 = vrot.slane %v420_v51, %v6812_v22  ;;  %v7010_v40 = vrot.slane %v427_v4, %v6812_v22 }
 0x228   : > { %v1276_v45 = vcombine.low %v1268_v30, %v1275_v31  ;;  %v7014_v0 = vcombine.high %v7001_v38, %v7001_v38  ;;  %v7018_v2 = vcombine.high %v7004_v34, %v7004_v34  ;;  %v378_v8 = vrot.slane %v6901_v41, %v6812_v22 }
 0x229   : > { %v1308_v54 = vcombine.low %v1286_v37, %v1293_v48  ;;  %v1309_v62 = vcombine.low %v1300_v49, %v1307_v50  ;;  %v436_v3 = vcombine.high %v434_v35, %v434_v35  ;;  %v7022_v5 = vrot.slane %v434_v35, %v6812_v22 }
 0x22a   : > { %1325 = vrot.lane.b32.xlu0 %v1276_v45, %s6707_s14  ;;  %v7026_v6 = vcombine.high %v7010_v40, %v7010_v40  ;;  %v529_v4 = vcombine.low %v7014_v0, %v7010_v40  ;;  %v386_v26 = vcombine.high %v378_v8, %v378_v8  ;;  %v7046_v41 = vrot.slane %v6946_v1, %v6812_v22 }
 0x22b   : > { %v1316_v63 = vrot.slane %v1308_v54, %v6812_v22  ;;  %v1323_v33 = vrot.slane %v1309_v62, %v6812_v22  ;;  %v531_v7 = vcombine.low %v7018_v2, %v7022_v5  ;;  %v7035_v15 = vrot.slane %v436_v3, %v6812_v22 }
 0x22c   : > { %v530_v16 = vcombine.low %v7004_v34, %v7026_v6  ;;  %v538_v39 = vrot.slane %v529_v4, %v6812_v22  ;;  %v7049_v55 = vrot.slane %v386_v26, %v6812_v22  ;;  %v7052_v28 = vrot.slane %v378_v8, %v6812_v22 }
 0x22d   : > { %v1324_v53 = vcombine.low %v1316_v63, %v1323_v33  ;;  %v552_v43 = vrot.slane %v531_v7, %v6812_v22  ;;  %v559_v46 = vrot.slane %v7035_v15, %v6812_v22  ;;  %v483_v31 = vcombine.low %v7046_v41, %v7001_v38  ;;  %v7075_v33 = vld [vmem:[%s6785_s9 + $0x10] sm:$0xff]  ;;  %v287_v7 = vld [vmem:[%s6785_s9 + $0x18] sm:$0xff] }
 0x22e   : > { %v545_v27 = vrot.slane %v530_v16, %v6812_v22  ;;  %v7060_v32 = vcombine.high %v7046_v41, %v7046_v41  ;;  %v481_v1 = vcombine.low %v7052_v28, %v7049_v55  ;;  %v6185_v36 = vcombine.high %v7052_v28, %v7049_v55 }
 0x22f   : > { %1327 = vrot.lane.b32.xlu1 %v1324_v53, %s6707_s14  ;;  %v561_v52 = vcombine.low %v552_v43, %v559_v46  ;;  %v504_v42 = vrot.slane %v483_v31, %v6812_v22  ;;  %v879_v35 = vcombine.high %v7075_v33, %v7075_v33  ;;  %v1390_v16 = vrot.slane %v287_v7, %v6812_v22 }
 0x230   : > { %v560_v56 = vcombine.low %v538_v39, %v545_v27  ;;  %v490_v44 = vrot.slane %v481_v1, %v6812_v22  ;;  %v497_v45 = vrot.slane %v6185_v36, %v6812_v22  ;;  %v511_v48 = vrot.slane %v7060_v32, %v6812_v22 }
 0x231   : > { %v575_v30 = vrot.slane %v561_v52, %v6812_v22  ;;  %v893_v3 = vrot.slane %v879_v35, %v6812_v22  ;;  %v1398_v43 = vrot.slane %v1390_v16, %v6812_v22  ;;  %v1444_v52 = vcombine.high %v287_v7, %v287_v7 }
 0x232   : > { %v568_v29 = vrot.slane %v560_v56, %v6812_v22  ;;  %v513_v50 = vcombine.low %v504_v42, %v511_v48  ;;  %v512_v51 = vcombine.low %v490_v44, %v497_v45  ;;  %v1391_v56 = vcombine.high %v1390_v16, %v1390_v16  ;;  %v7104_v48 = vld [vmem:[%s6785_s9 + $0x20] sm:$0xff] }
 0x233   : > { %v1374_v4 = vcombine.high %v893_v3, %v893_v3  ;;  %v7085_v39 = vrot.slane %v893_v3, %v6812_v22  ;;  %v1406_v27 = vcombine.high %v1398_v43, %v1398_v43  ;;  %8236 = vst [vmem:[#allocation9_spill] sm:$0xff] %v7104_v48 }
 0x234   : > { %v576_v37 = vcombine.low %v568_v29, %v575_v30  ;;  %v527_v54 = vrot.slane %v513_v50, %v6812_v22  ;;  %v520_v62 = vrot.slane %v512_v51, %v6812_v22  ;;  %v1405_v29 = vrot.slane %v1391_v56, %v6812_v22 }
 0x235   : > { %v1381_v8 = vrot.slane %v1374_v4, %v6812_v22  ;;  %v1382_v26 = vcombine.high %v7085_v39, %v7085_v39  ;;  %v1451_v30 = vrot.slane %v1444_v52, %v6812_v22  ;;  %v1475_v50 = vrot.slane %v7104_v48, %v6812_v22 }
 0x236   : > { %v583_v49 = vsel %vm579_vm3, %v576_v37, 0.0  ;;  %v528_v63 = vcombine.low %v520_v62, %v527_v54  ;;  %v1407_v31 = vcombine.high %v1405_v29, %v1405_v29 }
 0x237   : > { %v1383_v46 = vcombine.high %v1381_v8, %v1381_v8  ;;  %v1452_v1 = vcombine.high %v1451_v30, %v1451_v30  ;;  %v1476_v54 = vcombine.high %v1475_v50, %v1475_v50  ;;  %v1483_v35 = vrot.slane %v1475_v50, %v6812_v22 }
 0x238   : > { %v580_v53 = vsel %vm579_vm3, %v528_v63, 0.0 }
 0x239   : > { %v1466_v36 = vrot.slane %v1452_v1, %v6812_v22  ;;  %v7112_v63 = vrot.slane %v1476_v54, %v6812_v22 }
 0x23b   : > { %v1468_v51 = vcombine.high %v1466_v36, %v1466_v36  ;;  %8237 = vst [vmem:[#allocation10_spill] sm:$0xff] %v7112_v63 }
 0x249   : > { %584 = vadd.xlane.f32.xlu0 %v583_v49  ;;  %v1459_v49 = vrot.slane %v1451_v30, %v6812_v22 }
 0x24b   : > { %v1467_v62 = vcombine.high %v1459_v49, %v1459_v49 }
 0x253   : > { %581 = vadd.xlane.f32.xlu1 %v580_v53  ;;  %v1491_v53 = vcombine.high %v1483_v35, %v1483_v35 }
 0x25f   : > { %1408 = vrot.lane.b32.xlu0 %v1381_v8, %s6707_s14 }
 0x263   : > { %1414 = vrot.lane.b32.xlu0 %v1398_v43, %s6707_s14 }
 0x264   : > { %1410 = vrot.lane.b32.xlu1 %v1382_v26, %s6707_s14 }
 0x267   : > { %1418 = vrot.lane.b32.xlu0 %v1406_v27, %s6707_s14 }
 0x268   : > { %1412 = vrot.lane.b32.xlu1 %v1383_v46, %s6707_s14 }
 0x26c   : > { %1416 = vrot.lane.b32.xlu1 %v1405_v29, %s6707_s14 }
 0x270   : > { %1420 = vrot.lane.b32.xlu1 %v1407_v31, %s6707_s14 }
 0x274   : > { %1494 = vrot.lane.b32.xlu1 %v1466_v36, %s6707_s14 }
 0x29c   : > { %v1326_v37 = vpop.permute.xlu0 %1325 }
 0x29d   : > { %v1331_v42 = vsel %vm579_vm3, %v1326_v37, 0.0 }
 0x29e   : > { %1332 = vadd.xlane.f32.xlu0 %v1331_v42 }
 0x2a1   : > { %v1328_v44 = vpop.permute.xlu1 %1327 }
 0x2a2   : > { %v1334_v45 = vsel %vm579_vm3, %v1328_v44, 0.0 }
 0x2a3   : > { %1335 = vadd.xlane.f32.xlu1 %v1334_v45 }
 0x2b4   : > { %1492 = vrot.lane.b32.xlu0 %v1459_v49, %s6707_s14  ;;  %1498 = vrot.lane.b32.xlu1 %v1468_v51, %s6707_s14 }
 0x2b8   : > { %1496 = vrot.lane.b32.xlu0 %v1467_v62, %s6707_s14  ;;  %1502 = vrot.lane.b32.xlu1 %v7112_v63, %s6707_s14 }
 0x2bc   : > { %1500 = vrot.lane.b32.xlu0 %v1483_v35, %s6707_s14 }
 0x2c0   : > { %1504 = vrot.lane.b32.xlu0 %v1491_v53, %s6707_s14 }
 0x2d6   : > { %v585_v3 = vpop.xlane.xlu0 %584 }
 0x2d7   : > { %v588_v4 = vmul.f32 0.015625, %v585_v3 }
 0x2d9   : > { %v597_v7 = vsel %vm589_vm4, %v588_v4, 0.0 }
 0x2da   : > { %v598_v8 = vrot.slane %v597_v7, 4 }
 0x2dc   : > { %v599_v16 = vadd.f32 %v598_v8, %v597_v7 }
 0x2de   : > { %v600_v43 = vrot.slane %v599_v16, 2 }
 0x2e0   : > { %v601_v26 = vadd.f32 %v600_v43, %v599_v16  ;;  %v582_v46 = vpop.xlane.xlu1 %581 }
 0x2e1   : > { %v587_v56 = vmul.f32 0.015625, %v582_v46  ;;  %v416_v46 = vcombine.high %v7052_v28, %v7052_v28 }
 0x2e2   : > { %v602_v27 = vrot.slane %v601_v26, 1 }
 0x2e3   : > { %v590_v29 = vsel %vm589_vm4, %v587_v56, 0.0  ;;  %v418_v56 = vcombine.high %v7049_v55, %v7049_v55 }
 0x2e4   : > { %v603_v52 = vadd.f32 %v602_v27, %v601_v26  ;;  %v591_v31 = vrot.slane %v590_v29, 4 }
 0x2e6   : > { %v606_v30 = vmul.f32 0.14285715, %v603_v52  ;;  %v592_v1 = vadd.f32 %v591_v31, %v590_v29 }
 0x2e8   : > { %v7123_v36 = vsub.f32 %v7014_v0, %v606_v30  ;;  %v7126_v37 = vsub.f32 %v7010_v40, %v606_v30  ;;  %v7129_v42 = vsub.f32 %v7004_v34, %v606_v30  ;;  %v7132_v44 = vsub.f32 %v7026_v6, %v606_v30 }
 0x2e9   : > { %v7135_v45 = vsub.f32 %v7018_v2, %v606_v30  ;;  %v7138_v49 = vsub.f32 %v7022_v5, %v606_v30  ;;  %v7141_v50 = vsub.f32 %v7035_v15, %v606_v30  ;;  %v593_v0 = vrot.slane %v592_v1, 2 }
 0x2ea   : > { %v628_v40 = vmul.f32 %v7123_v36, %v7123_v36  ;;  %v629_v34 = vmul.f32 %v7126_v37, %v7126_v37  ;;  %v630_v6 = vmul.f32 %v7129_v42, %v7129_v42  ;;  %v631_v2 = vmul.f32 %v7132_v44, %v7132_v44 }
 0x2eb   : > { %v632_v5 = vmul.f32 %v7135_v45, %v7135_v45  ;;  %v633_v15 = vmul.f32 %v7138_v49, %v7138_v49  ;;  %v634_v51 = vmul.f32 %v7141_v50, %v7141_v50  ;;  %v594_v54 = vadd.f32 %v593_v0, %v592_v1 }
 0x2ec   : > { %v697_v62 = vcombine.low %v628_v40, %v629_v34  ;;  %v698_v35 = vcombine.low %v630_v6, %v631_v2 }
 0x2ed   : > { %v699_v53 = vcombine.low %v632_v5, %v633_v15  ;;  %v595_v3 = vrot.slane %v594_v54, 1  ;;  %v727_v16 = vrot.slane %v634_v51, %v6812_v22 }
 0x2ee   : > { %v706_v4 = vrot.slane %v697_v62, %v6812_v22  ;;  %v713_v7 = vrot.slane %v698_v35, %v6812_v22 }
 0x2ef   : > { %v720_v8 = vrot.slane %v699_v53, %v6812_v22  ;;  %v596_v43 = vadd.f32 %v595_v3, %v594_v54 }
 0x2f0   : > { %v728_v26 = vcombine.low %v706_v4, %v713_v7 }
 0x2f1   : > { %v729_v27 = vcombine.low %v720_v8, %v727_v16  ;;  %v605_v52 = vmul.f32 0.14285715, %v596_v43 }
 0x2f2   : > { %v736_v29 = vrot.slane %v728_v26, %v6812_v22 }
 0x2f3   : > { %v743_v30 = vrot.slane %v729_v27, %v6812_v22  ;;  %v7168_v31 = vsub.f32 %v7052_v28, %v605_v52  ;;  %v7171_v1 = vsub.f32 %v7049_v55, %v605_v52  ;;  %v7173_v0 = vsub.f32 %v416_v46, %v605_v52 }
 0x2f4   : > { %v7175_v40 = vsub.f32 %v418_v56, %v605_v52  ;;  %v7178_v6 = vsub.f32 %v7046_v41, %v605_v52  ;;  %v7181_v2 = vsub.f32 %v7001_v38, %v605_v52  ;;  %v7184_v5 = vsub.f32 %v7060_v32, %v605_v52  ;;  %v7208_v52 = vpop.permute.xlu1 %1410 }
 0x2f5   : > { %v744_v34 = vcombine.low %v736_v29, %v743_v30  ;;  %v621_v28 = vmul.f32 %v7168_v31, %v7168_v31  ;;  %v622_v55 = vmul.f32 %v7171_v1, %v7171_v1  ;;  %v623_v15 = vmul.f32 %v7173_v0, %v7173_v0  ;;  %v7210_v29 = vpop.permute.xlu0 %1408 }
 0x2f6   : > { %v624_v51 = vmul.f32 %v7175_v40, %v7175_v40  ;;  %v625_v38 = vmul.f32 %v7178_v6, %v7178_v6  ;;  %v626_v32 = vmul.f32 %v7181_v2, %v7181_v2  ;;  %v627_v54 = vmul.f32 %v7184_v5, %v7184_v5 }
 0x2f7   : > { %v750_v41 = vsel %vm579_vm3, %v744_v34, 0.0  ;;  %v649_v62 = vcombine.low %v621_v28, %v622_v55  ;;  %v8221_v55 = vmov 0.0  }
 0x2f8   : > { %751 = vadd.xlane.f32.xlu0 %v750_v41  ;;  %v650_v35 = vcombine.low %v623_v15, %v624_v51  ;;  %v651_v53 = vcombine.low %v625_v38, %v626_v32  ;;  %v679_v8 = vrot.slane %v627_v54, %v6812_v22  ;;  %v7212_v30 = vpop.permute.xlu1 %1412  ;;  %6346 = vmatprep.subr.mxu1 %v8221_v55 }
 0x2f9   : > { %v658_v3 = vrot.slane %v649_v62, %v6812_v22  ;;  %v7214_v34 = vpop.permute.xlu0 %1414  ;;  %6361 = vmatprep.subr.mxu0 %v8221_v55 }
 0x2fa   : > { %v665_v4 = vrot.slane %v650_v35, %v6812_v22  ;;  %v672_v7 = vrot.slane %v651_v53, %v6812_v22 }
 0x2fc   : > { %v680_v16 = vcombine.low %v658_v3, %v665_v4  ;;  %v681_v43 = vcombine.low %v672_v7, %v679_v8  ;;  %v7216_v28 = vpop.permute.xlu1 %1416 }
 0x2fd   : > { %v7220_v15 = vpop.permute.xlu0 %1418 }
 0x2fe   : > { %v688_v26 = vrot.slane %v680_v16, %v6812_v22  ;;  %v695_v27 = vrot.slane %v681_v43, %v6812_v22 }
 0x300   : > { %v696_v46 = vcombine.low %v688_v26, %v695_v27  ;;  %v7222_v51 = vpop.permute.xlu1 %1420 }
 0x302   : > { %v747_v56 = vsel %vm579_vm3, %v696_v46, 0.0 }
 0x303   : > { %748 = vadd.xlane.f32.xlu1 %v747_v56 }
 0x304   : > { %v7224_v32 = vpop.permute.xlu1 %1494 }
 0x32b   : > { %v1333_v41 = vpop.xlane.xlu0 %1332 }
 0x32c   : > { %v1337_v38 = vmul.f32 0.015625, %v1333_v41 }
 0x32e   : > { %v1339_v54 = vsel %vm589_vm4, %v1337_v38, 0.0 }
 0x32f   : > { %v1340_v62 = vrot.slane %v1339_v54, 4  ;;  %v1493_v55 = vpop.permute.xlu0 %1492 }
 0x330   : > { %v1336_v53 = vpop.xlane.xlu1 %1335 }
 0x331   : > { %v1341_v35 = vadd.f32 %v1340_v62, %v1339_v54  ;;  %v1338_v4 = vmul.f32 0.015625, %v1336_v53  ;;  %v7229_v62 = vsub.s32 2, %v6794_v9 }
 0x333   : > { %v1342_v3 = vrot.slane %v1341_v35, 2  ;;  %v1346_v8 = vsel %vm589_vm4, %v1338_v4, 0.0  ;;  %v1497_v63 = vpop.permute.xlu0 %1496  ;;  %8238 = vst [vmem:[#allocation11_spill] sm:$0xff] %v7229_v62  ;;  %v1530_v53 = vrot.slane %v6797_v11, %v7229_v62 }
 0x334   : > { %v1347_v16 = vrot.slane %v1346_v8, 4 }
 0x335   : > { %v1343_v7 = vadd.f32 %v1342_v3, %v1341_v35  ;;  %v1499_v3 = vpop.permute.xlu1 %1498 }
 0x336   : > { %v1348_v26 = vadd.f32 %v1347_v16, %v1346_v8 }
 0x337   : > { %v1344_v43 = vrot.slane %v1343_v7, 1  ;;  %v1501_v4 = vpop.permute.xlu0 %1500 }
 0x338   : > { %v1349_v46 = vrot.slane %v1348_v26, 2 }
 0x339   : > { %v1345_v27 = vadd.f32 %v1344_v43, %v1343_v7  ;;  %v7238_v43 = vadd.f32 %v1530_v53, %v6809_v21 }
 0x33a   : > { %v1350_v41 = vadd.f32 %v1349_v46, %v1348_v26 }
 0x33b   : > { %v1353_v56 = vmul.f32 0.14285715, %v1345_v27 }
 0x33c   : > { %v1351_v20 = vrot.slane %v1350_v41, 1 }
 0x33d   : > { %v1355_v12 = vadd.f32 1e-05, %v1353_v56 }
 0x33e   : > { %v1352_v38 = vadd.f32 %v1351_v20, %v1350_v41 }
 0x33f   : > { %6586 = vrsqrt.f32 %v1355_v12 }
 0x340   : > { %v1354_v54 = vmul.f32 0.14285715, %v1352_v38 }
 0x342   : > { %v1356_v35 = vadd.f32 1e-05, %v1354_v54 }
 0x344   : > { %6588 = vrsqrt.f32 %v1356_v35  ;;  %v1535_v35 = vcombine.high %v7238_v43, %v7238_v43 }
 0x349   : > { %v6587_v7 = vpop.eup %6586 }
 0x34a   : > { %v1359_v8 = vmul.f32 %v6587_v7, %v6913_v19  ;;  %v1360_v16 = vmul.f32 %v6587_v7, %v6916_v57  ;;  %v1361_v12 = vmul.f32 %v6587_v7, %v6918_v58  ;;  %v1362_v20 = vmul.f32 %v6587_v7, %v6920_v59  ;;  %v1503_v59 = vpop.permute.xlu1 %1502 }
 0x34b   : > { %v1363_v26 = vmul.f32 %v6587_v7, %v6923_v60  ;;  %v1364_v27 = vmul.f32 %v6587_v7, %v6926_v61  ;;  %v1365_v11 = vmul.f32 %v6587_v7, %v6929_v23  ;;  %v1505_v60 = vpop.permute.xlu0 %1504  ;;  %v1532_v7 = vadd.f32 %v1530_v53, %v6816_v25 }
 0x34c   : > { %v1429_v46 = vmul.f32 %v7210_v29, %v1359_v8  ;;  %v1430_v56 = vmul.f32 %v7208_v52, %v1360_v16  ;;  %v1431_v19 = vmul.f32 %v7212_v30, %v1361_v12  ;;  %v1432_v57 = vmul.f32 %v7214_v34, %v1362_v20 }
 0x34d   : > { %v1433_v58 = vmul.f32 %v7216_v28, %v1363_v26  ;;  %v1434_v21 = vmul.f32 %v7220_v15, %v1364_v27  ;;  %v1435_v41 = vmul.f32 %v7222_v51, %v1365_v11 }
 0x34e   : > { %v1514_v61 = vadd.f32 %v7224_v32, %v1430_v56  ;;  %v1513_v38 = vadd.f32 %v1493_v55, %v1429_v46  ;;  %v1515_v23 = vadd.f32 %v1497_v63, %v1431_v19  ;;  %v1516_v54 = vadd.f32 %v1499_v3, %v1432_v57  ;;  %v6589_v16 = vpop.eup %6588 }
 0x34f   : > { %v1517_v8 = vadd.f32 %v1501_v4, %v1433_v58  ;;  %v1518_v26 = vadd.f32 %v1503_v59, %v1434_v21  ;;  %v1519_v62 = vadd.f32 %v1505_v60, %v1435_v41  ;;  %v1366_v27 = vmul.f32 %v6589_v16, %v6953_v10 }
 0x350   : > { %v2144_v12 = vcombine.low %v1513_v38, %v1514_v61  ;;  %v2145_v20 = vcombine.low %v1515_v23, %v1516_v54  ;;  %v1367_v11 = vmul.f32 %v6589_v16, %v6956_v13  ;;  %v1368_v56 = vmul.f32 %v6589_v16, %v6959_v14 }
 0x351   : > { %v1369_v46 = vmul.f32 %v6589_v16, %v6964_v17  ;;  %v1370_v25 = vmul.f32 %v6589_v16, %v6967_v18  ;;  %v1371_v53 = vmul.f32 %v6589_v16, %v6970_v24  ;;  %v1436_v58 = vmul.f32 %v7210_v29, %v1366_v27 }
 0x352   : > { %v2153_v19 = vrot.slane %v2144_v12, %v6812_v22  ;;  %v2160_v57 = vrot.slane %v2145_v20, %v6812_v22  ;;  %v1437_v21 = vmul.f32 %v7208_v52, %v1367_v11  ;;  %v1438_v10 = vmul.f32 %v7212_v30, %v1368_v56 }
 0x353   : > { %v1439_v13 = vmul.f32 %v7214_v34, %v1369_v46  ;;  %v1440_v14 = vmul.f32 %v7216_v28, %v1370_v25  ;;  %v1441_v17 = vmul.f32 %v7220_v15, %v1371_v53  ;;  %v2146_v61 = vcombine.low %v1517_v8, %v1518_v26 }
 0x354   : > { %v2175_v41 = vcombine.low %v2153_v19, %v2160_v57  ;;  %v1521_v38 = vadd.f32 %v7224_v32, %v1437_v21  ;;  %v1520_v23 = vadd.f32 %v1493_v55, %v1436_v58  ;;  %v1522_v18 = vadd.f32 %v1497_v63, %v1438_v10 }
 0x355   : > { %v1523_v54 = vadd.f32 %v1499_v3, %v1439_v13  ;;  %v1549_v24 = vrot.slane %v1535_v35, %v6812_v22  ;;  %v1524_v29 = vadd.f32 %v1501_v4, %v1440_v14  ;;  %v1525_v12 = vadd.f32 %v1503_v59, %v1441_v17 }
 0x356   : > { %v2167_v52 = vrot.slane %v2146_v61, %v6812_v22  ;;  %v2331_v30 = vcombine.low %v1520_v23, %v1521_v38  ;;  %v1372_v34 = vmul.f32 %v6589_v16, %v6973_v47  ;;  %v2174_v28 = vrot.slane %v1519_v62, %v6812_v22 }
 0x357   : > { %v2332_v20 = vcombine.low %v1522_v18, %v1523_v54  ;;  %v1591_v15 = vrot.slane %v1532_v7, %v6812_v22  ;;  %v2183_v8 = vrot.slane %v2175_v41, %v6812_v22  ;;  %v2333_v32 = vcombine.low %v1524_v29, %v1525_v12 }
 0x358   : > { %v2340_v63 = vrot.slane %v2331_v30, %v6812_v22  ;;  %v1442_v3 = vmul.f32 %v7222_v51, %v1372_v34  ;;  %v2176_v4 = vcombine.low %v2167_v52, %v2174_v28  ;;  %v8239_v59 = vmov 0.0  }
 0x359   : > { %v2347_v55 = vrot.slane %v2332_v20, %v6812_v22  ;;  %6348 = vmatprep.mubr.msk.f32.mxu1 %vm6710_vm5, %v8239_v59  ;;  %6363 = vmatprep.mubr.msk.f32.mxu0 %vm6710_vm5, %v8239_v59  ;;  %v2354_v62 = vrot.slane %v2333_v32, %v6812_v22  ;;  %v1551_v26 = vcombine.high %v1549_v24, %v1549_v24 }
 0x35a   : > { %v1526_v35 = vadd.f32 %v1505_v60, %v1442_v3  ;;  %v2190_v16 = vrot.slane %v2176_v4, %v6812_v22  ;;  %v1599_v27 = vcombine.high %v1591_v15, %v1591_v15  ;;  %v1584_v56 = vcombine.high %v1532_v7, %v1532_v7 }
 0x35b   : > { %v2362_v47 = vcombine.low %v2340_v63, %v2347_v55  ;;  %v7291_v57 = vrot.slane %v1551_v26, %v6812_v22  ;;  %v7299_v58 = vrot.slane %v1591_v15, %v6812_v22  ;;  %v1542_v38 = vrot.slane %v7238_v43, %v6812_v22 }
 0x35c   : > { %v7284_v11 = vcombine.low %v2183_v8, %v2190_v16  ;;  %v2361_v51 = vrot.slane %v1526_v35, %v6812_v22  ;;  %v7294_v60 = vrot.slane %v1599_v27, %v6812_v22  ;;  %v1598_v53 = vrot.slane %v1584_v56, %v6812_v22 }
 0x35d   : > { %v2370_v46 = vrot.slane %v2362_v47, %v6812_v22  ;;  %v7305_v21 = vcombine.high %v7291_v57, %v7291_v57  ;;  %v7318_v14 = vcombine.high %v7299_v58, %v7299_v58  ;;  %v1550_v12 = vcombine.high %v1542_v38, %v1542_v38 }
 0x35e   : > { %v2363_v19 = vcombine.low %v2354_v62, %v2361_v51  ;;  %2192 = vrot.lane.b32.xlu0 %v7284_v11, %s6707_s14  ;;  %v7309_v10 = vcombine.high %v7294_v60, %v7294_v60  ;;  %v1600_v13 = vcombine.high %v1598_v53, %v1598_v53  ;;  %v7314_v41 = vrot.slane %v1598_v53, %v6812_v22 }
 0x35f   : > { %v1693_v17 = vcombine.low %v7305_v21, %v7299_v58  ;;  %v1694_v18 = vcombine.low %v7294_v60, %v7318_v14  ;;  %v7337_v43 = vrot.slane %v1549_v24, %v6812_v22  ;;  %v7340_v28 = vrot.slane %v1550_v12, %v6812_v22 }
 0x360   : > { %v2377_v25 = vrot.slane %v2363_v19, %v6812_v22  ;;  %v1695_v61 = vcombine.low %v7309_v10, %v7314_v41  ;;  %v7327_v23 = vrot.slane %v1600_v13, %v6812_v22  ;;  %v7343_v15 = vrot.slane %v1542_v38, %v6812_v22 }
 0x361   : > { %v1702_v54 = vrot.slane %v1693_v17, %v6812_v22  ;;  %v1709_v52 = vrot.slane %v1694_v18, %v6812_v22  ;;  %v1647_v8 = vcombine.low %v7337_v43, %v7291_v57  ;;  %v7351_v55 = vcombine.high %v7337_v43, %v7337_v43 }
 0x362   : > { %v7301_v7 = vcombine.low %v2370_v46, %v2377_v25  ;;  %v1716_v29 = vrot.slane %v1695_v61, %v6812_v22  ;;  %v1723_v30 = vrot.slane %v7327_v23, %v6812_v22  ;;  %v1645_v24 = vcombine.low %v7343_v15, %v7340_v28 }
 0x363   : > { %v1724_v20 = vcombine.low %v1702_v54, %v1709_v52  ;;  %v6187_v3 = vcombine.high %v7343_v15, %v7340_v28  ;;  %v1668_v4 = vrot.slane %v1647_v8, %v6812_v22  ;;  %v1675_v16 = vrot.slane %v7351_v55, %v6812_v22 }
 0x364   : > { %2379 = vrot.lane.b32.xlu1 %v7301_v7, %s6707_s14  ;;  %v1725_v34 = vcombine.low %v1716_v29, %v1723_v30  ;;  %v1654_v62 = vrot.slane %v1645_v24, %v6812_v22 }
 0x365   : > { %v1732_v32 = vrot.slane %v1724_v20, %v6812_v22  ;;  %v1661_v35 = vrot.slane %v6187_v3, %v6812_v22  ;;  %v1677_v26 = vcombine.low %v1668_v4, %v1675_v16 }
 0x366   : > { %v1739_v63 = vrot.slane %v1725_v34, %v6812_v22 }
 0x367   : > { %v1676_v51 = vcombine.low %v1654_v62, %v1661_v35  ;;  %v1691_v56 = vrot.slane %v1677_v26, %v6812_v22  ;;  %v6666_v35 = vld [vmem:[%s6785_s9] sm:$0xff]  ;;  %v285_v26 = vld [vmem:[%s6785_s9 + $0x8] sm:$0xff] }
 0x368   : > { %v1740_v47 = vcombine.low %v1732_v32, %v1739_v63  ;;  %v791_v16 = vcombine.high %v6666_v35, %v6666_v35 }
 0x369   : > { %v1684_v46 = vrot.slane %v1676_v51, %v6812_v22 }
 0x36a   : > { %v1746_v27 = vsel %vm579_vm3, %v1740_v47, 0.0  ;;  %v798_v51 = vrot.slane %v791_v16, %v6812_v22 }
 0x36b   : > { %v1692_v19 = vcombine.low %v1684_v46, %v1691_v56  ;;  %v808_v56 = vcombine.high %v285_v26, %v285_v26  ;;  %v815_v46 = vrot.slane %v285_v26, %v6812_v22 }
 0x36d   : > { %v1743_v53 = vsel %vm579_vm3, %v1692_v19, 0.0  ;;  %v886_v19 = vrot.slane %v7075_v33, %v6812_v22 }
 0x37d   : > { %1747 = vadd.xlane.f32.xlu0 %v1746_v27 }
 0x385   : > { %v752_v25 = vpop.xlane.xlu0 %751 }
 0x386   : > { %v754_v13 = vmul.f32 0.015625, %v752_v25  ;;  %v799_v25 = vcombine.high %v798_v51, %v798_v51 }
 0x388   : > { %1744 = vadd.xlane.f32.xlu1 %v1743_v53  ;;  %v762_v17 = vsel %vm589_vm4, %v754_v13, 0.0  ;;  %v822_v53 = vrot.slane %v808_v56, %v6812_v22  ;;  %v823_v13 = vcombine.high %v815_v46, %v815_v46 }
 0x389   : > { %v763_v61 = vrot.slane %v762_v17, 4 }
 0x38b   : > { %v764_v54 = vadd.f32 %v763_v61, %v762_v17  ;;  %v894_v17 = vcombine.high %v886_v19, %v886_v19 }
 0x38d   : > { %v765_v52 = vrot.slane %v764_v54, 2 }
 0x38f   : > { %v766_v34 = vadd.f32 %v765_v52, %v764_v54  ;;  %v901_v54 = vrot.slane %v886_v19, %v6812_v22  ;;  %v915_v52 = vrot.slane %v894_v17, %v6812_v22 }
 0x390   : > { %v749_v38 = vpop.xlane.xlu1 %748 }
 0x391   : > { %v753_v18 = vmul.f32 0.015625, %v749_v38  ;;  %v767_v63 = vrot.slane %v766_v34, 1  ;;  %v806_v38 = vrot.slane %v799_v25, %v6812_v22 }
 0x393   : > { %v755_v29 = vsel %vm589_vm4, %v753_v18, 0.0  ;;  %v768_v4 = vadd.f32 %v767_v63, %v766_v34  ;;  %v824_v18 = vcombine.high %v822_v53, %v822_v53 }
 0x394   : > { %v756_v12 = vrot.slane %v755_v29, 4 }
 0x395   : > { %v770_v62 = vmul.f32 0.14285715, %v768_v4 }
 0x396   : > { %v757_v30 = vadd.f32 %v756_v12, %v755_v29  ;;  %v831_v29 = vrot.slane %v815_v46, %v6812_v22  ;;  %v845_v12 = vrot.slane %v823_v13, %v6812_v22 }
 0x397   : > { %v772_v27 = vadd.f32 1e-05, %v770_v62 }
 0x398   : > { %v758_v20 = vrot.slane %v757_v30, 2  ;;  %v853_v62 = vcombine.high %v831_v29, %v831_v29  ;;  %v854_v35 = vcombine.high %v845_v12, %v845_v12 }
 0x39a   : > { %v759_v8 = vadd.f32 %v758_v20, %v757_v30  ;;  %v838_v20 = vrot.slane %v822_v53, %v6812_v22 }
 0x39c   : > { %v760_v32 = vrot.slane %v759_v8, 1  ;;  %v877_v26 = vcombine.high %v838_v20, %v838_v20 }
 0x39e   : > { %v761_v24 = vadd.f32 %v760_v32, %v759_v8 }
 0x3a0   : > { %v769_v3 = vmul.f32 0.14285715, %v761_v24  ;;  %v807_v24 = vcombine.high %v806_v38, %v806_v38 }
 0x3a2   : > { %v771_v47 = vadd.f32 1e-05, %v769_v3  ;;  %v852_v3 = vrot.slane %v824_v18, %v6812_v22 }
 0x3a4   : > { %6590 = vrsqrt.f32 %v771_v47  ;;  %v916_v47 = vcombine.high %v901_v54, %v901_v54 }
 0x3a5   : > { %6592 = vrsqrt.f32 %v772_v27 }
 0x3ae   : > { %v6591_v61 = vpop.eup %6590 }
 0x3af   : > { %v775_v33 = vmul.f32 %v6591_v61, %v7168_v31  ;;  %v776_v30 = vmul.f32 %v6591_v61, %v7171_v1  ;;  %v777_v34 = vmul.f32 %v6591_v61, %v7173_v0  ;;  %v778_v8 = vmul.f32 %v6591_v61, %v7175_v40  ;;  %v6593_v4 = vpop.eup %6592 }
 0x3b0   : > { %v779_v32 = vmul.f32 %v6591_v61, %v7178_v6  ;;  %v780_v63 = vmul.f32 %v6591_v61, %v7181_v2  ;;  %v917_v31 = vcombine.high %v915_v52, %v915_v52  ;;  %v878_v40 = vcombine.high %v852_v3, %v852_v3 }
 0x3b1   : > { %v862_v16 = vmul.f32 %v807_v24, %v775_v33  ;;  %v863_v1 = vmul.f32 %v831_v29, %v776_v30  ;;  %v864_v27 = vmul.f32 %v845_v12, %v777_v34  ;;  %v865_v51 = vmul.f32 %v853_v62, %v778_v8 }
 0x3b2   : > { %v866_v0 = vmul.f32 %v854_v35, %v779_v32  ;;  %v867_v56 = vmul.f32 %v838_v20, %v780_v63  ;;  %v782_v6 = vmul.f32 %v6593_v4, %v7123_v36  ;;  %v783_v2 = vmul.f32 %v6593_v4, %v7126_v37 }
 0x3b3   : > { %v784_v46 = vmul.f32 %v6593_v4, %v7129_v42  ;;  %v781_v19 = vmul.f32 %v6591_v61, %v7184_v5  ;;  %v785_v25 = vmul.f32 %v6593_v4, %v7132_v44  ;;  %v786_v53 = vmul.f32 %v6593_v4, %v7135_v45 }
 0x3b4   : > { %v787_v13 = vmul.f32 %v6593_v4, %v7138_v49  ;;  %v925_v17 = vadd.f32 %v877_v26, %v862_v16  ;;  %v926_v38 = vadd.f32 %v878_v40, %v863_v1  ;;  %v927_v18 = vadd.f32 %v901_v54, %v864_v27 }
 0x3b5   : > { %v928_v33 = vadd.f32 %v915_v52, %v865_v51  ;;  %v929_v30 = vadd.f32 %v916_v47, %v866_v0  ;;  %v930_v34 = vadd.f32 %v917_v31, %v867_v56  ;;  %v869_v8 = vmul.f32 %v807_v24, %v782_v6 }
 0x3b6   : > { %v870_v36 = vmul.f32 %v831_v29, %v783_v2  ;;  %v871_v32 = vmul.f32 %v845_v12, %v784_v46  ;;  %v868_v37 = vmul.f32 %v852_v3, %v781_v19  ;;  %v872_v63 = vmul.f32 %v853_v62, %v785_v25 }
 0x3b7   : > { %v873_v42 = vmul.f32 %v854_v35, %v786_v53  ;;  %v874_v9 = vmul.f32 %v838_v20, %v787_v13  ;;  %v2089_v5 = vcombine.low %v925_v17, %v926_v38  ;;  %v2090_v61 = vcombine.low %v927_v18, %v928_v33 }
 0x3b8   : > { %v2091_v44 = vcombine.low %v929_v30, %v930_v34  ;;  %v788_v45 = vmul.f32 %v6593_v4, %v7141_v50  ;;  %v932_v48 = vadd.f32 %v877_v26, %v869_v8  ;;  %v933_v49 = vadd.f32 %v878_v40, %v870_v36 }
 0x3b9   : > { %v934_v16 = vadd.f32 %v901_v54, %v871_v32  ;;  %v931_v1 = vadd.f32 %v7085_v39, %v868_v37  ;;  %v935_v27 = vadd.f32 %v915_v52, %v872_v63  ;;  %v936_v51 = vadd.f32 %v916_v47, %v873_v42 }
 0x3ba   : > { %v937_v0 = vadd.f32 %v917_v31, %v874_v9  ;;  %v2098_v29 = vrot.slane %v2089_v5, %v6812_v22  ;;  %v2105_v12 = vrot.slane %v2090_v61, %v6812_v22  ;;  %v2112_v24 = vrot.slane %v2091_v44, %v6812_v22 }
 0x3bb   : > { %v875_v20 = vmul.f32 %v852_v3, %v788_v45  ;;  %v2119_v62 = vrot.slane %v931_v1, %v6812_v22  ;;  %v2276_v35 = vcombine.low %v932_v48, %v933_v49  ;;  %v2277_v56 = vcombine.low %v934_v16, %v935_v27 }
 0x3bc   : > { %v2278_v50 = vcombine.low %v936_v51, %v937_v0  ;;  %v2120_v4 = vcombine.low %v2098_v29, %v2105_v12  ;;  %v1580_v1 = vcombine.high %v7343_v15, %v7343_v15  ;;  %v1582_v27 = vcombine.high %v7340_v28, %v7340_v28 }
 0x3bd   : > { %v2121_v26 = vcombine.low %v2112_v24, %v2119_v62  ;;  %v938_v54 = vadd.f32 %v7085_v39, %v875_v20  ;;  %v2285_v52 = vrot.slane %v2276_v35, %v6812_v22  ;;  %v2292_v9 = vrot.slane %v2277_v56, %v6812_v22 }
 0x3be   : > { %v2299_v47 = vrot.slane %v2278_v50, %v6812_v22  ;;  %v2128_v31 = vrot.slane %v2120_v4, %v6812_v22 }
 0x3bf   : > { %v2135_v3 = vrot.slane %v2121_v26, %v6812_v22  ;;  %v2306_v40 = vrot.slane %v938_v54, %v6812_v22  ;;  %v2307_v6 = vcombine.low %v2285_v52, %v2292_v9 }
 0x3c1   : > { %v2308_v2 = vcombine.low %v2299_v47, %v2306_v40  ;;  %v7409_v46 = vcombine.low %v2128_v31, %v2135_v3  ;;  %v2315_v39 = vrot.slane %v2307_v6, %v6812_v22 }
 0x3c3   : > { %v2322_v19 = vrot.slane %v2308_v2, %v6812_v22 }
 0x3c5   : > { %v7419_v53 = vcombine.low %v2315_v39, %v2322_v19 }
 0x3d0   : > { %v2193_v48 = vpop.permute.xlu0 %2192 }
 0x3d1   : > { %6347 = vmatpush3.xpose.msk.msra.mxu1 %vm2194_vm6, %v2193_v48 }
 0x3d2   : > { %6351 = vmatprep.subr.mxu1 %v8239_v59 }
 0x3d4   : > { %6349 = vmatmul.mubr.msk.f32.vlgmr.msra.gmra.mrb[0].mxu1 %vm2194_vm6, %v7409_v46 }
 0x3d5   : > { %6353 = vmatprep.mubr.msk.f32.mxu1 %vm6710_vm5, %v8239_v59 }
 0x3d6   : > { %v2380_v25 = vpop.permute.xlu1 %2379 }
 0x3d7   : > { %6352 = vmatpush3.xpose.msk.msra.mxu1 %vm2194_vm6, %v2380_v25 }
 0x3d8   : > { %6356 = vmatprep.subr.mxu1 %v8239_v59 }
 0x3da   : > { %6354 = vmatmul.mubr.msk.f32.vlgmr.msra.gmra.mrb[2].mxu1 %vm2194_vm6, %v7419_v53 }
 0x3db   : > { %6358 = vmatprep.mubr.msk.f32.mxu1 %vm6710_vm5, %v8239_v59 }
 0x40a   : > { %v1748_v38 = vpop.xlane.xlu0 %1747 }
 0x40b   : > { %v1750_v33 = vmul.f32 0.015625, %v1748_v38 }
 0x40d   : > { %v1758_v34 = vsel %vm589_vm4, %v1750_v33, 0.0 }
 0x40e   : > { %v1759_v36 = vrot.slane %v1758_v34, 4 }
 0x410   : > { %v1760_v37 = vadd.f32 %v1759_v36, %v1758_v34 }
 0x412   : > { %v1761_v42 = vrot.slane %v1760_v37, 2 }
 0x414   : > { %v1762_v61 = vadd.f32 %v1761_v42, %v1760_v37 }
 0x415   : > { %v1745_v13 = vpop.xlane.xlu1 %1744 }
 0x416   : > { %v1749_v17 = vmul.f32 0.015625, %v1745_v13  ;;  %v1763_v45 = vrot.slane %v1762_v61, 1 }
 0x418   : > { %v1751_v18 = vsel %vm589_vm4, %v1749_v17, 0.0  ;;  %v1764_v16 = vadd.f32 %v1763_v45, %v1762_v61 }
 0x419   : > { %v1752_v30 = vrot.slane %v1751_v18, 4 }
 0x41a   : > { %v1766_v62 = vmul.f32 0.14285715, %v1764_v16 }
 0x41b   : > { %v1753_v8 = vadd.f32 %v1752_v30, %v1751_v18 }
 0x41c   : > { %v7461_v50 = vsub.f32 %v7305_v21, %v1766_v62  ;;  %v7464_v4 = vsub.f32 %v7299_v58, %v1766_v62  ;;  %v7467_v26 = vsub.f32 %v7294_v60, %v1766_v62  ;;  %v7473_v52 = vsub.f32 %v7318_v14, %v1766_v62 }
 0x41d   : > { %v1754_v32 = vrot.slane %v1753_v8, 2  ;;  %v7476_v9 = vsub.f32 %v7309_v10, %v1766_v62  ;;  %v7479_v47 = vsub.f32 %v7314_v41, %v1766_v62  ;;  %v7499_v39 = vsub.f32 %v7327_v23, %v1766_v62 }
 0x41e   : > { %v1788_v58 = vmul.f32 %v7461_v50, %v7461_v50  ;;  %v1789_v60 = vmul.f32 %v7464_v4, %v7464_v4  ;;  %v1791_v10 = vmul.f32 %v7473_v52, %v7473_v52 }
 0x41f   : > { %v1755_v63 = vadd.f32 %v1754_v32, %v1753_v8  ;;  %v1792_v41 = vmul.f32 %v7476_v9, %v7476_v9  ;;  %v1793_v40 = vmul.f32 %v7479_v47, %v7479_v47  ;;  %v1794_v33 = vmul.f32 %v7499_v39, %v7499_v39 }
 0x420   : > { %v1857_v25 = vcombine.low %v1788_v58, %v1789_v60 }
 0x421   : > { %v1756_v5 = vrot.slane %v1755_v63, 1  ;;  %v1859_v17 = vcombine.low %v1792_v41, %v1793_v40  ;;  %v1887_v32 = vrot.slane %v1794_v33, %v6812_v22  ;;  %v289_v33 = vld [vmem:[%s6785_s9 + $0x28] sm:$0xff] }
 0x422   : > { %v1866_v30 = vrot.slane %v1857_v25, %v6812_v22 }
 0x423   : > { %v1757_v44 = vadd.f32 %v1756_v5, %v1755_v63  ;;  %v1880_v8 = vrot.slane %v1859_v17, %v6812_v22 }
 0x425   : > { %v1765_v49 = vmul.f32 0.14285715, %v1757_v44  ;;  %v1889_v63 = vcombine.low %v1880_v8, %v1887_v32 }
 0x427   : > { %v7433_v51 = vsub.f32 %v7343_v15, %v1765_v49  ;;  %v7436_v0 = vsub.f32 %v7340_v28, %v1765_v49  ;;  %v7438_v29 = vsub.f32 %v1580_v1, %v1765_v49  ;;  %v7440_v12 = vsub.f32 %v1582_v27, %v1765_v49 }
 0x428   : > { %v7443_v24 = vsub.f32 %v7337_v43, %v1765_v49  ;;  %v7446_v20 = vsub.f32 %v7291_v57, %v1765_v49  ;;  %v7470_v54 = vsub.f32 %v7351_v55, %v1765_v49  ;;  %v1790_v55 = vmul.f32 %v7467_v26, %v7467_v26 }
 0x429   : > { %v1781_v35 = vmul.f32 %v7433_v51, %v7433_v51  ;;  %v1782_v15 = vmul.f32 %v7436_v0, %v7436_v0  ;;  %v1783_v28 = vmul.f32 %v7438_v29, %v7438_v29  ;;  %v1784_v56 = vmul.f32 %v7440_v12, %v7440_v12 }
 0x42a   : > { %v1785_v43 = vmul.f32 %v7443_v24, %v7443_v24  ;;  %v1786_v57 = vmul.f32 %v7446_v20, %v7446_v20  ;;  %v1787_v14 = vmul.f32 %v7470_v54, %v7470_v54  ;;  %v1858_v13 = vcombine.low %v1790_v55, %v1791_v10 }
 0x42b   : > { %v1809_v21 = vcombine.low %v1781_v35, %v1782_v15  ;;  %v1810_v31 = vcombine.low %v1783_v28, %v1784_v56  ;;  %v1903_v49 = vrot.slane %v1889_v63, %v6812_v22 }
 0x42c   : > { %v1811_v3 = vcombine.low %v1785_v43, %v1786_v57  ;;  %v1839_v19 = vrot.slane %v1787_v14, %v6812_v22  ;;  %v1873_v34 = vrot.slane %v1858_v13, %v6812_v22 }
 0x42d   : > { %v1818_v48 = vrot.slane %v1809_v21, %v6812_v22  ;;  %v1825_v6 = vrot.slane %v1810_v31, %v6812_v22 }
 0x42e   : > { %v1832_v2 = vrot.slane %v1811_v3, %v6812_v22  ;;  %v1888_v37 = vcombine.low %v1866_v30, %v1873_v34 }
 0x42f   : > { %v1840_v38 = vcombine.low %v1818_v48, %v1825_v6 }
 0x430   : > { %v1841_v18 = vcombine.low %v1832_v2, %v1839_v19  ;;  %v1896_v45 = vrot.slane %v1888_v37, %v6812_v22 }
 0x431   : > { %v1848_v36 = vrot.slane %v1840_v38, %v6812_v22  ;;  %v8240_v38 = vld [vmem:[#allocation9_spill] sm:$0xff] }
 0x432   : > { %v1855_v23 = vrot.slane %v1841_v18, %v6812_v22  ;;  %v1904_v35 = vcombine.low %v1896_v45, %v1903_v49  ;;  %v1950_v18 = vcombine.high %v8240_v38, %v8240_v38 }
 0x434   : > { %v1856_v44 = vcombine.low %v1848_v36, %v1855_v23  ;;  %v1910_v15 = vsel %vm579_vm3, %v1904_v35, 0.0  ;;  %v2020_v23 = vcombine.high %v289_v33, %v289_v33  ;;  %v1957_v37 = vrot.slane %v1950_v18, %v6812_v22 }
 0x436   : > { %v1907_v16 = vsel %vm579_vm3, %v1856_v44, 0.0  ;;  %v2027_v45 = vrot.slane %v2020_v23, %v6812_v22  ;;  %v1958_v49 = vcombine.high %v1957_v37, %v1957_v37  ;;  %v1965_v35 = vrot.slane %v1957_v37, %v6812_v22 }
 0x4a7   : > { %v2265_v42 = vpop.f32.mrb[0].mxu1 }
 0x4a8   : > { %v6350_v5 = vpop.f32.mrb[1].mxu1  ;;  %v2456_v61 = vsel %vm2455_vm7, %v2265_v42, -inf }
 0x4a9   : > { %2457 = vmax.xlane.f32.xlu0 %v2456_v61  ;;  %v1982_v61 = vrot.slane %v289_v33, %v6812_v22 }
 0x4ad   : > { %v2451_v1 = vpop.f32.mrb[2].mxu1  ;;  %1908 = vadd.xlane.f32.xlu0 %v1907_v16 }
 0x4ae   : > { %v6355_v27 = vpop.f32.mrb[3].mxu1  ;;  %v2459_v62 = vsel %vm2455_vm7, %v2451_v1, -inf }
 0x4af   : > { %2460 = vmax.xlane.f32.xlu1 %v2459_v62  ;;  %v2028_v62 = vcombine.high %v2027_v45, %v2027_v45 }
 0x4b3   : > { %1911 = vadd.xlane.f32.xlu1 %v1910_v15  ;;  %v1972_v15 = vrot.slane %v1958_v49, %v6812_v22 }
 0x4c3   : > { %2741 = vrot.lane.b32.xlu0 %v7284_v11, %s6711_s15 }
 0x4c4   : > { %2819 = vrot.lane.b32.xlu1 %v7301_v7, %s6711_s15 }
 0x536   : > { %v2458_v28 = vpop.xlane.xlu0 %2457 }
 0x537   : > { %v2462_v56 = vsub.f32 %v2265_v42, %v2458_v28  ;;  %v1990_v28 = vrot.slane %v1982_v61, %v6812_v22 }
 0x539   : > { %v2464_v43 = vmul.f32 1.442695, %v2462_v56 }
 0x53a   : > { %v1909_v57 = vpop.xlane.xlu0 %1908 }
 0x53b   : > { %6594 = vpow2.f32 %v2464_v43  ;;  %v1913_v21 = vmul.f32 0.015625, %v1909_v57  ;;  %v7541_v43 = vrot.slane %v2027_v45, %v6812_v22  ;;  %v6188_v57 = vld.sshfl [vmem:[%s6785_s9 + $0x30] sm:$0x1 pattern:$0x75316420] }
 0x53c   : > { %v2461_v31 = vpop.xlane.xlu1 %2460 }
 0x53d   : > { %v2463_v3 = vsub.f32 %v2451_v1, %v2461_v31  ;;  %v1915_v58 = vsel %vm589_vm4, %v1913_v21, 0.0  ;;  %v1983_v1 = vcombine.high %v1982_v61, %v1982_v61  ;;  %v2042_v21 = vrot.slane %v2028_v62, %v6812_v22 }
 0x53e   : > { %v1916_v60 = vrot.slane %v1915_v58, 4  ;;  %v1973_v31 = vcombine.high %v1965_v35, %v1965_v35 }
 0x53f   : > { %v2466_v55 = vmul.f32 1.442695, %v2463_v3  ;;  %v1997_v56 = vrot.slane %v1983_v1, %v6812_v22  ;;  %v1975_v3 = vcombine.high %v1972_v15, %v1972_v15  ;;  %v2046_v18 = vcombine.high %v2042_v21, %v2042_v21 }
 0x540   : > { %v1917_v14 = vadd.f32 %v1916_v60, %v1915_v58  ;;  %v1912_v10 = vpop.xlane.xlu1 %1911  ;;  %v8241_v58 = vld [vmem:[#allocation10_spill] sm:$0xff] }
 0x541   : > { %6596 = vpow2.f32 %v2466_v55  ;;  %v1914_v41 = vmul.f32 0.015625, %v1912_v10  ;;  %v1974_v60 = vcombine.high %v8241_v58, %v8241_v58  ;;  %v2044_v10 = vcombine.high %v7541_v43, %v7541_v43 }
 0x542   : > { %v1918_v40 = vrot.slane %v1917_v14, 2 }
 0x543   : > { %v1922_v48 = vsel %vm589_vm4, %v1914_v41, 0.0  ;;  %v2045_v41 = vcombine.high %v1997_v56, %v1997_v56 }
 0x544   : > { %v1919_v6 = vadd.f32 %v1918_v40, %v1917_v14  ;;  %v1923_v2 = vrot.slane %v1922_v48, 4  ;;  %v2043_v14 = vcombine.high %v1990_v28, %v1990_v28  ;;  %v2060_v40 = vrot.slane %v6188_v57, %v6812_v22 }
 0x545   : > { %v7522_v19 = vpop.eup %6594 }
 0x546   : > { %v1920_v25 = vrot.slane %v1919_v6, 1  ;;  %v1924_v13 = vadd.f32 %v1923_v2, %v1922_v48  ;;  %v2468_v17 = vsel %vm2455_vm7, %v7522_v19, 0.0 }
 0x547   : > { %2469 = vadd.xlane.f32.xlu0 %v2468_v17 }
 0x548   : > { %v1921_v30 = vadd.f32 %v1920_v25, %v1919_v6  ;;  %v1925_v34 = vrot.slane %v1924_v13, 2 }
 0x54a   : > { %v1929_v8 = vmul.f32 0.14285715, %v1921_v30  ;;  %v1926_v36 = vadd.f32 %v1925_v34, %v1924_v13 }
 0x54b   : > { %v7529_v32 = vpop.eup %6596 }
 0x54c   : > { %v1931_v63 = vadd.f32 1e-05, %v1929_v8  ;;  %v1927_v42 = vrot.slane %v1926_v36, 1  ;;  %v2471_v5 = vsel %vm2455_vm7, %v7529_v32, 0.0 }
 0x54d   : > { %2472 = vadd.xlane.f32.xlu1 %v2471_v5 }
 0x54e   : > { %6598 = vrsqrt.f32 %v1931_v63  ;;  %v1928_v44 = vadd.f32 %v1927_v42, %v1926_v36 }
 0x550   : > { %v1930_v16 = vmul.f32 0.14285715, %v1928_v44 }
 0x552   : > { %v1932_v27 = vadd.f32 1e-05, %v1930_v16 }
 0x554   : > { %6600 = vrsqrt.f32 %v1932_v27 }
 0x558   : > { %v6599_v55 = vpop.eup %6598 }
 0x559   : > { %v1935_v48 = vmul.f32 %v6599_v55, %v7433_v51  ;;  %v1936_v6 = vmul.f32 %v6599_v55, %v7436_v0  ;;  %v1937_v2 = vmul.f32 %v6599_v55, %v7438_v29  ;;  %v1938_v25 = vmul.f32 %v6599_v55, %v7440_v12 }
 0x55a   : > { %v1939_v13 = vmul.f32 %v6599_v55, %v7443_v24  ;;  %v1940_v17 = vmul.f32 %v6599_v55, %v7446_v20  ;;  %v1941_v38 = vmul.f32 %v6599_v55, %v7470_v54 }
 0x55b   : > { %v2005_v33 = vmul.f32 %v1974_v60, %v1935_v48  ;;  %v2006_v30 = vmul.f32 %v1965_v35, %v1936_v6  ;;  %v2007_v34 = vmul.f32 %v1972_v15, %v1937_v2  ;;  %v2008_v8 = vmul.f32 %v1973_v31, %v1938_v25 }
 0x55c   : > { %v2009_v36 = vmul.f32 %v1975_v3, %v1939_v13  ;;  %v2010_v23 = vmul.f32 %v1990_v28, %v1940_v17  ;;  %v2011_v51 = vmul.f32 %v1997_v56, %v1941_v38 }
 0x55d   : > { %2817 = vrot.lane.b32.xlu0 %v7419_v53, %s6712_s16  ;;  %v2068_v0 = vadd.f32 %v2043_v14, %v2005_v33  ;;  %v2069_v29 = vadd.f32 %v2045_v41, %v2006_v30  ;;  %v2070_v12 = vadd.f32 %v7541_v43, %v2007_v34  ;;  %v2071_v24 = vadd.f32 %v2042_v21, %v2008_v8 }
 0x55e   : > { %v6601_v20 = vpop.eup %6600  ;;  %2739 = vrot.lane.b32.xlu1 %v7409_v46, %s6712_s16  ;;  %v2072_v54 = vadd.f32 %v2044_v10, %v2009_v36  ;;  %v2073_v37 = vadd.f32 %v2046_v18, %v2010_v23  ;;  %v2074_v63 = vadd.f32 %v2060_v40, %v2011_v51  ;;  %v2820_v51 = vpop.permute.xlu1 %2819 }
 0x55f   : > { %v2485_v42 = vcombine.low %v2068_v0, %v2069_v29  ;;  %v2486_v5 = vcombine.low %v2070_v12, %v2071_v24  ;;  %v1942_v61 = vmul.f32 %v6601_v20, %v7461_v50  ;;  %v1943_v44 = vmul.f32 %v6601_v20, %v7464_v4 }
 0x560   : > { %v2487_v45 = vcombine.low %v2072_v54, %v2073_v37  ;;  %v2515_v49 = vrot.slane %v2074_v63, %v6812_v22  ;;  %v1944_v16 = vmul.f32 %v6601_v20, %v7467_v26  ;;  %v1945_v1 = vmul.f32 %v6601_v20, %v7473_v52 }
 0x561   : > { %v2494_v27 = vrot.slane %v2485_v42, %v6812_v22  ;;  %v2501_v62 = vrot.slane %v2486_v5, %v6812_v22  ;;  %v1946_v57 = vmul.f32 %v6601_v20, %v7476_v9  ;;  %v1947_v58 = vmul.f32 %v6601_v20, %v7479_v47 }
 0x562   : > { %v2508_v55 = vrot.slane %v2487_v45, %v6812_v22  ;;  %v1948_v50 = vmul.f32 %v6601_v20, %v7499_v39  ;;  %v2012_v4 = vmul.f32 %v1974_v60, %v1942_v61  ;;  %v2013_v48 = vmul.f32 %v1965_v35, %v1943_v44 }
 0x563   : > { %v2516_v6 = vcombine.low %v2494_v27, %v2501_v62  ;;  %v2014_v2 = vmul.f32 %v1972_v15, %v1944_v16  ;;  %v2015_v25 = vmul.f32 %v1973_v31, %v1945_v1  ;;  %v2016_v26 = vmul.f32 %v1975_v3, %v1946_v57 }
 0x564   : > { %v2517_v13 = vcombine.low %v2508_v55, %v2515_v49  ;;  %v2017_v52 = vmul.f32 %v1990_v28, %v1947_v58  ;;  %v2018_v17 = vmul.f32 %v1997_v56, %v1948_v50  ;;  %v2075_v38 = vadd.f32 %v2043_v14, %v2012_v4 }
 0x565   : > { %v2524_v33 = vrot.slane %v2516_v6, %v6812_v22  ;;  %v2076_v30 = vadd.f32 %v2045_v41, %v2013_v48  ;;  %v2077_v9 = vadd.f32 %v7541_v43, %v2014_v2  ;;  %v2078_v47 = vadd.f32 %v2042_v21, %v2015_v25 }
 0x566   : > { %v2531_v34 = vrot.slane %v2517_v13, %v6812_v22  ;;  %v2079_v8 = vadd.f32 %v2044_v10, %v2016_v26  ;;  %v2080_v39 = vadd.f32 %v2046_v18, %v2017_v52  ;;  %v2081_v60 = vadd.f32 %v2060_v40, %v2018_v17  ;;  %v2742_v18 = vpop.permute.xlu0 %2741 }
 0x567   : > { %v2616_v35 = vcombine.low %v2075_v38, %v2076_v30  ;;  %v2617_v36 = vcombine.low %v2077_v9, %v2078_v47 }
 0x568   : > { %v7576_v15 = vcombine.low %v2524_v33, %v2531_v34  ;;  %v2618_v31 = vcombine.low %v2079_v8, %v2080_v39  ;;  %v2646_v21 = vrot.slane %v2081_v60, %v6812_v22 }
 0x569   : > { %v2625_v28 = vrot.slane %v2616_v35, %v6812_v22  ;;  %v2632_v56 = vrot.slane %v2617_v36, %v6812_v22 }
 0x56a   : > { %6357 = vmatpush3.msk.msra.mxu1 %vm589_vm4, %v7576_v15  ;;  %v2639_v43 = vrot.slane %v2618_v31, %v6812_v22 }
 0x56b   : > { %v2647_v3 = vcombine.low %v2625_v28, %v2632_v56  ;;  %6366 = vmatprep.subr.mxu1 %v8239_v59 }
 0x56c   : > { %v2648_v14 = vcombine.low %v2639_v43, %v2646_v21 }
 0x56d   : > { %v2655_v10 = vrot.slane %v2647_v3, %v6812_v22 }
 0x56e   : > { %v2662_v41 = vrot.slane %v2648_v14, %v6812_v22 }
 0x570   : > { %v7587_v40 = vcombine.low %v2655_v10, %v2662_v41 }
 0x572   : > { %6362 = vmatpush3.msk.msra.mxu0 %vm589_vm4, %v7587_v40 }
 0x573   : > { %6371 = vmatprep.subr.mxu0 %v8239_v59 }
 0x5d4   : > { %v2470_v23 = vpop.xlane.xlu0 %2469 }
 0x5d5   : > { %6602 = vrcp.f32 %v2470_v23 }
 0x5da   : > { %v2473_v0 = vpop.xlane.xlu1 %2472 }
 0x5db   : > { %6604 = vrcp.f32 %v2473_v0 }
 0x5de   : > { %v2740_v20 = vpop.permute.xlu1 %2739 }
 0x5df   : > { %v6603_v29 = vpop.eup %6602 }
 0x5e0   : > { %v2476_v12 = vmul.f32 %v6603_v29, %v7522_v19  ;;  %v2818_v19 = vpop.permute.xlu0 %2817 }
 0x5e2   : > { %6359 = vmatmul.mubr.msk.f32.vlgmr.msra.gmra.mrb[4].mxu1 %vm2533_vm8, %v2476_v12 }
 0x5e3   : > { %6367 = vmatpush3.xpose.msk.msra.mxu1 %vm2194_vm6, %v2742_v18  ;;  %6368 = vmatprep.mubr.msk.f32.mxu1 %vm6710_vm5, %v8239_v59 }
 0x5e4   : > { %6376 = vmatprep.subr.mxu1 %v8239_v59 }
 0x5e5   : > { %v6605_v24 = vpop.eup %6604 }
 0x5e6   : > { %v2477_v54 = vmul.f32 %v6605_v24, %v7529_v32  ;;  %6369 = vmatmul.mubr.msk.f32.vlgmr.msra.gmra.mrb[6].mxu1 %vm2194_vm6, %v2740_v20 }
 0x5e7   : > { %6378 = vmatprep.mubr.msk.f32.mxu1 %vm6710_vm5, %v8239_v59 }
 0x5e8   : > { %6364 = vmatmul.mubr.msk.f32.vlgmr.msra.gmra.mrb[4].mxu0 %vm2533_vm8, %v2477_v54 }
 0x5e9   : > { %6372 = vmatpush3.xpose.msk.msra.mxu0 %vm2194_vm6, %v2820_v51  ;;  %6373 = vmatprep.mubr.msk.f32.mxu0 %vm6710_vm5, %v8239_v59 }
 0x5ea   : > { %6381 = vmatprep.subr.mxu0 %v8239_v59 }
 0x5ec   : > { %6374 = vmatmul.mubr.msk.f32.vlgmr.msra.gmra.mrb[6].mxu0 %vm2194_vm6, %v2818_v19 }
 0x5ed   : > { %6383 = vmatprep.mubr.msk.f32.mxu0 %vm6710_vm5, %v8239_v59 }
 0x6b5   : > { %v7610_v32 = vpop.f32.mrb[4].mxu1 }
 0x6b6   : > { %v6360_v37 = vpop.f32.mrb[5].mxu1 }
 0x6b9   : > { %v2813_v63 = vpop.f32.mrb[6].mxu1 }
 0x6ba   : > { %v6370_v42 = vpop.f32.mrb[7].mxu1  ;;  %v2895_v5 = vsel %vm2455_vm7, %v2813_v63, -inf }
 0x6bb   : > { %v7613_v61 = vpop.f32.mrb[4].mxu0  ;;  %2896 = vmax.xlane.f32.xlu1 %v2895_v5 }
 0x6bc   : > { %v6365_v44 = vpop.f32.mrb[5].mxu0 }
 0x6bf   : > { %v2891_v45 = vpop.f32.mrb[6].mxu0 }
 0x6c0   : > { %v6375_v49 = vpop.f32.mrb[7].mxu0  ;;  %v2898_v16 = vsel %vm2455_vm7, %v2891_v45, -inf }
 0x6c1   : > { %2899 = vmax.xlane.f32.xlu0 %v2898_v16 }
 0x6cc   : > { %2994 = vrot.lane.b32.xlu1 %v7587_v40, %s6712_s16 }
 0x6d0   : > { %3073 = vrot.lane.b32.xlu1 %v7284_v11, %s6713_s17 }
 0x6d7   : > { %2917 = vrot.lane.b32.xlu0 %v7576_v15, %s6712_s16 }
 0x6db   : > { %3151 = vrot.lane.b32.xlu0 %v7301_v7, %s6713_s17 }
 0x748   : > { %v2897_v1 = vpop.xlane.xlu1 %2896 }
 0x749   : > { %v2901_v27 = vsub.f32 %v2813_v63, %v2897_v1 }
 0x74b   : > { %v2903_v62 = vmul.f32 1.442695, %v2901_v27 }
 0x74c   : > { %v2995_v57 = vpop.permute.xlu1 %2994 }
 0x74d   : > { %6606 = vpow2.f32 %v2903_v62  ;;  %6382 = vmatpush3.msk.msra.mxu0 %vm589_vm4, %v2995_v57 }
 0x74e   : > { %v2900_v58 = vpop.xlane.xlu0 %2899  ;;  %6391 = vmatprep.subr.mxu0 %v8239_v59 }
 0x74f   : > { %v2902_v55 = vsub.f32 %v2891_v45, %v2900_v58 }
 0x750   : > { %v3074_v52 = vpop.permute.xlu1 %3073 }
 0x751   : > { %v2905_v50 = vmul.f32 1.442695, %v2902_v55 }
 0x752   : > { %v2918_v4 = vpop.permute.xlu0 %2917 }
 0x753   : > { %6608 = vpow2.f32 %v2905_v50  ;;  %6377 = vmatpush3.msk.msra.mxu1 %vm589_vm4, %v2918_v4 }
 0x754   : > { %6386 = vmatprep.subr.mxu1 %v8239_v59 }
 0x756   : > { %v3152_v26 = vpop.permute.xlu0 %3151 }
 0x757   : > { %v6607_v48 = vpop.eup %6606 }
 0x758   : > { %v2907_v6 = vsel %vm2455_vm7, %v6607_v48, 0.0 }
 0x759   : > { %2908 = vadd.xlane.f32.xlu0 %v2907_v6 }
 0x75d   : > { %v6609_v2 = vpop.eup %6608 }
 0x75e   : > { %v2910_v25 = vsel %vm2455_vm7, %v6609_v2, 0.0 }
 0x75f   : > { %2911 = vadd.xlane.f32.xlu1 %v2910_v25 }
 0x76f   : > { %3149 = vrot.lane.b32.xlu0 %v7419_v53, %s6714_s20 }
 0x770   : > { %3071 = vrot.lane.b32.xlu1 %v7409_v46, %s6714_s20 }
 0x7e6   : > { %v2909_v13 = vpop.xlane.xlu0 %2908 }
 0x7e7   : > { %6610 = vrcp.f32 %v2909_v13 }
 0x7ea   : > { %v3150_v34 = vpop.permute.xlu0 %3149 }
 0x7ec   : > { %v2912_v17 = vpop.xlane.xlu1 %2911 }
 0x7ed   : > { %6612 = vrcp.f32 %v2912_v17 }
 0x7f0   : > { %v3072_v9 = vpop.permute.xlu1 %3071 }
 0x7f1   : > { %v6611_v38 = vpop.eup %6610 }
 0x7f2   : > { %v2915_v33 = vmul.f32 %v6611_v38, %v6607_v48 }
 0x7f4   : > { %6379 = vmatmul.mubr.msk.f32.vlgmr.msra.gmra.mrb[8].mxu1 %vm2533_vm8, %v2915_v33 }
 0x7f5   : > { %6387 = vmatpush3.xpose.msk.msra.mxu1 %vm2194_vm6, %v3074_v52  ;;  %6388 = vmatprep.mubr.msk.f32.mxu1 %vm6710_vm5, %v8239_v59 }
 0x7f6   : > { %6396 = vmatprep.subr.mxu1 %v8239_v59 }
 0x7f7   : > { %v6613_v30 = vpop.eup %6612 }
 0x7f8   : > { %v2916_v47 = vmul.f32 %v6613_v30, %v6609_v2  ;;  %6389 = vmatmul.mubr.msk.f32.vlgmr.msra.gmra.mrb[10].mxu1 %vm2194_vm6, %v3072_v9 }
 0x7f9   : > { %6398 = vmatprep.mubr.msk.f32.mxu1 %vm6710_vm5, %v8239_v59 }
 0x7fa   : > { %6384 = vmatmul.mubr.msk.f32.vlgmr.msra.gmra.mrb[8].mxu0 %vm2533_vm8, %v2916_v47 }
 0x7fb   : > { %6392 = vmatpush3.xpose.msk.msra.mxu0 %vm2194_vm6, %v3152_v26  ;;  %6393 = vmatprep.mubr.msk.f32.mxu0 %vm6710_vm5, %v8239_v59 }
 0x7fc   : > { %6401 = vmatprep.subr.mxu0 %v8239_v59 }
 0x7fe   : > { %6394 = vmatmul.mubr.msk.f32.vlgmr.msra.gmra.mrb[10].mxu0 %vm2194_vm6, %v3150_v34 }
 0x7ff   : > { %6403 = vmatprep.mubr.msk.f32.mxu0 %vm6710_vm5, %v8239_v59 }
 0x8c7   : > { %v7650_v8 = vpop.f32.mrb[8].mxu1 }
 0x8c8   : > { %v6380_v39 = vpop.f32.mrb[9].mxu1 }
 0x8cb   : > { %v3145_v60 = vpop.f32.mrb[10].mxu1 }
 0x8cc   : > { %v6390_v35 = vpop.f32.mrb[11].mxu1  ;;  %v3227_v36 = vsel %vm2455_vm7, %v3145_v60, -inf }
 0x8cd   : > { %v7653_v31 = vpop.f32.mrb[8].mxu0  ;;  %3228 = vmax.xlane.f32.xlu1 %v3227_v36 }
 0x8ce   : > { %v6385_v28 = vpop.f32.mrb[9].mxu0 }
 0x8d1   : > { %v3223_v56 = vpop.f32.mrb[10].mxu0 }
 0x8d2   : > { %v6395_v43 = vpop.f32.mrb[11].mxu0  ;;  %v3230_v21 = vsel %vm2455_vm7, %v3223_v56, -inf }
 0x8d3   : > { %3231 = vmax.xlane.f32.xlu0 %v3230_v21 }
 0x8de   : > { %3326 = vrot.lane.b32.xlu1 %v7587_v40, %s6714_s20 }
 0x8e2   : > { %3405 = vrot.lane.b32.xlu1 %v7284_v11, %s6715_s21 }
 0x8e9   : > { %3249 = vrot.lane.b32.xlu0 %v7576_v15, %s6714_s20 }
 0x8ed   : > { %3483 = vrot.lane.b32.xlu0 %v7301_v7, %s6715_s21 }
 0x95a   : > { %v3229_v3 = vpop.xlane.xlu1 %3228 }
 0x95b   : > { %v3233_v14 = vsub.f32 %v3145_v60, %v3229_v3 }
 0x95d   : > { %v3235_v10 = vmul.f32 1.442695, %v3233_v14 }
 0x95e   : > { %v3327_v41 = vpop.permute.xlu1 %3326 }
 0x95f   : > { %6614 = vpow2.f32 %v3235_v10  ;;  %6402 = vmatpush3.msk.msra.mxu0 %vm589_vm4, %v3327_v41 }
 0x960   : > { %v3232_v18 = vpop.xlane.xlu0 %3231  ;;  %6411 = vmatprep.subr.mxu0 %v8239_v59 }
 0x961   : > { %v3234_v23 = vsub.f32 %v3223_v56, %v3232_v18 }
 0x962   : > { %v3406_v37 = vpop.permute.xlu1 %3405 }
 0x963   : > { %v3237_v51 = vmul.f32 1.442695, %v3234_v23 }
 0x964   : > { %v3250_v0 = vpop.permute.xlu0 %3249 }
 0x965   : > { %6616 = vpow2.f32 %v3237_v51  ;;  %6397 = vmatpush3.msk.msra.mxu1 %vm589_vm4, %v3250_v0 }
 0x966   : > { %6406 = vmatprep.subr.mxu1 %v8239_v59 }
 0x968   : > { %v3484_v54 = vpop.permute.xlu0 %3483 }
 0x969   : > { %v6615_v29 = vpop.eup %6614 }
 0x96a   : > { %v3239_v12 = vsel %vm2455_vm7, %v6615_v29, 0.0 }
 0x96b   : > { %3240 = vadd.xlane.f32.xlu0 %v3239_v12 }
 0x96f   : > { %v6617_v24 = vpop.eup %6616 }
 0x970   : > { %v3242_v20 = vsel %vm2455_vm7, %v6617_v24, 0.0 }
 0x971   : > { %3243 = vadd.xlane.f32.xlu1 %v3242_v20 }
 0x981   : > { %3481 = vrot.lane.b32.xlu0 %v7419_v53, %s6716_s22 }
 0x982   : > { %3403 = vrot.lane.b32.xlu1 %v7409_v46, %s6716_s22 }
 0x9f8   : > { %v3241_v19 = vpop.xlane.xlu0 %3240 }
 0x9f9   : > { %6618 = vrcp.f32 %v3241_v19 }
 0x9fc   : > { %v3482_v16 = vpop.permute.xlu0 %3481 }
 0x9fe   : > { %v3244_v63 = vpop.xlane.xlu1 %3243 }
 0x9ff   : > { %6620 = vrcp.f32 %v3244_v63 }
 0xa02   : > { %v3404_v45 = vpop.permute.xlu1 %3403 }
 0xa03   : > { %v6619_v42 = vpop.eup %6618 }
 0xa04   : > { %v3247_v5 = vmul.f32 %v6619_v42, %v6615_v29 }
 0xa06   : > { %6399 = vmatmul.mubr.msk.f32.vlgmr.msra.gmra.mrb[12].mxu1 %vm2533_vm8, %v3247_v5 }
 0xa07   : > { %6407 = vmatpush3.xpose.msk.msra.mxu1 %vm2194_vm6, %v3406_v37  ;;  %6408 = vmatprep.mubr.msk.f32.mxu1 %vm6710_vm5, %v8239_v59 }
 0xa08   : > { %6416 = vmatprep.subr.mxu1 %v8239_v59 }
 0xa09   : > { %v6621_v44 = vpop.eup %6620 }
 0xa0a   : > { %v3248_v49 = vmul.f32 %v6621_v44, %v6617_v24  ;;  %6409 = vmatmul.mubr.msk.f32.vlgmr.msra.gmra.mrb[14].mxu1 %vm2194_vm6, %v3404_v45 }
 0xa0b   : > { %6418 = vmatprep.mubr.msk.f32.mxu1 %vm6710_vm5, %v8239_v59 }
 0xa0c   : > { %6404 = vmatmul.mubr.msk.f32.vlgmr.msra.gmra.mrb[12].mxu0 %vm2533_vm8, %v3248_v49 }
 0xa0d   : > { %6412 = vmatpush3.xpose.msk.msra.mxu0 %vm2194_vm6, %v3484_v54  ;;  %6413 = vmatprep.mubr.msk.f32.mxu0 %vm6710_vm5, %v8239_v59 }
 0xa0e   : > { %6421 = vmatprep.subr.mxu0 %v8239_v59 }
 0xa10   : > { %6414 = vmatmul.mubr.msk.f32.vlgmr.msra.gmra.mrb[14].mxu0 %vm2194_vm6, %v3482_v16 }
 0xa11   : > { %6423 = vmatprep.mubr.msk.f32.mxu0 %vm6710_vm5, %v8239_v59 }
 0xad9   : > { %v7690_v1 = vpop.f32.mrb[12].mxu1 }
 0xada   : > { %v6400_v27 = vpop.f32.mrb[13].mxu1 }
 0xadd   : > { %v3477_v62 = vpop.f32.mrb[14].mxu1 }
 0xade   : > { %v6410_v57 = vpop.f32.mrb[15].mxu1  ;;  %v3559_v58 = vsel %vm2455_vm7, %v3477_v62, -inf }
 0xadf   : > { %v7693_v55 = vpop.f32.mrb[12].mxu0  ;;  %3560 = vmax.xlane.f32.xlu1 %v3559_v58 }
 0xae0   : > { %v6405_v50 = vpop.f32.mrb[13].mxu0 }
 0xae3   : > { %v3555_v4 = vpop.f32.mrb[14].mxu0 }
 0xae4   : > { %v6415_v48 = vpop.f32.mrb[15].mxu0  ;;  %v3562_v6 = vsel %vm2455_vm7, %v3555_v4, -inf }
 0xae5   : > { %3563 = vmax.xlane.f32.xlu0 %v3562_v6 }
 0xaf0   : > { %3658 = vrot.lane.b32.xlu1 %v7587_v40, %s6716_s22 }
 0xaf4   : > { %3737 = vrot.lane.b32.xlu1 %v7284_v11, %s6717_s23 }
 0xafb   : > { %3581 = vrot.lane.b32.xlu0 %v7576_v15, %s6716_s22 }
 0xaff   : > { %3815 = vrot.lane.b32.xlu0 %v7301_v7, %s6717_s23 }
 0xb6c   : > { %v3561_v2 = vpop.xlane.xlu1 %3560 }
 0xb6d   : > { %v3565_v25 = vsub.f32 %v3477_v62, %v3561_v2 }
 0xb6f   : > { %v3567_v26 = vmul.f32 1.442695, %v3565_v25 }
 0xb70   : > { %v3659_v13 = vpop.permute.xlu1 %3658 }
 0xb71   : > { %6622 = vpow2.f32 %v3567_v26  ;;  %6422 = vmatpush3.msk.msra.mxu0 %vm589_vm4, %v3659_v13 }
 0xb72   : > { %v3564_v52 = vpop.xlane.xlu0 %3563  ;;  %6431 = vmatprep.subr.mxu0 %v8239_v59 }
 0xb73   : > { %v3566_v17 = vsub.f32 %v3555_v4, %v3564_v52 }
 0xb74   : > { %v3738_v35 = vpop.permute.xlu1 %3737 }
 0xb75   : > { %v3569_v38 = vmul.f32 1.442695, %v3566_v17 }
 0xb76   : > { %v3582_v33 = vpop.permute.xlu0 %3581 }
 0xb77   : > { %6624 = vpow2.f32 %v3569_v38  ;;  %6417 = vmatpush3.msk.msra.mxu1 %vm589_vm4, %v3582_v33 }
 0xb78   : > { %6426 = vmatprep.subr.mxu1 %v8239_v59 }
 0xb7a   : > { %v3816_v39 = vpop.permute.xlu0 %3815 }
 0xb7b   : > { %v6623_v30 = vpop.eup %6622 }
 0xb7c   : > { %v3571_v9 = vsel %vm2455_vm7, %v6623_v30, 0.0 }
 0xb7d   : > { %3572 = vadd.xlane.f32.xlu0 %v3571_v9 }
 0xb81   : > { %v6625_v47 = vpop.eup %6624 }
 0xb82   : > { %v3574_v34 = vsel %vm2455_vm7, %v6625_v47, 0.0 }
 0xb83   : > { %3575 = vadd.xlane.f32.xlu1 %v3574_v34 }
 0xb93   : > { %3813 = vrot.lane.b32.xlu0 %v7419_v53, %s6718_s24 }
 0xb94   : > { %3735 = vrot.lane.b32.xlu1 %v7409_v46, %s6718_s24 }
 0xc0a   : > { %v3573_v60 = vpop.xlane.xlu0 %3572 }
 0xc0b   : > { %6626 = vrcp.f32 %v3573_v60 }
 0xc0e   : > { %v3814_v14 = vpop.permute.xlu0 %3813 }
 0xc10   : > { %v3576_v36 = vpop.xlane.xlu1 %3575 }
 0xc11   : > { %6628 = vrcp.f32 %v3576_v36 }
 0xc14   : > { %v3736_v21 = vpop.permute.xlu1 %3735 }
 0xc15   : > { %v6627_v28 = vpop.eup %6626 }
 0xc16   : > { %v3579_v56 = vmul.f32 %v6627_v28, %v6623_v30 }
 0xc18   : > { %6419 = vmatmul.mubr.msk.f32.vlgmr.msra.gmra.mrb[16].mxu1 %vm2533_vm8, %v3579_v56 }
 0xc19   : > { %6427 = vmatpush3.xpose.msk.msra.mxu1 %vm2194_vm6, %v3738_v35  ;;  %6428 = vmatprep.mubr.msk.f32.mxu1 %vm6710_vm5, %v8239_v59 }
 0xc1a   : > { %6436 = vmatprep.subr.mxu1 %v8239_v59 }
 0xc1b   : > { %v6629_v43 = vpop.eup %6628 }
 0xc1c   : > { %v3580_v3 = vmul.f32 %v6629_v43, %v6625_v47  ;;  %6429 = vmatmul.mubr.msk.f32.vlgmr.msra.gmra.mrb[18].mxu1 %vm2194_vm6, %v3736_v21 }
 0xc1d   : > { %6438 = vmatprep.mubr.msk.f32.mxu1 %vm6710_vm5, %v8239_v59 }
 0xc1e   : > { %6424 = vmatmul.mubr.msk.f32.vlgmr.msra.gmra.mrb[16].mxu0 %vm2533_vm8, %v3580_v3 }
 0xc1f   : > { %6432 = vmatpush3.xpose.msk.msra.mxu0 %vm2194_vm6, %v3816_v39  ;;  %6433 = vmatprep.mubr.msk.f32.mxu0 %vm6710_vm5, %v8239_v59 }
 0xc20   : > { %6441 = vmatprep.subr.mxu0 %v8239_v59 }
 0xc22   : > { %6434 = vmatmul.mubr.msk.f32.vlgmr.msra.gmra.mrb[18].mxu0 %vm2194_vm6, %v3814_v14 }
 0xc23   : > { %6443 = vmatprep.mubr.msk.f32.mxu0 %vm6710_vm5, %v8239_v59 }
 0xceb   : > { %v7730_v10 = vpop.f32.mrb[16].mxu1 }
 0xcec   : > { %v6420_v41 = vpop.f32.mrb[17].mxu1 }
 0xcef   : > { %v3809_v18 = vpop.f32.mrb[18].mxu1 }
 0xcf0   : > { %v6430_v23 = vpop.f32.mrb[19].mxu1  ;;  %v3891_v51 = vsel %vm2455_vm7, %v3809_v18, -inf }
 0xcf1   : > { %v7733_v0 = vpop.f32.mrb[16].mxu0  ;;  %3892 = vmax.xlane.f32.xlu1 %v3891_v51 }
 0xcf2   : > { %v6425_v29 = vpop.f32.mrb[17].mxu0 }
 0xcf5   : > { %v3887_v12 = vpop.f32.mrb[18].mxu0 }
 0xcf6   : > { %v6435_v24 = vpop.f32.mrb[19].mxu0  ;;  %v3894_v20 = vsel %vm2455_vm7, %v3887_v12, -inf }
 0xcf7   : > { %3895 = vmax.xlane.f32.xlu0 %v3894_v20 }
 0xd02   : > { %3990 = vrot.lane.b32.xlu1 %v7587_v40, %s6718_s24 }
 0xd06   : > { %4069 = vrot.lane.b32.xlu1 %v7284_v11, %s6719_s25 }
 0xd0d   : > { %3913 = vrot.lane.b32.xlu0 %v7576_v15, %s6718_s24 }
 0xd11   : > { %4147 = vrot.lane.b32.xlu0 %v7301_v7, %s6719_s25 }
 0xd7e   : > { %v3893_v54 = vpop.xlane.xlu1 %3892 }
 0xd7f   : > { %v3897_v19 = vsub.f32 %v3809_v18, %v3893_v54 }
 0xd81   : > { %v3899_v37 = vmul.f32 1.442695, %v3897_v19 }
 0xd82   : > { %v3991_v63 = vpop.permute.xlu1 %3990 }
 0xd83   : > { %6630 = vpow2.f32 %v3899_v37  ;;  %6442 = vmatpush3.msk.msra.mxu0 %vm589_vm4, %v3991_v63 }
 0xd84   : > { %v3896_v42 = vpop.xlane.xlu0 %3895  ;;  %6451 = vmatprep.subr.mxu0 %v8239_v59 }
 0xd85   : > { %v3898_v5 = vsub.f32 %v3887_v12, %v3896_v42 }
 0xd86   : > { %v4070_v50 = vpop.permute.xlu1 %4069 }
 0xd87   : > { %v3901_v44 = vmul.f32 1.442695, %v3898_v5 }
 0xd88   : > { %v3914_v45 = vpop.permute.xlu0 %3913 }
 0xd89   : > { %6632 = vpow2.f32 %v3901_v44  ;;  %6437 = vmatpush3.msk.msra.mxu1 %vm589_vm4, %v3914_v45 }
 0xd8a   : > { %6446 = vmatprep.subr.mxu1 %v8239_v59 }
 0xd8c   : > { %v4148_v57 = vpop.permute.xlu0 %4147 }
 0xd8d   : > { %v6631_v49 = vpop.eup %6630 }
 0xd8e   : > { %v3903_v16 = vsel %vm2455_vm7, %v6631_v49, 0.0 }
 0xd8f   : > { %3904 = vadd.xlane.f32.xlu0 %v3903_v16 }
 0xd93   : > { %v6633_v27 = vpop.eup %6632 }
 0xd94   : > { %v3906_v62 = vsel %vm2455_vm7, %v6633_v27, 0.0 }
 0xd95   : > { %3907 = vadd.xlane.f32.xlu1 %v3906_v62 }
 0xda5   : > { %4145 = vrot.lane.b32.xlu0 %v7419_v53, %s6720_s26 }
 0xda6   : > { %4067 = vrot.lane.b32.xlu1 %v7409_v46, %s6720_s26 }
 0xe1c   : > { %v3905_v58 = vpop.xlane.xlu0 %3904 }
 0xe1d   : > { %6634 = vrcp.f32 %v3905_v58 }
 0xe20   : > { %v4146_v13 = vpop.permute.xlu0 %4145 }
 0xe22   : > { %v3908_v4 = vpop.xlane.xlu1 %3907 }
 0xe23   : > { %6636 = vrcp.f32 %v3908_v4 }
 0xe26   : > { %v4068_v25 = vpop.permute.xlu1 %4067 }
 0xe27   : > { %v6635_v48 = vpop.eup %6634 }
 0xe28   : > { %v3911_v6 = vmul.f32 %v6635_v48, %v6631_v49 }
 0xe2a   : > { %6439 = vmatmul.mubr.msk.f32.vlgmr.msra.gmra.mrb[20].mxu1 %vm2533_vm8, %v3911_v6 }
 0xe2b   : > { %6447 = vmatpush3.xpose.msk.msra.mxu1 %vm2194_vm6, %v4070_v50  ;;  %6448 = vmatprep.mubr.msk.f32.mxu1 %vm6710_vm5, %v8239_v59 }
 0xe2c   : > { %6456 = vmatprep.subr.mxu1 %v8239_v59 }
 0xe2d   : > { %v6637_v2 = vpop.eup %6636 }
 0xe2e   : > { %v3912_v26 = vmul.f32 %v6637_v2, %v6633_v27  ;;  %6449 = vmatmul.mubr.msk.f32.vlgmr.msra.gmra.mrb[22].mxu1 %vm2194_vm6, %v4068_v25 }
 0xe2f   : > { %6458 = vmatprep.mubr.msk.f32.mxu1 %vm6710_vm5, %v8239_v59 }
 0xe30   : > { %6444 = vmatmul.mubr.msk.f32.vlgmr.msra.gmra.mrb[20].mxu0 %vm2533_vm8, %v3912_v26 }
 0xe31   : > { %6452 = vmatpush3.xpose.msk.msra.mxu0 %vm2194_vm6, %v4148_v57  ;;  %6453 = vmatprep.mubr.msk.f32.mxu0 %vm6710_vm5, %v8239_v59 }
 0xe32   : > { %6461 = vmatprep.subr.mxu0 %v8239_v59 }
 0xe34   : > { %6454 = vmatmul.mubr.msk.f32.vlgmr.msra.gmra.mrb[22].mxu0 %vm2194_vm6, %v4146_v13 }
 0xe35   : > { %6463 = vmatprep.mubr.msk.f32.mxu0 %vm6710_vm5, %v8239_v59 }
 0xefd   : > { %v7770_v52 = vpop.f32.mrb[20].mxu1 }
 0xefe   : > { %v6440_v17 = vpop.f32.mrb[21].mxu1 }
 0xf01   : > { %v4141_v38 = vpop.f32.mrb[22].mxu1 }
 0xf02   : > { %v6450_v33 = vpop.f32.mrb[23].mxu1  ;;  %v4223_v30 = vsel %vm2455_vm7, %v4141_v38, -inf }
 0xf03   : > { %v7773_v9 = vpop.f32.mrb[20].mxu0  ;;  %4224 = vmax.xlane.f32.xlu1 %v4223_v30 }
 0xf04   : > { %v6445_v47 = vpop.f32.mrb[21].mxu0 }
 0xf07   : > { %v4219_v34 = vpop.f32.mrb[22].mxu0 }
 0xf08   : > { %v6455_v39 = vpop.f32.mrb[23].mxu0  ;;  %v4226_v60 = vsel %vm2455_vm7, %v4219_v34, -inf }
 0xf09   : > { %4227 = vmax.xlane.f32.xlu0 %v4226_v60 }
 0xf14   : > { %4322 = vrot.lane.b32.xlu1 %v7587_v40, %s6720_s26 }
 0xf18   : > { %4401 = vrot.lane.b32.xlu1 %v7284_v11, %s6721_s27 }
 0xf1f   : > { %4245 = vrot.lane.b32.xlu0 %v7576_v15, %s6720_s26 }
 0xf23   : > { %4479 = vrot.lane.b32.xlu0 %v7301_v7, %s6721_s27 }
 0xf90   : > { %v4225_v35 = vpop.xlane.xlu1 %4224 }
 0xf91   : > { %v4229_v36 = vsub.f32 %v4141_v38, %v4225_v35 }
 0xf93   : > { %v4231_v28 = vmul.f32 1.442695, %v4229_v36 }
 0xf94   : > { %v4323_v56 = vpop.permute.xlu1 %4322 }
 0xf95   : > { %6638 = vpow2.f32 %v4231_v28  ;;  %6462 = vmatpush3.msk.msra.mxu0 %vm589_vm4, %v4323_v56 }
 0xf96   : > { %v4228_v43 = vpop.xlane.xlu0 %4227  ;;  %6471 = vmatprep.subr.mxu0 %v8239_v59 }
 0xf97   : > { %v4230_v21 = vsub.f32 %v4219_v34, %v4228_v43 }
 0xf98   : > { %v4402_v24 = vpop.permute.xlu1 %4401 }
 0xf99   : > { %v4233_v3 = vmul.f32 1.442695, %v4230_v21 }
 0xf9a   : > { %v4246_v14 = vpop.permute.xlu0 %4245 }
 0xf9b   : > { %6640 = vpow2.f32 %v4233_v3  ;;  %6457 = vmatpush3.msk.msra.mxu1 %vm589_vm4, %v4246_v14 }
 0xf9c   : > { %6466 = vmatprep.subr.mxu1 %v8239_v59 }
 0xf9e   : > { %v4480_v29 = vpop.permute.xlu0 %4479 }
 0xf9f   : > { %v6639_v41 = vpop.eup %6638 }
 0xfa0   : > { %v4235_v18 = vsel %vm2455_vm7, %v6639_v41, 0.0 }
 0xfa1   : > { %4236 = vadd.xlane.f32.xlu0 %v4235_v18 }
 0xfa5   : > { %v6641_v23 = vpop.eup %6640 }
 0xfa6   : > { %v4238_v51 = vsel %vm2455_vm7, %v6641_v23, 0.0 }
 0xfa7   : > { %4239 = vadd.xlane.f32.xlu1 %v4238_v51 }
 0xfb7   : > { %4477 = vrot.lane.b32.xlu0 %v7419_v53, %s6722_s29 }
 0xfb8   : > { %4399 = vrot.lane.b32.xlu1 %v7409_v46, %s6722_s29 }
0x102e   : > { %v4237_v12 = vpop.xlane.xlu0 %4236 }
0x102f   : > { %6642 = vrcp.f32 %v4237_v12 }
0x1032   : > { %v4478_v5 = vpop.permute.xlu0 %4477 }
0x1034   : > { %v4240_v20 = vpop.xlane.xlu1 %4239 }
0x1035   : > { %6644 = vrcp.f32 %v4240_v20 }
0x1038   : > { %v4400_v63 = vpop.permute.xlu1 %4399 }
0x1039   : > { %v6643_v54 = vpop.eup %6642 }
0x103a   : > { %v4243_v19 = vmul.f32 %v6643_v54, %v6639_v41 }
0x103c   : > { %6459 = vmatmul.mubr.msk.f32.vlgmr.msra.gmra.mrb[24].mxu1 %vm2533_vm8, %v4243_v19 }
0x103d   : > { %6467 = vmatpush3.xpose.msk.msra.mxu1 %vm2194_vm6, %v4402_v24  ;;  %6468 = vmatprep.mubr.msk.f32.mxu1 %vm6710_vm5, %v8239_v59 }
0x103e   : > { %6476 = vmatprep.subr.mxu1 %v8239_v59 }
0x103f   : > { %v6645_v37 = vpop.eup %6644 }
0x1040   : > { %v4244_v42 = vmul.f32 %v6645_v37, %v6641_v23  ;;  %6469 = vmatmul.mubr.msk.f32.vlgmr.msra.gmra.mrb[26].mxu1 %vm2194_vm6, %v4400_v63 }
0x1041   : > { %6478 = vmatprep.mubr.msk.f32.mxu1 %vm6710_vm5, %v8239_v59 }
0x1042   : > { %6464 = vmatmul.mubr.msk.f32.vlgmr.msra.gmra.mrb[24].mxu0 %vm2533_vm8, %v4244_v42 }
0x1043   : > { %6472 = vmatpush3.xpose.msk.msra.mxu0 %vm2194_vm6, %v4480_v29  ;;  %6473 = vmatprep.mubr.msk.f32.mxu0 %vm6710_vm5, %v8239_v59 }
0x1044   : > { %6481 = vmatprep.subr.mxu0 %v8239_v59 }
0x1046   : > { %6474 = vmatmul.mubr.msk.f32.vlgmr.msra.gmra.mrb[26].mxu0 %vm2194_vm6, %v4478_v5 }
0x1047   : > { %6483 = vmatprep.mubr.msk.f32.mxu0 %vm6710_vm5, %v8239_v59 }
0x110f   : > { %v7810_v44 = vpop.f32.mrb[24].mxu1 }
0x1110   : > { %v6460_v45 = vpop.f32.mrb[25].mxu1 }
0x1113   : > { %v4473_v49 = vpop.f32.mrb[26].mxu1 }
0x1114   : > { %v6470_v16 = vpop.f32.mrb[27].mxu1  ;;  %v4555_v27 = vsel %vm2455_vm7, %v4473_v49, -inf }
0x1115   : > { %v7813_v62 = vpop.f32.mrb[24].mxu0  ;;  %4556 = vmax.xlane.f32.xlu1 %v4555_v27 }
0x1116   : > { %v6465_v57 = vpop.f32.mrb[25].mxu0 }
0x1119   : > { %v4551_v58 = vpop.f32.mrb[26].mxu0 }
0x111a   : > { %v6475_v50 = vpop.f32.mrb[27].mxu0  ;;  %v4558_v4 = vsel %vm2455_vm7, %v4551_v58, -inf }
0x111b   : > { %4559 = vmax.xlane.f32.xlu0 %v4558_v4 }
0x1126   : > { %4654 = vrot.lane.b32.xlu1 %v7587_v40, %s6722_s29 }
0x112a   : > { %4733 = vrot.lane.b32.xlu1 %v7284_v11, %s6723_s30 }
0x1131   : > { %4577 = vrot.lane.b32.xlu0 %v7576_v15, %s6722_s29 }
0x1135   : > { %4811 = vrot.lane.b32.xlu0 %v7301_v7, %s6723_s30 }
0x11a2   : > { %v4557_v48 = vpop.xlane.xlu1 %4556 }
0x11a3   : > { %v4561_v6 = vsub.f32 %v4473_v49, %v4557_v48 }
0x11a5   : > { %v4563_v2 = vmul.f32 1.442695, %v4561_v6 }
0x11a6   : > { %v4655_v25 = vpop.permute.xlu1 %4654 }
0x11a7   : > { %6646 = vpow2.f32 %v4563_v2  ;;  %6482 = vmatpush3.msk.msra.mxu0 %vm589_vm4, %v4655_v25 }
0x11a8   : > { %v4560_v26 = vpop.xlane.xlu0 %4559  ;;  %6491 = vmatprep.subr.mxu0 %v8239_v59 }
0x11a9   : > { %v4562_v13 = vsub.f32 %v4551_v58, %v4560_v26 }
0x11aa   : > { %v4734_v39 = vpop.permute.xlu1 %4733 }
0x11ab   : > { %v4565_v17 = vmul.f32 1.442695, %v4562_v13 }
0x11ac   : > { %v4578_v38 = vpop.permute.xlu0 %4577 }
0x11ad   : > { %6648 = vpow2.f32 %v4565_v17  ;;  %6477 = vmatpush3.msk.msra.mxu1 %vm589_vm4, %v4578_v38 }
0x11ae   : > { %6486 = vmatprep.subr.mxu1 %v8239_v59 }
0x11b0   : > { %v4812_v47 = vpop.permute.xlu0 %4811 }
0x11b1   : > { %v6647_v11 = vpop.eup %6646 }
0x11b2   : > { %v4567_v7 = vsel %vm2455_vm7, %v6647_v11, 0.0 }
0x11b3   : > { %4568 = vadd.xlane.f32.xlu0 %v4567_v7 }
0x11b7   : > { %v6649_v33 = vpop.eup %6648 }
0x11b8   : > { %v4570_v30 = vsel %vm2455_vm7, %v6649_v33, 0.0 }
0x11b9   : > { %4571 = vadd.xlane.f32.xlu1 %v4570_v30 }
0x11c9   : > { %4809 = vrot.lane.b32.xlu0 %v7419_v53, %s6724_s7 }
0x11ca   : > { %4731 = vrot.lane.b32.xlu1 %v7409_v46, %s6724_s7 }
0x1240   : > { %v4569_v34 = vpop.xlane.xlu0 %4568 }
0x1241   : > { %6650 = vrcp.f32 %v4569_v34 }
0x1244   : > { %v4810_v56 = vpop.permute.xlu0 %4809 }
0x1246   : > { %v4572_v60 = vpop.xlane.xlu1 %4571 }
0x1247   : > { %6652 = vrcp.f32 %v4572_v60 }
0x124a   : > { %v4732_v28 = vpop.permute.xlu1 %4731 }
0x124b   : > { %v6651_v35 = vpop.eup %6650 }
0x124c   : > { %v4575_v36 = vmul.f32 %v6651_v35, %v6647_v11 }
0x124e   : > { %6479 = vmatmul.mubr.msk.f32.vlgmr.msra.gmra.mrb[28].mxu1 %vm2533_vm8, %v4575_v36 }
0x124f   : > { %6487 = vmatpush3.xpose.msk.msra.mxu1 %vm2194_vm6, %v4734_v39  ;;  %6488 = vmatprep.mubr.msk.f32.mxu1 %vm6710_vm5, %v8239_v59 }
0x1250   : > { %6496 = vmatprep.subr.mxu1 %v8239_v59 }
0x1251   : > { %v6653_v53 = vpop.eup %6652 }
0x1252   : > { %v4576_v46 = vmul.f32 %v6653_v53, %v6649_v33  ;;  %6489 = vmatmul.mubr.msk.f32.vlgmr.msra.gmra.mrb[30].mxu1 %vm2194_vm6, %v4732_v28 }
0x1253   : > { %6498 = vmatprep.mubr.msk.f32.mxu1 %vm6710_vm5, %v8239_v59 }
0x1254   : > { %6484 = vmatmul.mubr.msk.f32.vlgmr.msra.gmra.mrb[28].mxu0 %vm2533_vm8, %v4576_v46 }
0x1255   : > { %6492 = vmatpush3.xpose.msk.msra.mxu0 %vm2194_vm6, %v4812_v47  ;;  %6493 = vmatprep.mubr.msk.f32.mxu0 %vm6710_vm5, %v8239_v59 }
0x1256   : > { %6501 = vmatprep.subr.mxu0 %v8239_v59 }
0x1258   : > { %6494 = vmatmul.mubr.msk.f32.vlgmr.msra.gmra.mrb[30].mxu0 %vm2194_vm6, %v4810_v56 }
0x1259   : > { %6503 = vmatprep.mubr.msk.f32.mxu0 %vm6710_vm5, %v8239_v59 }
0x1321   : > { %v4650_v43 = vpop.f32.mrb[28].mxu1 }
0x1322   : > { %v6480_v21 = vpop.f32.mrb[29].mxu1 }
0x1325   : > { %v4805_v3 = vpop.f32.mrb[30].mxu1 }
0x1326   : > { %v6490_v14 = vpop.f32.mrb[31].mxu1  ;;  %v4887_v41 = vsel %vm2455_vm7, %v4805_v3, -inf }
0x1327   : > { %v4727_v18 = vpop.f32.mrb[28].mxu0  ;;  %4888 = vmax.xlane.f32.xlu1 %v4887_v41 }
0x1328   : > { %v6485_v23 = vpop.f32.mrb[29].mxu0 }
0x132b   : > { %v4883_v51 = vpop.f32.mrb[30].mxu0 }
0x132c   : > { %v6495_v29 = vpop.f32.mrb[31].mxu0  ;;  %v4890_v12 = vsel %vm2455_vm7, %v4883_v51, -inf }
0x132d   : > { %4891 = vmax.xlane.f32.xlu0 %v4890_v12 }
0x13b4   : > { %v4889_v24 = vpop.xlane.xlu1 %4888 }
0x13b5   : > { %v4893_v20 = vsub.f32 %v4805_v3, %v4889_v24 }
0x13b7   : > { %v4895_v54 = vmul.f32 1.442695, %v4893_v20 }
0x13b9   : > { %6654 = vpow2.f32 %v4895_v54 }
0x13ba   : > { %v4892_v19 = vpop.xlane.xlu0 %4891 }
0x13bb   : > { %v4894_v37 = vsub.f32 %v4883_v51, %v4892_v19 }
0x13bd   : > { %v4897_v63 = vmul.f32 1.442695, %v4894_v37 }
0x13bf   : > { %6656 = vpow2.f32 %v4897_v63 }
0x13c3   : > { %v6655_v42 = vpop.eup %6654 }
0x13c4   : > { %v4899_v5 = vsel %vm2455_vm7, %v6655_v42, 0.0 }
0x13c5   : > { %4900 = vadd.xlane.f32.xlu0 %v4899_v5 }
0x13c9   : > { %v6657_v45 = vpop.eup %6656 }
0x13ca   : > { %v4902_v49 = vsel %vm2455_vm7, %v6657_v45, 0.0 }
0x13cb   : > { %4903 = vadd.xlane.f32.xlu1 %v4902_v49 }
0x13db   : > { %4909 = vrot.lane.b32.xlu0 %v7576_v15, %s6724_s7 }
0x13dc   : > { %4986 = vrot.lane.b32.xlu1 %v7587_v40, %s6724_s7 }
0x13df   : > { %5067 = vrot.lane.b32.xlu0 %v7653_v31, %s6723_s30 }
0x13e0   : > { %5065 = vrot.lane.b32.xlu1 %v7650_v8, %s6723_s30 }
0x13e3   : > { %5075 = vrot.lane.b32.xlu0 %v7693_v55, %s6721_s27 }
0x13e4   : > { %5073 = vrot.lane.b32.xlu1 %v7690_v1, %s6721_s27 }
0x13e7   : > { %5083 = vrot.lane.b32.xlu0 %v7733_v0, %s6719_s25 }
0x13e8   : > { %5081 = vrot.lane.b32.xlu1 %v7730_v10, %s6719_s25 }
0x13eb   : > { %5091 = vrot.lane.b32.xlu0 %v7773_v9, %s6717_s23 }
0x13ec   : > { %5089 = vrot.lane.b32.xlu1 %v7770_v52, %s6717_s23 }
0x13ef   : > { %5099 = vrot.lane.b32.xlu0 %v7813_v62, %s6715_s21 }
0x13f0   : > { %5097 = vrot.lane.b32.xlu1 %v7810_v44, %s6715_s21 }
0x13f3   : > { %5107 = vrot.lane.b32.xlu0 %v4727_v18, %s6713_s17 }
0x13f4   : > { %5105 = vrot.lane.b32.xlu1 %v4650_v43, %s6713_s17 }
0x1452   : > { %v4901_v15 = vpop.xlane.xlu0 %4900 }
0x1453   : > { %6658 = vrcp.f32 %v4901_v15 }
0x1456   : > { %v4910_v40 = vpop.permute.xlu0 %4909 }
0x1457   : > { %6497 = vmatpush3.msk.msra.mxu1 %vm589_vm4, %v4910_v40 }
0x1458   : > { %v4904_v8 = vpop.xlane.xlu1 %4903  ;;  %6506 = vmatprep.subr.bf16.mxu1 %v8239_v59 }
0x1459   : > { %6660 = vrcp.f32 %v4904_v8 }
0x145a   : > { %v5068_v62 = vpop.permute.xlu0 %5067 }
0x145b   : > { %v5120_v47 = vsel %vm2194_vm6, %v7613_v61, %v5068_v62 }
0x145c   : > { %v4987_v31 = vpop.permute.xlu1 %4986 }
0x145d   : > { %v6659_v1 = vpop.eup %6658  ;;  %6502 = vmatpush3.msk.msra.mxu0 %vm589_vm4, %v4987_v31 }
0x145e   : > { %v4907_v55 = vmul.f32 %v6659_v1, %v6655_v42  ;;  %6518 = vmatprep.subr.bf16.mxu0 %v8239_v59  ;;  %v5076_v58 = vpop.permute.xlu0 %5075 }
0x145f   : > { %v5123_v34 = vsel %vm5121_vm9, %v5120_v47, %v5076_v58 }
0x1460   : > { %6499 = vmatmul.mubr.msk.f32.vlgmr.msra.gmra.mrb[32].mxu1 %vm2533_vm8, %v4907_v55  ;;  %v5066_v27 = vpop.permute.xlu1 %5065 }
0x1461   : > { %6514 = vmatprep.mubr.msk.bf16.mxu1 %vm6710_vm5, %v8239_v59  ;;  %v5119_v25 = vsel %vm2194_vm6, %v7610_v32, %v5066_v27 }
0x1462   : > { %v5084_v4 = vpop.permute.xlu0 %5083 }
0x1463   : > { %v6661_v10 = vpop.eup %6660  ;;  %v5126_v36 = vsel %vm5124_vm10, %v5123_v34, %v5084_v4 }
0x1464   : > { %v4908_v0 = vmul.f32 %v6661_v10, %v6657_v45  ;;  %v5074_v57 = vpop.permute.xlu1 %5073 }
0x1465   : > { %v5122_v26 = vsel %vm5121_vm9, %v5119_v25, %v5074_v57 }
0x1466   : > { %6504 = vmatmul.mubr.msk.f32.vlgmr.msra.gmra.mrb[32].mxu0 %vm2533_vm8, %v4908_v0  ;;  %v5092_v6 = vpop.permute.xlu0 %5091 }
0x1467   : > { %6526 = vmatprep.mubr.msk.bf16.mxu0 %vm6710_vm5, %v8239_v59  ;;  %v5128_v53 = vsel %vm316_vm2, %v5126_v36, %v5092_v6 }
0x1468   : > { %v5082_v50 = vpop.permute.xlu1 %5081 }
0x1469   : > { %v5125_v38 = vsel %vm5124_vm10, %v5122_v26, %v5082_v50 }
0x146a   : > { %v5100_v13 = vpop.permute.xlu0 %5099 }
0x146b   : > { %v5131_v56 = vsel %vm5129_vm11, %v5128_v53, %v5100_v13  ;;  %v8244_v53 = vld [vmem:[#allocation7_spill] sm:$0xff] }
0x146c   : > { %v5090_v48 = vpop.permute.xlu1 %5089 }
0x146d   : > { %v5127_v11 = vsel %vm316_vm2, %v5125_v38, %v5090_v48  ;;  %v8242_v38 = vld [vmem:[#allocation6_spill] sm:$0xff] }
0x146e   : > { %v5108_v39 = vpop.permute.xlu0 %5107  ;;  %v7980_v47 = vsub.s32 6, %v8242_v38 }
0x146f   : > { %v5134_v43 = vsel %vm5132_vm13, %v5131_v56, %v5108_v39 }
0x1470   : > { %v5098_v2 = vpop.permute.xlu1 %5097 }
0x1471   : > { %v5130_v7 = vsel %vm5129_vm11, %v5127_v11, %v5098_v2  ;;  %v7971_v11 = vsub.s32 3, %v8242_v38 }
0x1474   : > { %v5106_v17 = vpop.permute.xlu1 %5105 }
0x1475   : > { %v5133_v33 = vsel %vm5132_vm13, %v5130_v7, %v5106_v17 }
0x1533   : > { %v4982_v52 = vpop.f32.mrb[32].mxu1 }
0x1534   : > { %5113 = vrot.lane.b32.xlu1 %v4982_v52, %s6711_s15  ;;  %v6500_v9 = vpop.f32.mrb[33].mxu1 }
0x1539   : > { %v5059_v44 = vpop.f32.mrb[32].mxu0 }
0x153a   : > { %5115 = vrot.lane.b32.xlu0 %v5059_v44, %s6711_s15  ;;  %v6505_v16 = vpop.f32.mrb[33].mxu0 }
0x15a6   : > { %v5114_v30 = vpop.permute.xlu1 %5113 }
0x15a7   : > { %v5136_v32 = vsel %vm5135_vm12, %v5133_v33, %v5114_v30  ;;  %v7974_v33 = vsub.s32 4, %v8242_v38  ;;  %v7977_v30 = vsub.s32 5, %v8242_v38 }
0x15a8   : > { %v5140_v60 = vcombine.high %v5136_v32, %v5136_v32  ;;  %v5147_v35 = vrot.slane %v5136_v32, %v6812_v22  ;;  %v5383_v32 = vsub.s32 7, %v8242_v38 }
0x15aa   : > { %v5154_v28 = vrot.slane %v5140_v60, %v6812_v22  ;;  %v5155_v46 = vcombine.high %v5147_v35, %v5147_v35  ;;  %v7912_v41 = vrot.slane %v5147_v35, %v6812_v22  ;;  %v8243_v35 = vld [vmem:[#allocation8_spill] sm:$0xff] }
0x15ac   : > { %v5156_v21 = vcombine.high %v5154_v28, %v5154_v28  ;;  %v7906_v61 = vrot.slane %v5154_v28, %v6812_v22  ;;  %v7909_v3 = vrot.slane %v5155_v46, %v6812_v22  ;;  %v5116_v14 = vpop.permute.xlu0 %5115  ;;  %v5185_v39 = vcombine.high %v7912_v41, %v7912_v41  ;;  %v8245_v46 = vld [vmem:[#allocation11_spill] sm:$0xff] }
0x15ad   : > { %v5137_v18 = vsel %vm5135_vm12, %v5134_v43, %v5116_v14 }
0x15ae   : > { %v7916_v23 = vrot.slane %v5156_v21, %v6812_v22  ;;  %v5188_v51 = vcombine.high %v5137_v18, %v5137_v18  ;;  %v7920_v29 = vcombine.high %v7906_v61, %v7906_v61  ;;  %v5195_v12 = vrot.slane %v5137_v18, %v6812_v22 }
0x15af   : > { %v5250_v24 = vcombine.low %v7912_v41, %v7909_v3  ;;  %v6253_v20 = vcombine.high %v7912_v41, %v7909_v3  ;;  %v5187_v60 = vcombine.high %v7909_v3, %v7909_v3 }
0x15b0   : > { %v5252_v54 = vcombine.low %v7906_v61, %v7916_v23  ;;  %v5202_v19 = vrot.slane %v5188_v51, %v6812_v22  ;;  %v5203_v37 = vcombine.high %v5195_v12, %v5195_v12  ;;  %v5211_v63 = vrot.slane %v5195_v12, %v6812_v22 }
0x15b1   : > { %v5260_v42 = vrot.slane %v5250_v24, %v6812_v22  ;;  %v5267_v5 = vrot.slane %v6253_v20, %v6812_v22 }
0x15b2   : > { %v5204_v45 = vcombine.high %v5202_v19, %v5202_v19  ;;  %v7934_v49 = vrot.slane %v5202_v19, %v6812_v22  ;;  %v7937_v15 = vrot.slane %v5203_v37, %v6812_v22  ;;  %v7939_v40 = vcombine.high %v5211_v63, %v5211_v63 }
0x15b3   : > { %v5253_v8 = vcombine.low %v7920_v29, %v5211_v63  ;;  %v5274_v31 = vrot.slane %v5252_v54, %v6812_v22  ;;  %v5282_v10 = vcombine.low %v5260_v42, %v5267_v5 }
0x15b4   : > { %v7944_v1 = vrot.slane %v5204_v45, %v6812_v22  ;;  %v7948_v55 = vcombine.high %v7934_v49, %v7934_v49  ;;  %v7952_v0 = vcombine.high %v7937_v15, %v7937_v15  ;;  %v5299_v52 = vcombine.low %v7937_v15, %v7939_v40 }
0x15b5   : > { %v5281_v9 = vrot.slane %v5253_v8, %v6812_v22  ;;  %v5290_v62 = vrot.slane %v5282_v10, %v6812_v22 }
0x15b6   : > { %v5301_v44 = vcombine.low %v7944_v1, %v7948_v55  ;;  %v5300_v16 = vcombine.low %v7952_v0, %v7934_v49  ;;  %v5308_v58 = vrot.slane %v5299_v52, %v6812_v22 }
0x15b7   : > { %v5283_v27 = vcombine.low %v5274_v31, %v5281_v9 }
0x15b8   : > { %v5315_v50 = vrot.slane %v5300_v16, %v6812_v22  ;;  %v5322_v4 = vrot.slane %v5301_v44, %v6812_v22 }
0x15b9   : > { %v5297_v57 = vrot.slane %v5283_v27, %v6812_v22 }
0x15ba   : > { %v5323_v6 = vcombine.low %v5308_v58, %v5315_v50  ;;  %v5337_v26 = vrot.slane %v5322_v4, %v6812_v22 }
0x15bb   : > { %v5298_v48 = vcombine.low %v5290_v62, %v5297_v57 }
0x15bc   : > { %v5330_v25 = vrot.slane %v5323_v6, %v6812_v22 }
0x15bd   : > { %v5342_v2 = vsel %vm5341_vm14, %v5298_v48, 0.0 }
0x15be   : > { %5343 = vadd.xlane.f32.xlu1 %v5342_v2  ;;  %v5338_v13 = vcombine.low %v5330_v25, %v5337_v26 }
0x15c0   : > { %v5346_v17 = vsel %vm5345_vm15, %v5338_v13, 0.0 }
0x15c1   : > { %5347 = vadd.xlane.f32.xlu0 %v5346_v17 }
0x164b   : > { %v5344_v7 = vpop.xlane.xlu1 %5343 }
0x164c   : > { %v5349_v34 = vmul.f32 0.015625, %v5344_v7 }
0x164e   : > { %v5356_v36 = vrot.slane %v5349_v34, %v8243_v35  ;;  %v5360_v28 = vrot.slane %v5349_v34, %v8244_v53  ;;  %v5364_v56 = vrot.slane %v5349_v34, %v8245_v46  ;;  %v5368_v43 = vrot.slane %v5349_v34, %v7971_v11  ;;  %v5348_v21 = vpop.xlane.xlu0 %5347 }
0x164f   : > { %v5372_v14 = vrot.slane %v5349_v34, %v7974_v33  ;;  %v5376_v18 = vrot.slane %v5349_v34, %v7977_v30  ;;  %v5380_v51 = vrot.slane %v5349_v34, %v7980_v47  ;;  %v5384_v12 = vrot.slane %v5349_v34, %v5383_v32 }
0x1650   : > { %v5350_v24 = vmul.f32 0.015625, %v5348_v21  ;;  %v7997_v20 = vsub.f32 %v7912_v41, %v5356_v36  ;;  %v8000_v54 = vsub.f32 %v7909_v3, %v5360_v28  ;;  %v8002_v19 = vsub.f32 %v5185_v39, %v5364_v56 }
0x1651   : > { %v8004_v37 = vsub.f32 %v5187_v60, %v5368_v43  ;;  %v8007_v42 = vsub.f32 %v7906_v61, %v5372_v14  ;;  %v8010_v5 = vsub.f32 %v7916_v23, %v5376_v18  ;;  %v8013_v45 = vsub.f32 %v7920_v29, %v5380_v51 }
0x1652   : > { %v8015_v8 = vsub.f32 %v5211_v63, %v5384_v12  ;;  %v5437_v41 = vmul.f32 %v7997_v20, %v7997_v20  ;;  %v5438_v3 = vmul.f32 %v8000_v54, %v8000_v54  ;;  %v5439_v31 = vmul.f32 %v8002_v19, %v8002_v19 }
0x1653   : > { %v5440_v61 = vmul.f32 %v8004_v37, %v8004_v37  ;;  %v5441_v23 = vmul.f32 %v8007_v42, %v8007_v42  ;;  %v5442_v29 = vmul.f32 %v8010_v5, %v8010_v5  ;;  %v5443_v63 = vmul.f32 %v8013_v45, %v8013_v45 }
0x1654   : > { %v5444_v10 = vmul.f32 %v8015_v8, %v8015_v8  ;;  %v5465_v52 = vcombine.low %v5437_v41, %v5438_v3  ;;  %v5388_v9 = vrot.slane %v5350_v24, %v8243_v35  ;;  %v5392_v44 = vrot.slane %v5350_v24, %v8244_v53 }
0x1655   : > { %v5466_v16 = vcombine.low %v5439_v31, %v5440_v61  ;;  %v5467_v27 = vcombine.low %v5441_v23, %v5442_v29  ;;  %v5396_v62 = vrot.slane %v5350_v24, %v8245_v46  ;;  %v5400_v57 = vrot.slane %v5350_v24, %v7971_v11 }
0x1656   : > { %v5468_v58 = vcombine.low %v5443_v63, %v5444_v10  ;;  %v5475_v50 = vrot.slane %v5465_v52, %v6812_v22  ;;  %v5404_v4 = vrot.slane %v5350_v24, %v7974_v33  ;;  %v5408_v48 = vrot.slane %v5350_v24, %v7977_v30  ;;  %v6578_v63 = vld [vmem:[%s6775_s28] sm:$0xff]   ;;  %v6579_v10 = vld [vmem:[%s6775_s28 + $0x8] sm:$0xff]   ;;  %v6580_v52 = vld [vmem:[%s6775_s28 + $0x10] sm:$0xff]  }
0x1657   : > { %v5482_v6 = vrot.slane %v5466_v16, %v6812_v22  ;;  %v5489_v2 = vrot.slane %v5467_v27, %v6812_v22  ;;  %v8043_v25 = vsub.f32 %v7937_v15, %v5388_v9  ;;  %v8046_v26 = vsub.f32 %v7939_v40, %v5392_v44  ;;  %6507 = vmatpush3.bf16.msra.mxu1 %v6578_v63  ;;  %v6581_v9 = vld [vmem:[%s6775_s28 + $0x18] sm:$0xff]   ;;  %v6582_v44 = vld [vmem:[%s6780_s6] sm:$0xff]   ;;  %v6583_v16 = vld [vmem:[%s6780_s6 + $0x8] sm:$0xff]  }
0x1658   : > { %v5496_v13 = vrot.slane %v5468_v58, %v6812_v22  ;;  %v8050_v17 = vsub.f32 %v7952_v0, %v5396_v62  ;;  %v8053_v7 = vsub.f32 %v7934_v49, %v5400_v57  ;;  %v8056_v34 = vsub.f32 %v7944_v1, %v5404_v4  ;;  %6508 = vmatprep.subr.bf16.mxu1 %v8239_v59  ;;  %v8094_v27 = vld [vmem:[%s6785_s9] sm:$0xff] }
0x1659   : > { %v5497_v39 = vcombine.low %v5475_v50, %v5482_v6  ;;  %v8059_v60 = vsub.f32 %v7948_v55, %v5408_v48  ;;  %v5445_v15 = vmul.f32 %v8043_v25, %v8043_v25  ;;  %v5446_v40 = vmul.f32 %v8046_v26, %v8046_v26  ;;  %6519 = vmatpush3.bf16.msra.mxu0 %v6582_v44 }
0x165a   : > { %v5498_v36 = vcombine.low %v5489_v2, %v5496_v13  ;;  %v5447_v0 = vmul.f32 %v8050_v17, %v8050_v17  ;;  %v5448_v49 = vmul.f32 %v8053_v7, %v8053_v7  ;;  %v5449_v1 = vmul.f32 %v8056_v34, %v8056_v34  ;;  %6520 = vmatprep.subr.bf16.mxu0 %v8239_v59 }
0x165b   : > { %v5505_v28 = vrot.slane %v5497_v39, %v6812_v22  ;;  %v5450_v55 = vmul.f32 %v8059_v60, %v8059_v60  ;;  %v5514_v56 = vcombine.low %v5445_v15, %v5446_v40  ;;  %6509 = vmatpush3.bf16.msra.mxu1 %v6579_v10  ;;  %v5657_v62 = vrot.slane %v8094_v27, %v7971_v11 }
0x165c   : > { %v5512_v43 = vrot.slane %v5498_v36, %v6812_v22  ;;  %v5515_v21 = vcombine.low %v5447_v0, %v5448_v49  ;;  %6510 = vmatprep.subr.bf16.mxu1 %v8239_v59  ;;  %v5733_v57 = vrot.slane %v8094_v27, %v7974_v33 }
0x165d   : > { %v5516_v14 = vcombine.low %v5449_v1, %v5450_v55  ;;  %v5523_v18 = vrot.slane %v5514_v56, %v6812_v22  ;;  %6521 = vmatpush3.bf16.msra.mxu0 %v6583_v16  ;;  %v5659_v58 = vcombine.high %v5657_v62, %v5657_v62  ;;  %v5666_v6 = vrot.slane %v5657_v62, %v6812_v22 }
0x165e   : > { %v5513_v51 = vcombine.low %v5505_v28, %v5512_v43  ;;  %v5530_v12 = vrot.slane %v5515_v21, %v6812_v22  ;;  %6522 = vmatprep.subr.bf16.mxu0 %v8239_v59  ;;  %v5735_v50 = vcombine.high %v5733_v57, %v5733_v57  ;;  %v5742_v39 = vrot.slane %v5733_v57, %v6812_v22 }
0x165f   : > { %v5537_v24 = vrot.slane %v5516_v14, %v6812_v22  ;;  %6511 = vmatpush3.bf16.msra.mxu1 %v6580_v52  ;;  %v5673_v2 = vrot.slane %v5659_v58, %v6812_v22  ;;  %v5674_v36 = vcombine.high %v5666_v6, %v5666_v6  ;;  %v5682_v56 = vrot.slane %v5666_v6, %v6812_v22 }
0x1660   : > { %v5556_v41 = vsel %vm5341_vm14, %v5513_v51, 0.0  ;;  %v5538_v3 = vcombine.low %v5523_v18, %v5530_v12  ;;  %6512 = vmatprep.subr.bf16.mxu1 %v8239_v59  ;;  %v5749_v15 = vrot.slane %v5735_v50, %v6812_v22  ;;  %v5750_v1 = vcombine.high %v5742_v39, %v5742_v39 }
0x1661   : > { %5557 = vadd.xlane.f32.xlu0 %v5556_v41  ;;  %v5552_v61 = vrot.slane %v5537_v24, %v6812_v22  ;;  %v5675_v0 = vcombine.high %v5673_v2, %v5673_v2  ;;  %v5689_v43 = vrot.slane %v5673_v2, %v6812_v22  ;;  %v5696_v21 = vrot.slane %v5674_v36, %v6812_v22 }
0x1662   : > { %v5545_v31 = vrot.slane %v5538_v3, %v6812_v22  ;;  %v5751_v28 = vcombine.high %v5749_v15, %v5749_v15  ;;  %v8109_v18 = vrot.slane %v5742_v39, %v6812_v22  ;;  %v8112_v51 = vrot.slane %v5749_v15, %v6812_v22 }
0x1663   : > { %6513 = vmatpush3.bf16.msra.mxu1 %v6581_v9  ;;  %v5703_v14 = vrot.slane %v5675_v0, %v6812_v22  ;;  %v8115_v12 = vrot.slane %v5750_v1, %v6812_v22  ;;  %v5704_v41 = vcombine.high %v5682_v56, %v5682_v56  ;;  %v5705_v3 = vcombine.high %v5689_v43, %v5689_v43 }
0x1664   : > { %v5553_v23 = vcombine.low %v5545_v31, %v5552_v61  ;;  %v8118_v24 = vrot.slane %v5751_v28, %v6812_v22  ;;  %v5706_v31 = vcombine.high %v5696_v21, %v5696_v21  ;;  %v5781_v63 = vcombine.high %v8112_v51, %v8112_v51 }
0x1665   : > { %v5707_v61 = vcombine.high %v5703_v14, %v5703_v14  ;;  %v5782_v10 = vcombine.high %v8115_v12, %v8115_v12 }
0x1666   : > { %v5559_v29 = vsel %vm5345_vm15, %v5553_v23, 0.0  ;;  %v5783_v52 = vcombine.high %v8118_v24, %v8118_v24 }
0x1667   : > { %5560 = vadd.xlane.f32.xlu1 %v5559_v29  ;;  %v5780_v29 = vcombine.high %v8109_v18, %v8109_v18 }
0x16ee   : > { %v5558_v4 = vpop.xlane.xlu0 %5557 }
0x16ef   : > { %v5562_v48 = vmul.f32 0.015625, %v5558_v4 }
0x16f1   : > { %v5564_v13 = vadd.f32 1e-05, %v5562_v48 }
0x16f3   : > { %6662 = vrsqrt.f32 %v5564_v13 }
0x16f4   : > { %v5561_v40 = vpop.xlane.xlu1 %5560 }
0x16f5   : > { %v5563_v49 = vmul.f32 0.015625, %v5561_v40 }
0x16f7   : > { %v5565_v55 = vadd.f32 1e-05, %v5563_v49 }
0x16f9   : > { %6664 = vrsqrt.f32 %v5565_v55 }
0x16fd   : > { %v6663_v23 = vpop.eup %6662 }
0x16fe   : > { %v5573_v9 = vrot.slane %v6663_v23, %v8243_v35  ;;  %v5577_v44 = vrot.slane %v6663_v23, %v8244_v53  ;;  %v5581_v16 = vrot.slane %v6663_v23, %v8245_v46  ;;  %v5585_v62 = vrot.slane %v6663_v23, %v7971_v11 }
0x16ff   : > { %v5589_v57 = vrot.slane %v6663_v23, %v7974_v33  ;;  %v5593_v58 = vrot.slane %v6663_v23, %v7977_v30  ;;  %v5597_v50 = vrot.slane %v6663_v23, %v7980_v47  ;;  %v5601_v4 = vrot.slane %v6663_v23, %v5383_v32 }
0x1700   : > { %v5640_v48 = vmul.f32 %v5573_v9, %v7997_v20  ;;  %v5641_v6 = vmul.f32 %v5577_v44, %v8000_v54  ;;  %v5642_v2 = vmul.f32 %v5581_v16, %v8002_v19  ;;  %v5643_v13 = vmul.f32 %v5585_v62, %v8004_v37 }
0x1701   : > { %v5644_v39 = vmul.f32 %v5589_v57, %v8007_v42  ;;  %v5645_v15 = vmul.f32 %v5593_v58, %v8010_v5  ;;  %v5646_v40 = vmul.f32 %v5597_v50, %v8013_v45  ;;  %v5647_v36 = vmul.f32 %v5601_v4, %v8015_v8 }
0x1702   : > { %v5716_v0 = vmul.f32 %v5682_v56, %v5640_v48  ;;  %v5717_v49 = vmul.f32 %v5696_v21, %v5641_v6  ;;  %v5718_v38 = vmul.f32 %v5704_v41, %v5642_v2  ;;  %v5719_v32 = vmul.f32 %v5706_v31, %v5643_v13 }
0x1703   : > { %v6665_v1 = vpop.eup %6664  ;;  %v5720_v20 = vmul.f32 %v5689_v43, %v5644_v39  ;;  %v5721_v28 = vmul.f32 %v5703_v14, %v5645_v15  ;;  %v5722_v54 = vmul.f32 %v5705_v3, %v5646_v40  ;;  %v5723_v55 = vmul.f32 %v5707_v61, %v5647_v36 }
0x1704   : > { %v5605_v19 = vrot.slane %v6665_v1, %v8243_v35  ;;  %v5609_v37 = vrot.slane %v6665_v1, %v8244_v53  ;;  %v5613_v42 = vrot.slane %v6665_v1, %v8245_v46  ;;  %v5617_v5 = vrot.slane %v6665_v1, %v7971_v11 }
0x1705   : > { %v5621_v45 = vrot.slane %v6665_v1, %v7974_v33  ;;  %v5625_v8 = vrot.slane %v6665_v1, %v7977_v30  ;;  %v5792_v23 = vadd.f32 %v8109_v18, %v5716_v0  ;;  %v5793_v9 = vadd.f32 %v8115_v12, %v5717_v49 }
0x1706   : > { %v5648_v44 = vmul.f32 %v5605_v19, %v8043_v25  ;;  %v5649_v3 = vmul.f32 %v5609_v37, %v8046_v26  ;;  %v5650_v35 = vmul.f32 %v5613_v42, %v8050_v17  ;;  %v5651_v53 = vmul.f32 %v5617_v5, %v8053_v7 }
0x1707   : > { %v5652_v46 = vmul.f32 %v5621_v45, %v8056_v34  ;;  %v5653_v11 = vmul.f32 %v5625_v8, %v8059_v60  ;;  %v5794_v61 = vadd.f32 %v5780_v29, %v5718_v38  ;;  %v5795_v33 = vadd.f32 %v5782_v10, %v5719_v32 }
0x1708   : > { %v5724_v16 = vmul.f32 %v5682_v56, %v5648_v44  ;;  %v5725_v62 = vmul.f32 %v5696_v21, %v5649_v3  ;;  %v5726_v57 = vmul.f32 %v5704_v41, %v5650_v35  ;;  %v5727_v58 = vmul.f32 %v5706_v31, %v5651_v53 }
0x1709   : > { %v5728_v50 = vmul.f32 %v5689_v43, %v5652_v46  ;;  %v5729_v4 = vmul.f32 %v5703_v14, %v5653_v11  ;;  %v5796_v25 = vadd.f32 %v8112_v51, %v5720_v20  ;;  %v5797_v26 = vadd.f32 %v8118_v24, %v5721_v28  ;;  %v6584_v28 = vld [vmem:[%s6780_s6 + $0x10] sm:$0xff]  }
0x170a   : > { %v5798_v48 = vadd.f32 %v5781_v63, %v5722_v54  ;;  %v5799_v17 = vadd.f32 %v5783_v52, %v5723_v55  ;;  %v5800_v7 = vadd.f32 %v8109_v18, %v5724_v16  ;;  %v5801_v34 = vadd.f32 %v8115_v12, %v5725_v62  ;;  %6523 = vmatpush3.bf16.msra.mxu0 %v6584_v28  ;;  %v6585_v54 = vld [vmem:[%s6780_s6 + $0x18] sm:$0xff]  }
0x170b   : > { %v5802_v6 = vadd.f32 %v5780_v29, %v5726_v57  ;;  %v5803_v60 = vadd.f32 %v5782_v10, %v5727_v58  ;;  %v5804_v2 = vadd.f32 %v8112_v51, %v5728_v50  ;;  %v5805_v56 = vadd.f32 %v8118_v24, %v5729_v4  ;;  %6524 = vmatprep.subr.bf16.mxu0 %v8239_v59 }
0x170c   : > { %v5820_v21 = vcombine.low %v5792_v23, %v5793_v9  ;;  %v5821_v41 = vcombine.low %v5794_v61, %v5795_v33  ;;  %v5822_v43 = vcombine.low %v5796_v25, %v5797_v26  ;;  %v5823_v14 = vcombine.low %v5798_v48, %v5799_v17 }
0x170d   : > { %v5869_v31 = vcombine.low %v5800_v7, %v5801_v34  ;;  %v5870_v13 = vcombine.low %v5802_v6, %v5803_v60  ;;  %v5871_v39 = vcombine.low %v5804_v2, %v5805_v56  ;;  %v5923_v55 = vrot.slane %v8094_v27, %v7977_v30 }
0x170e   : > { %v5830_v63 = vrot.slane %v5820_v21, %v6812_v22  ;;  %v5837_v52 = vrot.slane %v5821_v41, %v6812_v22  ;;  %v5844_v18 = vrot.slane %v5822_v43, %v6812_v22  ;;  %v5851_v12 = vrot.slane %v5823_v14, %v6812_v22  ;;  %6525 = vmatpush3.bf16.msra.mxu0 %v6585_v54 }
0x170f   : > { %v5878_v51 = vrot.slane %v5869_v31, %v6812_v22  ;;  %v5885_v24 = vrot.slane %v5870_v13, %v6812_v22  ;;  %v5892_v29 = vrot.slane %v5871_v39, %v6812_v22  ;;  %v6006_v44 = vrot.slane %v8094_v27, %v7980_v47 }
0x1710   : > { %v5852_v10 = vcombine.low %v5830_v63, %v5837_v52  ;;  %v5853_v15 = vcombine.low %v5844_v18, %v5851_v12 }
0x1711   : > { %v5893_v40 = vcombine.low %v5878_v51, %v5885_v24  ;;  %v5907_v38 = vrot.slane %v5892_v29, %v6812_v22 }
0x1712   : > { %v5860_v36 = vrot.slane %v5852_v10, %v6812_v22  ;;  %v5867_v0 = vrot.slane %v5853_v15, %v6812_v22 }
0x1713   : > { %v5900_v49 = vrot.slane %v5893_v40, %v6812_v22 }
0x1714   : > { %v5868_v32 = vcombine.low %v5860_v36, %v5867_v0 }
0x1715   : > { %v5908_v1 = vcombine.low %v5900_v49, %v5907_v38 }
0x1717   : > { %v5911_v20 = vpack.c.bf16 %v5908_v1, %v5868_v32 }
0x1719   : > { %6515 = vmatmul.mubr.msk.bf16.vlgmr.msra.gmra.mrb[36].mxu1 %vm5341_vm14, %v5911_v20 }
0x17ec   : > { %v5985_v19 = vpop.f32.mrb[36].mxu1 }
0x17ed   : > { %v5986_v37 = vadd.f32 %v5985_v19, %v5923_v55  ;;  %v6516_v42 = vpop.f32.mrb[37].mxu1 }
0x17ee   : > { %v5988_v5 = vpop.f32.mrb[38].mxu1 }
0x17ef   : > { %v5989_v45 = vadd.f32 %v5988_v5, %v5923_v55  ;;  %v6517_v22 = vpop.f32.mrb[39].mxu1  ;;  %v5992_v8 = vmax.f32 %v5986_v37, 0.0 }
0x17f1   : > { %v5993_v23 = vmax.f32 %v5989_v45, 0.0 }
0x17f3   : > { %v5994_v9 = vpack.c.bf16 %v5993_v23, %v5992_v8 }
0x17f5   : > { %6527 = vmatmul.mubr.msk.bf16.vlgmr.msra.gmra.mrb[36].mxu0 %vm5341_vm14, %v5994_v9 }
0x18c7   : > { %6081 = sbr.rel (%p6264_p5) target bundleno = 6350 (0x18ce), region = 48 }
0x18c8   : > { %v6068_v59 = vpop.f32.mrb[36].mxu0 }
0x18c9   : > { %v6069_v3 = vadd.f32 %v6068_v59, %v6006_v44  ;;  %v6528_v35 = vpop.f32.mrb[37].mxu0 }
0x18ca   : > { %v6071_v53 = vpop.f32.mrb[38].mxu0 }
0x18cb   : > { %6075 = vst.msk [vmem:[#allocation2] sm:$0xff] %vm316_vm2, %v6069_v3  ;;  %v6072_v30 = vadd.f32 %v6071_v53, %v6006_v44  ;;  %v6529_v46 = vpop.f32.mrb[39].mxu0  ;;  %6082 = vst.msk [vmem:[#allocation3] sm:$0xff] (!%p6264_p5), %vm316_vm2, %v6069_v3 }
0x18cd   : > { %6077 = vst.msk [vmem:[#allocation2 + $0x8] sm:$0x3f] %vm6076_vm0, %v6072_v30  ;;  %6083 = vst.msk [vmem:[#allocation3 + $0x8] sm:$0x3f] (!%p6264_p5), %vm6076_vm0, %v6072_v30 }
0x18ce PF: > { %p6535_p6 = scmp.eq.s32.totalorder %s6763_s19, 1  ;;  %s6725_s28 = smov [#allocation3]  }
0x18cf   : > { %s6090_s6 = sshll.u32 %s6725_s28, 4  ;;  %s6091_s6 = int_to_ptr.vmem [resolvable:$true] %s6090_s6 }
0x18d0   : > { %s6668_s8 = scalar_lea.vmem %s6091_s6, 256  ;;  %p6675_p10 = scmp.lt.s32.totalorder %s6091_s6, %s6091_s6 }
0x18d1   : > { %p6669_p7 = scmp.ne.s32.totalorder %s6091_s6, %s6668_s8  ;;  %p6676_p11 = scmp.lt.s32.totalorder %s6668_s8, %s6668_s8 }
0x18d3   : > { %p6670_p8 = pnand %p6669_p7, %p6535_p6  ;;  %p6677_p12 = por %p6676_p11, %p6675_p10 }
0x18d5   : > { %p6671_p9 = pneg %p6670_p8 }
0x18d7   : > { %p6678_p13 = pnand %p6677_p12, %p6671_p9 }
0x18d9   : > { %6681 = shalt.err (!%p6678_p13)
}
0x18da   : > { %s6682_s11 = scalar_lea.hbm %s8220_s5, 256 }
0x18db   : > { %p6683_p0 = scmp.ne.s32.totalorder %s8220_s5, %s6682_s11  ;;  %p6688_p3 = scmp.lt.u32.totalorder %s6682_s11, %s8220_s5 }
0x18dd   : > { %p6684_p1 = pnand %p6683_p0, %p6535_p6 }
0x18df   : > { %p6685_p2 = pneg %p6684_p1 }
0x18e1   : > { %p6690_p4 = pnand %p6688_p3, %p6685_p2 }
0x18e3   : > { %6693 = shalt.err (!%p6690_p4)
}
0x18e4   : > { %s6726_s16 = smov 128  }
0x18e5   : > { %6532 = dma.vmem_to_hbm [thread:$0]  (%p6535_p6), %s6091_s6, 256, %s8220_s5, [#allocation4], %s6726_s16, %s6726_s16, %s6723_s30  }
0x18e6   : > { %6699 = dma.done.wait (%p6535_p6), [#allocation4], 256  }
0x18e7   : > { %6701 = vsyncadd (%p6535_p6), [#allocation4], 4294967040 }
0x18e8 PF: > { %s16_s18 = sadd.s32 1, %s6704_s18  }
0x18e9   : > { %p13_p5 = scmp.ge.s32.totalorder %s16_s18, 4  }
0x18eb   :  { %15 = sbr.rel (!%p13_p5) target bundleno = 1 (0x1), region = 84 }
0x18f2   :  { %6106 = vsyncpa [#allocation4], 1 }
0x18f3   :  { %6108 = vsyncpa [#allocation4 + $0x1], 1 }

</bundles_post_ra>
